<compile_context>
chip_gen: v7x
topology: tpu7x:2x2x1
jax: 0.10.0
libtpu: 0.0.40
codegen_flags: <defaults>
</compile_context>

<pallas_src>
import functools

import jax
import jax.numpy as jnp
from jax import lax
from jax.experimental import pallas as pl
from jax.experimental.pallas import tpu as pltpu


# ----------------------------------------------------------------------------
# In-kernel math helpers
# ----------------------------------------------------------------------------
def _erf(x):
    # Abramowitz & Stegun 7.1.26 rational approximation (max abs err ~1.5e-7)
    # with an exact divide, so GELU tracks PyTorch's exact-erf GELU closely.
    a1, a2, a3, a4, a5 = (0.254829592, -0.284496736, 1.421413741,
                          -1.453152027, 1.061405429)
    p = 0.3275911
    ax = jnp.abs(x)
    t = 1.0 / (1.0 + p * ax)
    poly = ((((a5 * t + a4) * t + a3) * t + a2) * t + a1) * t
    e = 1.0 - poly * jnp.exp(-ax * ax)
    return jnp.where(x >= 0.0, e, -e)


def _gelu_exact(x):
    # PyTorch default F.gelu: 0.5 * x * (1 + erf(x / sqrt(2)))
    return 0.5 * x * (1.0 + _erf(x * 0.7071067811865476))


# ----------------------------------------------------------------------------
# Fused whole-tower kernel (one batch element per grid step)
# ----------------------------------------------------------------------------
def _tower_kernel(x_ref, g1_ref, be1_ref, w1_ref, b1_ref,
                  g2_ref, be2_ref, w2_ref, b2_ref, o_ref, pad_ref,
                  *, H, W, C, K, GS, OFF, dilations):
    HW = H * W
    NG = C // GS
    inv_cnt = 1.0 / float(GS * HW)

    # Halo strips of the lane-padded activation scratch must be zero.  Re-zero
    # them every grid step (megacore-safe: each TensorCore has its own private
    # scratch); the interior is fully overwritten by every conv below.
    pad_ref[:, pl.ds(0, OFF)] = jnp.zeros((C, OFF), jnp.bfloat16)
    pad_ref[:, pl.ds(OFF + HW, OFF)] = jnp.zeros((C, OFF), jnp.bfloat16)

    # Within-row coordinate of each flattened spatial position (hoisted; used
    # by the per-tap W-boundary masks).
    widx = lax.broadcasted_iota(jnp.int32, (1, HW), 1) % W

    def gn_gelu(x, gamma, beta):
        # GroupNorm(C // 8, C, eps=1e-5, affine) + exact GELU, lane-dense.
        # x: (C, HW) f32; gamma/beta: (C, 1) f32.
        outs = []
        for g in range(NG):
            xg = x[g * GS:(g + 1) * GS, :]                         # (GS, HW)
            mean = jnp.sum(xg, keepdims=True) * inv_cnt            # (1, 1)
            ex2 = jnp.sum(xg * xg, keepdims=True) * inv_cnt        # (1, 1)
            inv = lax.rsqrt(ex2 - mean * mean + 1e-5)
            scale = inv * gamma[g * GS:(g + 1) * GS, :]            # (GS, 1)
            shift = beta[g * GS:(g + 1) * GS, :] - mean * scale
            outs.append(_gelu_exact(xg * scale + shift))
        return jnp.concatenate(outs, axis=0)                       # (C, HW)

    def conv(a, wmat, bias, D):
        # Dilated KxK "same" conv as one im2col matmul.
        # a: (C, HW) f32; wmat: (C, K*K*C) bf16; bias: (C, 1) f32.
        P = (K // 2) * D
        # Single f32->bf16 cast; every tap below is just a lane slice of this.
        pad_ref[:, pl.ds(OFF, HW)] = a.astype(jnp.bfloat16)
        taps = []
        for kh in range(K):
            for kw in range(K):
                dh, dw = kh * D - P, kw * D - P
                tap = pad_ref[:, pl.ds(OFF + dh * W + dw, HW)]     # (C, HW) bf16
                # Row (h) overflow lands in the zero halo; column (w) overflow
                # wraps into a neighbouring row and is masked out here.
                wvalid = (widx + dw >= 0) & (widx + dw < W)
                taps.append(jnp.where(wvalid, tap, jnp.zeros_like(tap)))
        col = jnp.concatenate(taps, axis=0)                        # (K*K*C, HW)
        out = jnp.dot(wmat, col, preferred_element_type=jnp.float32)
        return out + bias                                          # (C, HW) f32

    x = x_ref[0]                                                   # (C, HW) f32
    for l, D in enumerate(dilations):                              # static unroll
        a1 = gn_gelu(x, g1_ref[l], be1_ref[l])
        h1 = conv(a1, w1_ref[l], b1_ref[l], D)
        a2 = gn_gelu(h1, g2_ref[l], be2_ref[l])
        h2 = conv(a2, w2_ref[l], b2_ref[l], D)
        # TODO(synk): nn.Dropout(0.2) is identity here (inference-mode forward).
        x = x + h2
    o_ref[0] = x


# ----------------------------------------------------------------------------
# Wrapper: FibonacciResidualTower forward (NCHW in / NCHW out)
# ----------------------------------------------------------------------------
def fibonacci_residual_tower(x_nchw, params, *, kernel_size, groups=4):
    B, C, H, W = x_nchw.shape
    K = kernel_size
    L = len(params)
    assert C % 8 == 0, "GroupNorm(C // 8, C) needs C % 8 == 0"
    assert C % groups == 0, "grouped conv needs C % groups == 0"
    GS = 8                      # nn.GroupNorm(C // 8, C) -> group size 8
    HW = H * W

    dilations = tuple(int(p["dilation"]) for p in params)
    p_max = (K // 2) * max(dilations)
    s_max = p_max * W + p_max
    OFF = max(128, ((s_max + 127) // 128) * 128)   # lane-aligned halo width

    g1 = jnp.stack([p["gamma1"] for p in params]).reshape(L, C, 1).astype(jnp.float32)
    be1 = jnp.stack([p["beta1"] for p in params]).reshape(L, C, 1).astype(jnp.float32)
    w1 = jnp.stack([p["w1mat"] for p in params]).astype(jnp.bfloat16)   # (L, C, K*K*C)
    b1 = jnp.stack([p["b1"] for p in params]).reshape(L, C, 1).astype(jnp.float32)
    g2 = jnp.stack([p["gamma2"] for p in params]).reshape(L, C, 1).astype(jnp.float32)
    be2 = jnp.stack([p["beta2"] for p in params]).reshape(L, C, 1).astype(jnp.float32)
    w2 = jnp.stack([p["w2mat"] for p in params]).astype(jnp.bfloat16)   # (L, C, K*K*C)
    b2 = jnp.stack([p["b2"] for p in params]).reshape(L, C, 1).astype(jnp.float32)

    x = x_nchw.reshape(B, C, HW).astype(jnp.float32)   # lane-dense last dim

    kernel = functools.partial(_tower_kernel, H=H, W=W, C=C, K=K, GS=GS,
                               OFF=OFF, dilations=dilations)

    def full(shape):
        return pl.BlockSpec(shape, lambda b, _s=shape: (0,) * len(_s))

    out = pl.pallas_call(
        kernel,
        out_shape=jax.ShapeDtypeStruct((B, C, HW), jnp.float32),
        grid=(B,),
        in_specs=[
            pl.BlockSpec((1, C, HW), lambda b: (b, 0, 0)),   # x (lane-dense)
            full((L, C, 1)),                                 # gamma1
            full((L, C, 1)),                                 # beta1
            full((L, C, K * K * C)),                         # w1 (im2col layout)
            full((L, C, 1)),                                 # b1
            full((L, C, 1)),                                 # gamma2
            full((L, C, 1)),                                 # beta2
            full((L, C, K * K * C)),                         # w2 (block-diagonal)
            full((L, C, 1)),                                 # b2
        ],
        out_specs=pl.BlockSpec((1, C, HW), lambda b: (b, 0, 0)),
        scratch_shapes=[pltpu.VMEM((C, HW + 2 * OFF), jnp.bfloat16)],
        compiler_params=pltpu.CompilerParams(
            dimension_semantics=("parallel",),
            vmem_limit_bytes=8 * 1024 * 1024,   # actual footprint is < 1 MiB
        ),
    )(x, g1, be1, w1, b1, g2, be2, w2, b2)

    return out.reshape(B, C, H, W)


# ----------------------------------------------------------------------------
# Weight-layout helpers (torch conv layout -> im2col kernel layout)
# ----------------------------------------------------------------------------
def _dense_conv_to_mat(w_oikk):
    # torch (Cout, Cin, K, K) -> (Cout, K*K*Cin); columns ordered tap-major
    # (kh, kw) then input channel, matching the kernel's im2col row order.
    Cout, Cin, K, _ = w_oikk.shape
    return jnp.transpose(w_oikk, (0, 2, 3, 1)).reshape(Cout, K * K * Cin)


def _grouped_conv_to_blockdiag_mat(w_oikk, groups):
    # torch grouped (Cout, Cin/groups, K, K) -> dense block-diagonal
    # (Cout, K*K*Cin) im2col matrix so conv2 reuses the dense-conv path.
    Cout, Cig, K, _ = w_oikk.shape
    Cog = Cout // groups
    Cin = Cig * groups
    dense = jnp.zeros((Cout, Cin, K, K), w_oikk.dtype)
    for g in range(groups):
        dense = dense.at[g * Cog:(g + 1) * Cog, g * Cig:(g + 1) * Cig].set(
            w_oikk[g * Cog:(g + 1) * Cog])
    return _dense_conv_to_mat(dense)


def fibonacci_dilations(num_layers):
    a, b = 1, 2
    out = []
    for _ in range(num_layers):
        out.append(a)
        a, b = b, a + b
    return out


def init_tower_params(key, channels, num_layers, kernel_size, groups=4):
    params = []
    for i, dil in enumerate(fibonacci_dilations(num_layers)):
        k = jax.random.fold_in(key, i)
        ks = jax.random.split(k, 8)
        fan1 = channels * kernel_size * kernel_size
        fan2 = (channels // groups) * kernel_size * kernel_size
        w1_t = jax.random.normal(
            ks[2], (channels, channels, kernel_size, kernel_size),
            jnp.float32) / jnp.sqrt(fan1)
        w2_t = jax.random.normal(
            ks[6], (channels, channels // groups, kernel_size, kernel_size),
            jnp.float32) / jnp.sqrt(fan2)
        params.append(dict(
            dilation=dil,
            gamma1=1.0 + 0.05 * jax.random.normal(ks[0], (channels,), jnp.float32),
            beta1=0.05 * jax.random.normal(ks[1], (channels,), jnp.float32),
            w1mat=_dense_conv_to_mat(w1_t),
            b1=0.05 * jax.random.normal(ks[3], (channels,), jnp.float32),
            gamma2=1.0 + 0.05 * jax.random.normal(ks[4], (channels,), jnp.float32),
            beta2=0.05 * jax.random.normal(ks[5], (channels,), jnp.float32),
            w2mat=_grouped_conv_to_blockdiag_mat(w2_t, groups),
            b2=0.05 * jax.random.normal(ks[7], (channels,), jnp.float32),
        ))
    return params


if __name__ == "__main__":
    B, C, H, W = 2, 16, 16, 16      # C divisible by 8 (GroupNorm) and 4 (groups)
    NUM_LAYERS, KSIZE = 2, 3        # Fibonacci dilations: [1, 2]

    key = jax.random.PRNGKey(0)
    kx, kp = jax.random.split(key)
    x = jax.random.normal(kx, (B, C, H, W), dtype=jnp.float32)
    params = init_tower_params(kp, C, NUM_LAYERS, KSIZE)

    out = fibonacci_residual_tower(x, params, kernel_size=KSIZE)
    out = jax.block_until_ready(out)
    assert out.shape == (B, C, H, W) and out.dtype == jnp.float32
    print("KERNEL_OK")
</pallas_src>

<mosaic_0001>
module attributes {stable_mosaic.version = 11 : i64} {
  func.func @_tower_kernel(%arg0: i32, %arg1: memref<1x16x256xf32, #tpu.memory_space<vmem>>, %arg2: memref<2x16x1xf32, #tpu.memory_space<vmem>>, %arg3: memref<2x16x1xf32, #tpu.memory_space<vmem>>, %arg4: memref<2x16x144xbf16, #tpu.memory_space<vmem>>, %arg5: memref<2x16x1xf32, #tpu.memory_space<vmem>>, %arg6: memref<2x16x1xf32, #tpu.memory_space<vmem>>, %arg7: memref<2x16x1xf32, #tpu.memory_space<vmem>>, %arg8: memref<2x16x144xbf16, #tpu.memory_space<vmem>>, %arg9: memref<2x16x1xf32, #tpu.memory_space<vmem>>, %arg10: memref<1x16x256xf32, #tpu.memory_space<vmem>>, %arg11: memref<16x512xbf16, #tpu.memory_space<vmem>>) attributes {dimension_semantics = [#tpu.dimension_semantics<parallel>], iteration_bounds = array<i64: 2>, scalar_prefetch = 0 : i64, scratch_operands = 1 : i64, tpu.core_type = #tpu.core_type<tc>, window_params = [{transform_indices = @transform_0, window_bounds = array<i64: 1, 16, 256>}, {pipeline_mode = #tpu.pipeline_mode<synchronous>, transform_indices = @transform_1, window_bounds = array<i64: 2, 16, 1>}, {pipeline_mode = #tpu.pipeline_mode<synchronous>, transform_indices = @transform_2, window_bounds = array<i64: 2, 16, 1>}, {pipeline_mode = #tpu.pipeline_mode<synchronous>, transform_indices = @transform_3, window_bounds = array<i64: 2, 16, 144>}, {pipeline_mode = #tpu.pipeline_mode<synchronous>, transform_indices = @transform_4, window_bounds = array<i64: 2, 16, 1>}, {pipeline_mode = #tpu.pipeline_mode<synchronous>, transform_indices = @transform_5, window_bounds = array<i64: 2, 16, 1>}, {pipeline_mode = #tpu.pipeline_mode<synchronous>, transform_indices = @transform_6, window_bounds = array<i64: 2, 16, 1>}, {pipeline_mode = #tpu.pipeline_mode<synchronous>, transform_indices = @transform_7, window_bounds = array<i64: 2, 16, 144>}, {pipeline_mode = #tpu.pipeline_mode<synchronous>, transform_indices = @transform_8, window_bounds = array<i64: 2, 16, 1>}, {transform_indices = @transform_9, window_bounds = array<i64: 1, 16, 256>}]} {
    %cst = arith.constant 0.000000e+00 : bf16
    %0 = vector.broadcast %cst : bf16 to vector<16x128xbf16>
    %c0 = arith.constant 0 : index
    %c0_0 = arith.constant 0 : index
    %1 = vector.load %arg11[%c0, %c0_0] : memref<16x512xbf16, #tpu.memory_space<vmem>>, vector<16x128xbf16>
    tpu.vector_store %arg11[%c0, %c0_0], %0 {strides = array<i32>} : memref<16x512xbf16, #tpu.memory_space<vmem>>, vector<16x128xbf16>,
    %cst_1 = arith.constant 0.000000e+00 : bf16
    %2 = vector.broadcast %cst_1 : bf16 to vector<16x128xbf16>
    %c0_2 = arith.constant 0 : index
    %c384 = arith.constant 384 : index
    %3 = vector.load %arg11[%c0_2, %c384] : memref<16x512xbf16, #tpu.memory_space<vmem>>, vector<16x128xbf16>
    tpu.vector_store %arg11[%c0_2, %c384], %2 {strides = array<i32>} : memref<16x512xbf16, #tpu.memory_space<vmem>>, vector<16x128xbf16>,
    %4 = tpu.iota {dimensions = array<i32: 1>} : vector<1x256xi32>
    %c16_i32 = arith.constant 16 : i32
    %c0_i32 = arith.constant 0 : i32
    %5 = arith.cmpi eq, %c16_i32, %c0_i32 : i32
    %c1_i32 = arith.constant 1 : i32
    %6 = arith.select %5, %c1_i32, %c16_i32 : i32
    %7 = vector.broadcast %6 : i32 to vector<1x256xi32>
    %8 = arith.remsi %4, %7 : vector<1x256xi32>
    %c0_i32_3 = arith.constant 0 : i32
    %9 = vector.broadcast %c0_i32_3 : i32 to vector<1x256xi32>
    %10 = arith.cmpi ne, %8, %9 : vector<1x256xi32>
    %c0_i32_4 = arith.constant 0 : i32
    %11 = vector.broadcast %c0_i32_4 : i32 to vector<1x256xi32>
    %12 = arith.cmpi slt, %8, %11 : vector<1x256xi32>
    %c0_i32_5 = arith.constant 0 : i32
    %13 = arith.cmpi slt, %6, %c0_i32_5 : i32
    %14 = vector.broadcast %13 : i1 to vector<1x256xi1>
    %15 = vector.broadcast %14 : vector<1x256xi1> to vector<1x256xi1>
    %16 = arith.xori %12, %15 : vector<1x256xi1>
    %17 = arith.andi %16, %10 : vector<1x256xi1>
    %18 = vector.broadcast %6 : i32 to vector<1x256xi32>
    %19 = arith.addi %8, %18 : vector<1x256xi32>
    %20 = arith.select %17, %19, %8 : vector<1x256xi1>, vector<1x256xi32>
    %c0_6 = arith.constant 0 : index
    %c0_7 = arith.constant 0 : index
    %c0_8 = arith.constant 0 : index
    %21 = vector.load %arg1[%c0_6, %c0_7, %c0_8] : memref<1x16x256xf32, #tpu.memory_space<vmem>>, vector<1x16x256xf32>
    %22 = vector.shape_cast %21 : vector<1x16x256xf32> to vector<16x256xf32>
    %c0_9 = arith.constant 0 : index
    %c0_10 = arith.constant 0 : index
    %c0_11 = arith.constant 0 : index
    %23 = vector.load %arg2[%c0_9, %c0_10, %c0_11] : memref<2x16x1xf32, #tpu.memory_space<vmem>>, vector<1x16x1xf32>
    %24 = vector.shape_cast %23 : vector<1x16x1xf32> to vector<16x1xf32>
    %c0_12 = arith.constant 0 : index
    %c0_13 = arith.constant 0 : index
    %c0_14 = arith.constant 0 : index
    %25 = vector.load %arg3[%c0_12, %c0_13, %c0_14] : memref<2x16x1xf32, #tpu.memory_space<vmem>>, vector<1x16x1xf32>
    %26 = vector.shape_cast %25 : vector<1x16x1xf32> to vector<16x1xf32>
    %27 = vector.extract_strided_slice %22 {offsets = [0, 0], sizes = [8, 256], strides = [1, 1]} : vector<16x256xf32> to vector<8x256xf32>
    %28 = vector.shape_cast %27 : vector<8x256xf32> to vector<1x8x256xf32>
    %cst_15 = arith.constant dense<0.000000e+00> : vector<1xf32>
    %29 = vector.multi_reduction <add>, %28, %cst_15 [1, 2] : vector<1x8x256xf32> to vector<1xf32>
    %30 = vector.shape_cast %29 : vector<1xf32> to vector<1x1x1xf32>
    %31 = vector.extract %30[0, 0, 0] : f32 from vector<1x1x1xf32>
    %32 = vector.broadcast %31 : f32 to vector<1x1xf32>
    %cst_16 = arith.constant 4.8828125E-4 : f32
    %33 = vector.broadcast %cst_16 : f32 to vector<1x1xf32>
    %34 = arith.mulf %32, %33 : vector<1x1xf32>
    %35 = arith.mulf %27, %27 : vector<8x256xf32>
    %36 = vector.shape_cast %35 : vector<8x256xf32> to vector<1x8x256xf32>
    %cst_17 = arith.constant dense<0.000000e+00> : vector<1xf32>
    %37 = vector.multi_reduction <add>, %36, %cst_17 [1, 2] : vector<1x8x256xf32> to vector<1xf32>
    %38 = vector.shape_cast %37 : vector<1xf32> to vector<1x1x1xf32>
    %39 = vector.extract %38[0, 0, 0] : f32 from vector<1x1x1xf32>
    %40 = vector.broadcast %39 : f32 to vector<1x1xf32>
    %cst_18 = arith.constant 4.8828125E-4 : f32
    %41 = vector.broadcast %cst_18 : f32 to vector<1x1xf32>
    %42 = arith.mulf %40, %41 : vector<1x1xf32>
    %43 = arith.mulf %34, %34 : vector<1x1xf32>
    %44 = arith.subf %42, %43 : vector<1x1xf32>
    %cst_19 = arith.constant 9.99999974E-6 : f32
    %45 = vector.broadcast %cst_19 : f32 to vector<1x1xf32>
    %46 = arith.addf %44, %45 : vector<1x1xf32>
    %47 = math.rsqrt %46 : vector<1x1xf32>
    %48 = vector.extract_strided_slice %24 {offsets = [0, 0], sizes = [8, 1], strides = [1, 1]} : vector<16x1xf32> to vector<8x1xf32>
    %49 = vector.broadcast %47 : vector<1x1xf32> to vector<8x1xf32>
    %50 = arith.mulf %49, %48 : vector<8x1xf32>
    %51 = vector.extract_strided_slice %26 {offsets = [0, 0], sizes = [8, 1], strides = [1, 1]} : vector<16x1xf32> to vector<8x1xf32>
    %52 = vector.broadcast %34 : vector<1x1xf32> to vector<8x1xf32>
    %53 = arith.mulf %52, %50 : vector<8x1xf32>
    %54 = arith.subf %51, %53 : vector<8x1xf32>
    %55 = vector.broadcast %50 : vector<8x1xf32> to vector<8x256xf32>
    %56 = arith.mulf %27, %55 : vector<8x256xf32>
    %57 = vector.broadcast %54 : vector<8x1xf32> to vector<8x256xf32>
    %58 = arith.addf %56, %57 : vector<8x256xf32>
    %cst_20 = arith.constant 5.000000e-01 : f32
    %59 = vector.broadcast %cst_20 : f32 to vector<8x256xf32>
    %60 = arith.mulf %59, %58 : vector<8x256xf32>
    %cst_21 = arith.constant 0.707106769 : f32
    %61 = vector.broadcast %cst_21 : f32 to vector<8x256xf32>
    %62 = arith.mulf %58, %61 : vector<8x256xf32>
    %63 = math.absf %62 : vector<8x256xf32>
    %cst_22 = arith.constant 0.327591091 : f32
    %64 = vector.broadcast %cst_22 : f32 to vector<8x256xf32>
    %65 = arith.mulf %64, %63 : vector<8x256xf32>
    %cst_23 = arith.constant 1.000000e+00 : f32
    %66 = vector.broadcast %cst_23 : f32 to vector<8x256xf32>
    %67 = arith.addf %66, %65 : vector<8x256xf32>
    %cst_24 = arith.constant 1.000000e+00 : f32
    %68 = vector.broadcast %cst_24 : f32 to vector<8x256xf32>
    %69 = arith.divf %68, %67 : vector<8x256xf32>
    %cst_25 = arith.constant 1.06140542 : f32
    %70 = vector.broadcast %cst_25 : f32 to vector<8x256xf32>
    %71 = arith.mulf %70, %69 : vector<8x256xf32>
    %cst_26 = arith.constant -1.45315206 : f32
    %72 = vector.broadcast %cst_26 : f32 to vector<8x256xf32>
    %73 = arith.addf %71, %72 : vector<8x256xf32>
    %74 = arith.mulf %73, %69 : vector<8x256xf32>
    %cst_27 = arith.constant 1.42141378 : f32
    %75 = vector.broadcast %cst_27 : f32 to vector<8x256xf32>
    %76 = arith.addf %74, %75 : vector<8x256xf32>
    %77 = arith.mulf %76, %69 : vector<8x256xf32>
    %cst_28 = arith.constant -0.284496725 : f32
    %78 = vector.broadcast %cst_28 : f32 to vector<8x256xf32>
    %79 = arith.addf %77, %78 : vector<8x256xf32>
    %80 = arith.mulf %79, %69 : vector<8x256xf32>
    %cst_29 = arith.constant 0.254829586 : f32
    %81 = vector.broadcast %cst_29 : f32 to vector<8x256xf32>
    %82 = arith.addf %80, %81 : vector<8x256xf32>
    %83 = arith.mulf %82, %69 : vector<8x256xf32>
    %cst_30 = arith.constant 0.000000e+00 : f32
    %84 = vector.broadcast %cst_30 : f32 to vector<8x256xf32>
    %85 = arith.subf %84, %63 : vector<8x256xf32>
    %86 = arith.mulf %85, %63 : vector<8x256xf32>
    %87 = math.exp %86 : vector<8x256xf32>
    %88 = arith.mulf %83, %87 : vector<8x256xf32>
    %cst_31 = arith.constant 1.000000e+00 : f32
    %89 = vector.broadcast %cst_31 : f32 to vector<8x256xf32>
    %90 = arith.subf %89, %88 : vector<8x256xf32>
    %cst_32 = arith.constant 0.000000e+00 : f32
    %91 = vector.broadcast %cst_32 : f32 to vector<8x256xf32>
    %92 = arith.cmpf oge, %62, %91 : vector<8x256xf32>
    %cst_33 = arith.constant 0.000000e+00 : f32
    %93 = vector.broadcast %cst_33 : f32 to vector<8x256xf32>
    %94 = arith.subf %93, %90 : vector<8x256xf32>
    %95 = arith.select %92, %90, %94 : vector<8x256xi1>, vector<8x256xf32>
    %cst_34 = arith.constant 1.000000e+00 : f32
    %96 = vector.broadcast %cst_34 : f32 to vector<8x256xf32>
    %97 = arith.addf %96, %95 : vector<8x256xf32>
    %98 = arith.mulf %60, %97 : vector<8x256xf32>
    %99 = vector.extract_strided_slice %22 {offsets = [8, 0], sizes = [8, 256], strides = [1, 1]} : vector<16x256xf32> to vector<8x256xf32>
    %100 = vector.shape_cast %99 : vector<8x256xf32> to vector<1x8x256xf32>
    %cst_35 = arith.constant dense<0.000000e+00> : vector<1xf32>
    %101 = vector.multi_reduction <add>, %100, %cst_35 [1, 2] : vector<1x8x256xf32> to vector<1xf32>
    %102 = vector.shape_cast %101 : vector<1xf32> to vector<1x1x1xf32>
    %103 = vector.extract %102[0, 0, 0] : f32 from vector<1x1x1xf32>
    %104 = vector.broadcast %103 : f32 to vector<1x1xf32>
    %cst_36 = arith.constant 4.8828125E-4 : f32
    %105 = vector.broadcast %cst_36 : f32 to vector<1x1xf32>
    %106 = arith.mulf %104, %105 : vector<1x1xf32>
    %107 = arith.mulf %99, %99 : vector<8x256xf32>
    %108 = vector.shape_cast %107 : vector<8x256xf32> to vector<1x8x256xf32>
    %cst_37 = arith.constant dense<0.000000e+00> : vector<1xf32>
    %109 = vector.multi_reduction <add>, %108, %cst_37 [1, 2] : vector<1x8x256xf32> to vector<1xf32>
    %110 = vector.shape_cast %109 : vector<1xf32> to vector<1x1x1xf32>
    %111 = vector.extract %110[0, 0, 0] : f32 from vector<1x1x1xf32>
    %112 = vector.broadcast %111 : f32 to vector<1x1xf32>
    %cst_38 = arith.constant 4.8828125E-4 : f32
    %113 = vector.broadcast %cst_38 : f32 to vector<1x1xf32>
    %114 = arith.mulf %112, %113 : vector<1x1xf32>
    %115 = arith.mulf %106, %106 : vector<1x1xf32>
    %116 = arith.subf %114, %115 : vector<1x1xf32>
    %cst_39 = arith.constant 9.99999974E-6 : f32
    %117 = vector.broadcast %cst_39 : f32 to vector<1x1xf32>
    %118 = arith.addf %116, %117 : vector<1x1xf32>
    %119 = math.rsqrt %118 : vector<1x1xf32>
    %120 = vector.extract_strided_slice %24 {offsets = [8, 0], sizes = [8, 1], strides = [1, 1]} : vector<16x1xf32> to vector<8x1xf32>
    %121 = vector.broadcast %119 : vector<1x1xf32> to vector<8x1xf32>
    %122 = arith.mulf %121, %120 : vector<8x1xf32>
    %123 = vector.extract_strided_slice %26 {offsets = [8, 0], sizes = [8, 1], strides = [1, 1]} : vector<16x1xf32> to vector<8x1xf32>
    %124 = vector.broadcast %106 : vector<1x1xf32> to vector<8x1xf32>
    %125 = arith.mulf %124, %122 : vector<8x1xf32>
    %126 = arith.subf %123, %125 : vector<8x1xf32>
    %127 = vector.broadcast %122 : vector<8x1xf32> to vector<8x256xf32>
    %128 = arith.mulf %99, %127 : vector<8x256xf32>
    %129 = vector.broadcast %126 : vector<8x1xf32> to vector<8x256xf32>
    %130 = arith.addf %128, %129 : vector<8x256xf32>
    %cst_40 = arith.constant 5.000000e-01 : f32
    %131 = vector.broadcast %cst_40 : f32 to vector<8x256xf32>
    %132 = arith.mulf %131, %130 : vector<8x256xf32>
    %cst_41 = arith.constant 0.707106769 : f32
    %133 = vector.broadcast %cst_41 : f32 to vector<8x256xf32>
    %134 = arith.mulf %130, %133 : vector<8x256xf32>
    %135 = math.absf %134 : vector<8x256xf32>
    %cst_42 = arith.constant 0.327591091 : f32
    %136 = vector.broadcast %cst_42 : f32 to vector<8x256xf32>
    %137 = arith.mulf %136, %135 : vector<8x256xf32>
    %cst_43 = arith.constant 1.000000e+00 : f32
    %138 = vector.broadcast %cst_43 : f32 to vector<8x256xf32>
    %139 = arith.addf %138, %137 : vector<8x256xf32>
    %cst_44 = arith.constant 1.000000e+00 : f32
    %140 = vector.broadcast %cst_44 : f32 to vector<8x256xf32>
    %141 = arith.divf %140, %139 : vector<8x256xf32>
    %cst_45 = arith.constant 1.06140542 : f32
    %142 = vector.broadcast %cst_45 : f32 to vector<8x256xf32>
    %143 = arith.mulf %142, %141 : vector<8x256xf32>
    %cst_46 = arith.constant -1.45315206 : f32
    %144 = vector.broadcast %cst_46 : f32 to vector<8x256xf32>
    %145 = arith.addf %143, %144 : vector<8x256xf32>
    %146 = arith.mulf %145, %141 : vector<8x256xf32>
    %cst_47 = arith.constant 1.42141378 : f32
    %147 = vector.broadcast %cst_47 : f32 to vector<8x256xf32>
    %148 = arith.addf %146, %147 : vector<8x256xf32>
    %149 = arith.mulf %148, %141 : vector<8x256xf32>
    %cst_48 = arith.constant -0.284496725 : f32
    %150 = vector.broadcast %cst_48 : f32 to vector<8x256xf32>
    %151 = arith.addf %149, %150 : vector<8x256xf32>
    %152 = arith.mulf %151, %141 : vector<8x256xf32>
    %cst_49 = arith.constant 0.254829586 : f32
    %153 = vector.broadcast %cst_49 : f32 to vector<8x256xf32>
    %154 = arith.addf %152, %153 : vector<8x256xf32>
    %155 = arith.mulf %154, %141 : vector<8x256xf32>
    %cst_50 = arith.constant 0.000000e+00 : f32
    %156 = vector.broadcast %cst_50 : f32 to vector<8x256xf32>
    %157 = arith.subf %156, %135 : vector<8x256xf32>
    %158 = arith.mulf %157, %135 : vector<8x256xf32>
    %159 = math.exp %158 : vector<8x256xf32>
    %160 = arith.mulf %155, %159 : vector<8x256xf32>
    %cst_51 = arith.constant 1.000000e+00 : f32
    %161 = vector.broadcast %cst_51 : f32 to vector<8x256xf32>
    %162 = arith.subf %161, %160 : vector<8x256xf32>
    %cst_52 = arith.constant 0.000000e+00 : f32
    %163 = vector.broadcast %cst_52 : f32 to vector<8x256xf32>
    %164 = arith.cmpf oge, %134, %163 : vector<8x256xf32>
    %cst_53 = arith.constant 0.000000e+00 : f32
    %165 = vector.broadcast %cst_53 : f32 to vector<8x256xf32>
    %166 = arith.subf %165, %162 : vector<8x256xf32>
    %167 = arith.select %164, %162, %166 : vector<8x256xi1>, vector<8x256xf32>
    %cst_54 = arith.constant 1.000000e+00 : f32
    %168 = vector.broadcast %cst_54 : f32 to vector<8x256xf32>
    %169 = arith.addf %168, %167 : vector<8x256xf32>
    %170 = arith.mulf %132, %169 : vector<8x256xf32>
    %171 = tpu.concatenate %98, %170 in 0 : vector<8x256xf32>, vector<8x256xf32> -> vector<16x256xf32>
    %c0_55 = arith.constant 0 : index
    %c0_56 = arith.constant 0 : index
    %c0_57 = arith.constant 0 : index
    %172 = vector.load %arg4[%c0_55, %c0_56, %c0_57] : memref<2x16x144xbf16, #tpu.memory_space<vmem>>, vector<1x16x144xbf16>
    %173 = vector.shape_cast %172 : vector<1x16x144xbf16> to vector<16x144xbf16>
    %c0_58 = arith.constant 0 : index
    %c0_59 = arith.constant 0 : index
    %c0_60 = arith.constant 0 : index
    %174 = vector.load %arg5[%c0_58, %c0_59, %c0_60] : memref<2x16x1xf32, #tpu.memory_space<vmem>>, vector<1x16x1xf32>
    %175 = vector.shape_cast %174 : vector<1x16x1xf32> to vector<16x1xf32>
    %176 = arith.truncf %171 : vector<16x256xf32> to vector<16x256xbf16>
    %c0_61 = arith.constant 0 : index
    %c128 = arith.constant 128 : index
    %177 = vector.load %arg11[%c0_61, %c128] : memref<16x512xbf16, #tpu.memory_space<vmem>>, vector<16x256xbf16>
    tpu.vector_store %arg11[%c0_61, %c128], %176 {strides = array<i32>} : memref<16x512xbf16, #tpu.memory_space<vmem>>, vector<16x256xbf16>,
    %c0_62 = arith.constant 0 : index
    %c111 = arith.constant 111 : index
    %178 = vector.load %arg11[%c0_62, %c111] : memref<16x512xbf16, #tpu.memory_space<vmem>>, vector<16x256xbf16>
    %c-1_i32 = arith.constant -1 : i32
    %179 = vector.broadcast %c-1_i32 : i32 to vector<1x256xi32>
    %180 = arith.addi %20, %179 : vector<1x256xi32>
    %c0_i32_63 = arith.constant 0 : i32
    %181 = vector.broadcast %c0_i32_63 : i32 to vector<1x256xi32>
    %182 = arith.cmpi sge, %180, %181 : vector<1x256xi32>
    %c-1_i32_64 = arith.constant -1 : i32
    %183 = vector.broadcast %c-1_i32_64 : i32 to vector<1x256xi32>
    %184 = arith.addi %20, %183 : vector<1x256xi32>
    %c16_i32_65 = arith.constant 16 : i32
    %185 = vector.broadcast %c16_i32_65 : i32 to vector<1x256xi32>
    %186 = arith.cmpi slt, %184, %185 : vector<1x256xi32>
    %187 = arith.andi %182, %186 : vector<1x256xi1>
    %cst_66 = arith.constant 0.000000e+00 : bf16
    %188 = vector.broadcast %cst_66 : bf16 to vector<16x256xbf16>
    %189 = vector.shape_cast %187 : vector<1x256xi1> to vector<1x256xi1>
    %190 = vector.broadcast %189 : vector<1x256xi1> to vector<16x256xi1>
    %191 = arith.select %190, %178, %188 : vector<16x256xi1>, vector<16x256xbf16>
    %c0_67 = arith.constant 0 : index
    %c112 = arith.constant 112 : index
    %192 = vector.load %arg11[%c0_67, %c112] : memref<16x512xbf16, #tpu.memory_space<vmem>>, vector<16x256xbf16>
    %c0_i32_68 = arith.constant 0 : i32
    %193 = vector.broadcast %c0_i32_68 : i32 to vector<1x256xi32>
    %194 = arith.addi %20, %193 : vector<1x256xi32>
    %c0_i32_69 = arith.constant 0 : i32
    %195 = vector.broadcast %c0_i32_69 : i32 to vector<1x256xi32>
    %196 = arith.cmpi sge, %194, %195 : vector<1x256xi32>
    %c0_i32_70 = arith.constant 0 : i32
    %197 = vector.broadcast %c0_i32_70 : i32 to vector<1x256xi32>
    %198 = arith.addi %20, %197 : vector<1x256xi32>
    %c16_i32_71 = arith.constant 16 : i32
    %199 = vector.broadcast %c16_i32_71 : i32 to vector<1x256xi32>
    %200 = arith.cmpi slt, %198, %199 : vector<1x256xi32>
    %201 = arith.andi %196, %200 : vector<1x256xi1>
    %cst_72 = arith.constant 0.000000e+00 : bf16
    %202 = vector.broadcast %cst_72 : bf16 to vector<16x256xbf16>
    %203 = vector.shape_cast %201 : vector<1x256xi1> to vector<1x256xi1>
    %204 = vector.broadcast %203 : vector<1x256xi1> to vector<16x256xi1>
    %205 = arith.select %204, %192, %202 : vector<16x256xi1>, vector<16x256xbf16>
    %c0_73 = arith.constant 0 : index
    %c113 = arith.constant 113 : index
    %206 = vector.load %arg11[%c0_73, %c113] : memref<16x512xbf16, #tpu.memory_space<vmem>>, vector<16x256xbf16>
    %c1_i32_74 = arith.constant 1 : i32
    %207 = vector.broadcast %c1_i32_74 : i32 to vector<1x256xi32>
    %208 = arith.addi %20, %207 : vector<1x256xi32>
    %c0_i32_75 = arith.constant 0 : i32
    %209 = vector.broadcast %c0_i32_75 : i32 to vector<1x256xi32>
    %210 = arith.cmpi sge, %208, %209 : vector<1x256xi32>
    %c1_i32_76 = arith.constant 1 : i32
    %211 = vector.broadcast %c1_i32_76 : i32 to vector<1x256xi32>
    %212 = arith.addi %20, %211 : vector<1x256xi32>
    %c16_i32_77 = arith.constant 16 : i32
    %213 = vector.broadcast %c16_i32_77 : i32 to vector<1x256xi32>
    %214 = arith.cmpi slt, %212, %213 : vector<1x256xi32>
    %215 = arith.andi %210, %214 : vector<1x256xi1>
    %cst_78 = arith.constant 0.000000e+00 : bf16
    %216 = vector.broadcast %cst_78 : bf16 to vector<16x256xbf16>
    %217 = vector.shape_cast %215 : vector<1x256xi1> to vector<1x256xi1>
    %218 = vector.broadcast %217 : vector<1x256xi1> to vector<16x256xi1>
    %219 = arith.select %218, %206, %216 : vector<16x256xi1>, vector<16x256xbf16>
    %c0_79 = arith.constant 0 : index
    %c127 = arith.constant 127 : index
    %220 = vector.load %arg11[%c0_79, %c127] : memref<16x512xbf16, #tpu.memory_space<vmem>>, vector<16x256xbf16>
    %c-1_i32_80 = arith.constant -1 : i32
    %221 = vector.broadcast %c-1_i32_80 : i32 to vector<1x256xi32>
    %222 = arith.addi %20, %221 : vector<1x256xi32>
    %c0_i32_81 = arith.constant 0 : i32
    %223 = vector.broadcast %c0_i32_81 : i32 to vector<1x256xi32>
    %224 = arith.cmpi sge, %222, %223 : vector<1x256xi32>
    %c-1_i32_82 = arith.constant -1 : i32
    %225 = vector.broadcast %c-1_i32_82 : i32 to vector<1x256xi32>
    %226 = arith.addi %20, %225 : vector<1x256xi32>
    %c16_i32_83 = arith.constant 16 : i32
    %227 = vector.broadcast %c16_i32_83 : i32 to vector<1x256xi32>
    %228 = arith.cmpi slt, %226, %227 : vector<1x256xi32>
    %229 = arith.andi %224, %228 : vector<1x256xi1>
    %cst_84 = arith.constant 0.000000e+00 : bf16
    %230 = vector.broadcast %cst_84 : bf16 to vector<16x256xbf16>
    %231 = vector.shape_cast %229 : vector<1x256xi1> to vector<1x256xi1>
    %232 = vector.broadcast %231 : vector<1x256xi1> to vector<16x256xi1>
    %233 = arith.select %232, %220, %230 : vector<16x256xi1>, vector<16x256xbf16>
    %c0_85 = arith.constant 0 : index
    %c128_86 = arith.constant 128 : index
    %234 = vector.load %arg11[%c0_85, %c128_86] : memref<16x512xbf16, #tpu.memory_space<vmem>>, vector<16x256xbf16>
    %c0_i32_87 = arith.constant 0 : i32
    %235 = vector.broadcast %c0_i32_87 : i32 to vector<1x256xi32>
    %236 = arith.addi %20, %235 : vector<1x256xi32>
    %c0_i32_88 = arith.constant 0 : i32
    %237 = vector.broadcast %c0_i32_88 : i32 to vector<1x256xi32>
    %238 = arith.cmpi sge, %236, %237 : vector<1x256xi32>
    %c0_i32_89 = arith.constant 0 : i32
    %239 = vector.broadcast %c0_i32_89 : i32 to vector<1x256xi32>
    %240 = arith.addi %20, %239 : vector<1x256xi32>
    %c16_i32_90 = arith.constant 16 : i32
    %241 = vector.broadcast %c16_i32_90 : i32 to vector<1x256xi32>
    %242 = arith.cmpi slt, %240, %241 : vector<1x256xi32>
    %243 = arith.andi %238, %242 : vector<1x256xi1>
    %cst_91 = arith.constant 0.000000e+00 : bf16
    %244 = vector.broadcast %cst_91 : bf16 to vector<16x256xbf16>
    %245 = vector.shape_cast %243 : vector<1x256xi1> to vector<1x256xi1>
    %246 = vector.broadcast %245 : vector<1x256xi1> to vector<16x256xi1>
    %247 = arith.select %246, %234, %244 : vector<16x256xi1>, vector<16x256xbf16>
    %c0_92 = arith.constant 0 : index
    %c129 = arith.constant 129 : index
    %248 = vector.load %arg11[%c0_92, %c129] : memref<16x512xbf16, #tpu.memory_space<vmem>>, vector<16x256xbf16>
    %c1_i32_93 = arith.constant 1 : i32
    %249 = vector.broadcast %c1_i32_93 : i32 to vector<1x256xi32>
    %250 = arith.addi %20, %249 : vector<1x256xi32>
    %c0_i32_94 = arith.constant 0 : i32
    %251 = vector.broadcast %c0_i32_94 : i32 to vector<1x256xi32>
    %252 = arith.cmpi sge, %250, %251 : vector<1x256xi32>
    %c1_i32_95 = arith.constant 1 : i32
    %253 = vector.broadcast %c1_i32_95 : i32 to vector<1x256xi32>
    %254 = arith.addi %20, %253 : vector<1x256xi32>
    %c16_i32_96 = arith.constant 16 : i32
    %255 = vector.broadcast %c16_i32_96 : i32 to vector<1x256xi32>
    %256 = arith.cmpi slt, %254, %255 : vector<1x256xi32>
    %257 = arith.andi %252, %256 : vector<1x256xi1>
    %cst_97 = arith.constant 0.000000e+00 : bf16
    %258 = vector.broadcast %cst_97 : bf16 to vector<16x256xbf16>
    %259 = vector.shape_cast %257 : vector<1x256xi1> to vector<1x256xi1>
    %260 = vector.broadcast %259 : vector<1x256xi1> to vector<16x256xi1>
    %261 = arith.select %260, %248, %258 : vector<16x256xi1>, vector<16x256xbf16>
    %c0_98 = arith.constant 0 : index
    %c143 = arith.constant 143 : index
    %262 = vector.load %arg11[%c0_98, %c143] : memref<16x512xbf16, #tpu.memory_space<vmem>>, vector<16x256xbf16>
    %c-1_i32_99 = arith.constant -1 : i32
    %263 = vector.broadcast %c-1_i32_99 : i32 to vector<1x256xi32>
    %264 = arith.addi %20, %263 : vector<1x256xi32>
    %c0_i32_100 = arith.constant 0 : i32
    %265 = vector.broadcast %c0_i32_100 : i32 to vector<1x256xi32>
    %266 = arith.cmpi sge, %264, %265 : vector<1x256xi32>
    %c-1_i32_101 = arith.constant -1 : i32
    %267 = vector.broadcast %c-1_i32_101 : i32 to vector<1x256xi32>
    %268 = arith.addi %20, %267 : vector<1x256xi32>
    %c16_i32_102 = arith.constant 16 : i32
    %269 = vector.broadcast %c16_i32_102 : i32 to vector<1x256xi32>
    %270 = arith.cmpi slt, %268, %269 : vector<1x256xi32>
    %271 = arith.andi %266, %270 : vector<1x256xi1>
    %cst_103 = arith.constant 0.000000e+00 : bf16
    %272 = vector.broadcast %cst_103 : bf16 to vector<16x256xbf16>
    %273 = vector.shape_cast %271 : vector<1x256xi1> to vector<1x256xi1>
    %274 = vector.broadcast %273 : vector<1x256xi1> to vector<16x256xi1>
    %275 = arith.select %274, %262, %272 : vector<16x256xi1>, vector<16x256xbf16>
    %c0_104 = arith.constant 0 : index
    %c144 = arith.constant 144 : index
    %276 = vector.load %arg11[%c0_104, %c144] : memref<16x512xbf16, #tpu.memory_space<vmem>>, vector<16x256xbf16>
    %c0_i32_105 = arith.constant 0 : i32
    %277 = vector.broadcast %c0_i32_105 : i32 to vector<1x256xi32>
    %278 = arith.addi %20, %277 : vector<1x256xi32>
    %c0_i32_106 = arith.constant 0 : i32
    %279 = vector.broadcast %c0_i32_106 : i32 to vector<1x256xi32>
    %280 = arith.cmpi sge, %278, %279 : vector<1x256xi32>
    %c0_i32_107 = arith.constant 0 : i32
    %281 = vector.broadcast %c0_i32_107 : i32 to vector<1x256xi32>
    %282 = arith.addi %20, %281 : vector<1x256xi32>
    %c16_i32_108 = arith.constant 16 : i32
    %283 = vector.broadcast %c16_i32_108 : i32 to vector<1x256xi32>
    %284 = arith.cmpi slt, %282, %283 : vector<1x256xi32>
    %285 = arith.andi %280, %284 : vector<1x256xi1>
    %cst_109 = arith.constant 0.000000e+00 : bf16
    %286 = vector.broadcast %cst_109 : bf16 to vector<16x256xbf16>
    %287 = vector.shape_cast %285 : vector<1x256xi1> to vector<1x256xi1>
    %288 = vector.broadcast %287 : vector<1x256xi1> to vector<16x256xi1>
    %289 = arith.select %288, %276, %286 : vector<16x256xi1>, vector<16x256xbf16>
    %c0_110 = arith.constant 0 : index
    %c145 = arith.constant 145 : index
    %290 = vector.load %arg11[%c0_110, %c145] : memref<16x512xbf16, #tpu.memory_space<vmem>>, vector<16x256xbf16>
    %c1_i32_111 = arith.constant 1 : i32
    %291 = vector.broadcast %c1_i32_111 : i32 to vector<1x256xi32>
    %292 = arith.addi %20, %291 : vector<1x256xi32>
    %c0_i32_112 = arith.constant 0 : i32
    %293 = vector.broadcast %c0_i32_112 : i32 to vector<1x256xi32>
    %294 = arith.cmpi sge, %292, %293 : vector<1x256xi32>
    %c1_i32_113 = arith.constant 1 : i32
    %295 = vector.broadcast %c1_i32_113 : i32 to vector<1x256xi32>
    %296 = arith.addi %20, %295 : vector<1x256xi32>
    %c16_i32_114 = arith.constant 16 : i32
    %297 = vector.broadcast %c16_i32_114 : i32 to vector<1x256xi32>
    %298 = arith.cmpi slt, %296, %297 : vector<1x256xi32>
    %299 = arith.andi %294, %298 : vector<1x256xi1>
    %cst_115 = arith.constant 0.000000e+00 : bf16
    %300 = vector.broadcast %cst_115 : bf16 to vector<16x256xbf16>
    %301 = vector.shape_cast %299 : vector<1x256xi1> to vector<1x256xi1>
    %302 = vector.broadcast %301 : vector<1x256xi1> to vector<16x256xi1>
    %303 = arith.select %302, %290, %300 : vector<16x256xi1>, vector<16x256xbf16>
    %304 = tpu.concatenate %191, %205, %219, %233, %247, %261, %275, %289, %303 in 0 : vector<16x256xbf16>, vector<16x256xbf16>, vector<16x256xbf16>, vector<16x256xbf16>, vector<16x256xbf16>, vector<16x256xbf16>, vector<16x256xbf16>, vector<16x256xbf16>, vector<16x256xbf16> -> vector<144x256xbf16>
    %cst_116 = arith.constant dense<0.000000e+00> : vector<16x256xf32>
    %305 = tpu.matmul %173, %304, %cst_116 {dimension_numbers = #tpu.dot_dimension_numbers<[1], [0], [0], [1], [0, 0, 1, 1], [], []>} : vector<16x144xbf16>, vector<144x256xbf16>, vector<16x256xf32> -> vector<16x256xf32>
    %306 = vector.broadcast %175 : vector<16x1xf32> to vector<16x256xf32>
    %307 = arith.addf %305, %306 : vector<16x256xf32>
    %c0_117 = arith.constant 0 : index
    %c0_118 = arith.constant 0 : index
    %c0_119 = arith.constant 0 : index
    %308 = vector.load %arg6[%c0_117, %c0_118, %c0_119] : memref<2x16x1xf32, #tpu.memory_space<vmem>>, vector<1x16x1xf32>
    %309 = vector.shape_cast %308 : vector<1x16x1xf32> to vector<16x1xf32>
    %c0_120 = arith.constant 0 : index
    %c0_121 = arith.constant 0 : index
    %c0_122 = arith.constant 0 : index
    %310 = vector.load %arg7[%c0_120, %c0_121, %c0_122] : memref<2x16x1xf32, #tpu.memory_space<vmem>>, vector<1x16x1xf32>
    %311 = vector.shape_cast %310 : vector<1x16x1xf32> to vector<16x1xf32>
    %312 = vector.extract_strided_slice %307 {offsets = [0, 0], sizes = [8, 256], strides = [1, 1]} : vector<16x256xf32> to vector<8x256xf32>
    %313 = vector.shape_cast %312 : vector<8x256xf32> to vector<1x8x256xf32>
    %cst_123 = arith.constant dense<0.000000e+00> : vector<1xf32>
    %314 = vector.multi_reduction <add>, %313, %cst_123 [1, 2] : vector<1x8x256xf32> to vector<1xf32>
    %315 = vector.shape_cast %314 : vector<1xf32> to vector<1x1x1xf32>
    %316 = vector.extract %315[0, 0, 0] : f32 from vector<1x1x1xf32>
    %317 = vector.broadcast %316 : f32 to vector<1x1xf32>
    %cst_124 = arith.constant 4.8828125E-4 : f32
    %318 = vector.broadcast %cst_124 : f32 to vector<1x1xf32>
    %319 = arith.mulf %317, %318 : vector<1x1xf32>
    %320 = arith.mulf %312, %312 : vector<8x256xf32>
    %321 = vector.shape_cast %320 : vector<8x256xf32> to vector<1x8x256xf32>
    %cst_125 = arith.constant dense<0.000000e+00> : vector<1xf32>
    %322 = vector.multi_reduction <add>, %321, %cst_125 [1, 2] : vector<1x8x256xf32> to vector<1xf32>
    %323 = vector.shape_cast %322 : vector<1xf32> to vector<1x1x1xf32>
    %324 = vector.extract %323[0, 0, 0] : f32 from vector<1x1x1xf32>
    %325 = vector.broadcast %324 : f32 to vector<1x1xf32>
    %cst_126 = arith.constant 4.8828125E-4 : f32
    %326 = vector.broadcast %cst_126 : f32 to vector<1x1xf32>
    %327 = arith.mulf %325, %326 : vector<1x1xf32>
    %328 = arith.mulf %319, %319 : vector<1x1xf32>
    %329 = arith.subf %327, %328 : vector<1x1xf32>
    %cst_127 = arith.constant 9.99999974E-6 : f32
    %330 = vector.broadcast %cst_127 : f32 to vector<1x1xf32>
    %331 = arith.addf %329, %330 : vector<1x1xf32>
    %332 = math.rsqrt %331 : vector<1x1xf32>
    %333 = vector.extract_strided_slice %309 {offsets = [0, 0], sizes = [8, 1], strides = [1, 1]} : vector<16x1xf32> to vector<8x1xf32>
    %334 = vector.broadcast %332 : vector<1x1xf32> to vector<8x1xf32>
    %335 = arith.mulf %334, %333 : vector<8x1xf32>
    %336 = vector.extract_strided_slice %311 {offsets = [0, 0], sizes = [8, 1], strides = [1, 1]} : vector<16x1xf32> to vector<8x1xf32>
    %337 = vector.broadcast %319 : vector<1x1xf32> to vector<8x1xf32>
    %338 = arith.mulf %337, %335 : vector<8x1xf32>
    %339 = arith.subf %336, %338 : vector<8x1xf32>
    %340 = vector.broadcast %335 : vector<8x1xf32> to vector<8x256xf32>
    %341 = arith.mulf %312, %340 : vector<8x256xf32>
    %342 = vector.broadcast %339 : vector<8x1xf32> to vector<8x256xf32>
    %343 = arith.addf %341, %342 : vector<8x256xf32>
    %cst_128 = arith.constant 5.000000e-01 : f32
    %344 = vector.broadcast %cst_128 : f32 to vector<8x256xf32>
    %345 = arith.mulf %344, %343 : vector<8x256xf32>
    %cst_129 = arith.constant 0.707106769 : f32
    %346 = vector.broadcast %cst_129 : f32 to vector<8x256xf32>
    %347 = arith.mulf %343, %346 : vector<8x256xf32>
    %348 = math.absf %347 : vector<8x256xf32>
    %cst_130 = arith.constant 0.327591091 : f32
    %349 = vector.broadcast %cst_130 : f32 to vector<8x256xf32>
    %350 = arith.mulf %349, %348 : vector<8x256xf32>
    %cst_131 = arith.constant 1.000000e+00 : f32
    %351 = vector.broadcast %cst_131 : f32 to vector<8x256xf32>
    %352 = arith.addf %351, %350 : vector<8x256xf32>
    %cst_132 = arith.constant 1.000000e+00 : f32
    %353 = vector.broadcast %cst_132 : f32 to vector<8x256xf32>
    %354 = arith.divf %353, %352 : vector<8x256xf32>
    %cst_133 = arith.constant 1.06140542 : f32
    %355 = vector.broadcast %cst_133 : f32 to vector<8x256xf32>
    %356 = arith.mulf %355, %354 : vector<8x256xf32>
    %cst_134 = arith.constant -1.45315206 : f32
    %357 = vector.broadcast %cst_134 : f32 to vector<8x256xf32>
    %358 = arith.addf %356, %357 : vector<8x256xf32>
    %359 = arith.mulf %358, %354 : vector<8x256xf32>
    %cst_135 = arith.constant 1.42141378 : f32
    %360 = vector.broadcast %cst_135 : f32 to vector<8x256xf32>
    %361 = arith.addf %359, %360 : vector<8x256xf32>
    %362 = arith.mulf %361, %354 : vector<8x256xf32>
    %cst_136 = arith.constant -0.284496725 : f32
    %363 = vector.broadcast %cst_136 : f32 to vector<8x256xf32>
    %364 = arith.addf %362, %363 : vector<8x256xf32>
    %365 = arith.mulf %364, %354 : vector<8x256xf32>
    %cst_137 = arith.constant 0.254829586 : f32
    %366 = vector.broadcast %cst_137 : f32 to vector<8x256xf32>
    %367 = arith.addf %365, %366 : vector<8x256xf32>
    %368 = arith.mulf %367, %354 : vector<8x256xf32>
    %cst_138 = arith.constant 0.000000e+00 : f32
    %369 = vector.broadcast %cst_138 : f32 to vector<8x256xf32>
    %370 = arith.subf %369, %348 : vector<8x256xf32>
    %371 = arith.mulf %370, %348 : vector<8x256xf32>
    %372 = math.exp %371 : vector<8x256xf32>
    %373 = arith.mulf %368, %372 : vector<8x256xf32>
    %cst_139 = arith.constant 1.000000e+00 : f32
    %374 = vector.broadcast %cst_139 : f32 to vector<8x256xf32>
    %375 = arith.subf %374, %373 : vector<8x256xf32>
    %cst_140 = arith.constant 0.000000e+00 : f32
    %376 = vector.broadcast %cst_140 : f32 to vector<8x256xf32>
    %377 = arith.cmpf oge, %347, %376 : vector<8x256xf32>
    %cst_141 = arith.constant 0.000000e+00 : f32
    %378 = vector.broadcast %cst_141 : f32 to vector<8x256xf32>
    %379 = arith.subf %378, %375 : vector<8x256xf32>
    %380 = arith.select %377, %375, %379 : vector<8x256xi1>, vector<8x256xf32>
    %cst_142 = arith.constant 1.000000e+00 : f32
    %381 = vector.broadcast %cst_142 : f32 to vector<8x256xf32>
    %382 = arith.addf %381, %380 : vector<8x256xf32>
    %383 = arith.mulf %345, %382 : vector<8x256xf32>
    %384 = vector.extract_strided_slice %307 {offsets = [8, 0], sizes = [8, 256], strides = [1, 1]} : vector<16x256xf32> to vector<8x256xf32>
    %385 = vector.shape_cast %384 : vector<8x256xf32> to vector<1x8x256xf32>
    %cst_143 = arith.constant dense<0.000000e+00> : vector<1xf32>
    %386 = vector.multi_reduction <add>, %385, %cst_143 [1, 2] : vector<1x8x256xf32> to vector<1xf32>
    %387 = vector.shape_cast %386 : vector<1xf32> to vector<1x1x1xf32>
    %388 = vector.extract %387[0, 0, 0] : f32 from vector<1x1x1xf32>
    %389 = vector.broadcast %388 : f32 to vector<1x1xf32>
    %cst_144 = arith.constant 4.8828125E-4 : f32
    %390 = vector.broadcast %cst_144 : f32 to vector<1x1xf32>
    %391 = arith.mulf %389, %390 : vector<1x1xf32>
    %392 = arith.mulf %384, %384 : vector<8x256xf32>
    %393 = vector.shape_cast %392 : vector<8x256xf32> to vector<1x8x256xf32>
    %cst_145 = arith.constant dense<0.000000e+00> : vector<1xf32>
    %394 = vector.multi_reduction <add>, %393, %cst_145 [1, 2] : vector<1x8x256xf32> to vector<1xf32>
    %395 = vector.shape_cast %394 : vector<1xf32> to vector<1x1x1xf32>
    %396 = vector.extract %395[0, 0, 0] : f32 from vector<1x1x1xf32>
    %397 = vector.broadcast %396 : f32 to vector<1x1xf32>
    %cst_146 = arith.constant 4.8828125E-4 : f32
    %398 = vector.broadcast %cst_146 : f32 to vector<1x1xf32>
    %399 = arith.mulf %397, %398 : vector<1x1xf32>
    %400 = arith.mulf %391, %391 : vector<1x1xf32>
    %401 = arith.subf %399, %400 : vector<1x1xf32>
    %cst_147 = arith.constant 9.99999974E-6 : f32
    %402 = vector.broadcast %cst_147 : f32 to vector<1x1xf32>
    %403 = arith.addf %401, %402 : vector<1x1xf32>
    %404 = math.rsqrt %403 : vector<1x1xf32>
    %405 = vector.extract_strided_slice %309 {offsets = [8, 0], sizes = [8, 1], strides = [1, 1]} : vector<16x1xf32> to vector<8x1xf32>
    %406 = vector.broadcast %404 : vector<1x1xf32> to vector<8x1xf32>
    %407 = arith.mulf %406, %405 : vector<8x1xf32>
    %408 = vector.extract_strided_slice %311 {offsets = [8, 0], sizes = [8, 1], strides = [1, 1]} : vector<16x1xf32> to vector<8x1xf32>
    %409 = vector.broadcast %391 : vector<1x1xf32> to vector<8x1xf32>
    %410 = arith.mulf %409, %407 : vector<8x1xf32>
    %411 = arith.subf %408, %410 : vector<8x1xf32>
    %412 = vector.broadcast %407 : vector<8x1xf32> to vector<8x256xf32>
    %413 = arith.mulf %384, %412 : vector<8x256xf32>
    %414 = vector.broadcast %411 : vector<8x1xf32> to vector<8x256xf32>
    %415 = arith.addf %413, %414 : vector<8x256xf32>
    %cst_148 = arith.constant 5.000000e-01 : f32
    %416 = vector.broadcast %cst_148 : f32 to vector<8x256xf32>
    %417 = arith.mulf %416, %415 : vector<8x256xf32>
    %cst_149 = arith.constant 0.707106769 : f32
    %418 = vector.broadcast %cst_149 : f32 to vector<8x256xf32>
    %419 = arith.mulf %415, %418 : vector<8x256xf32>
    %420 = math.absf %419 : vector<8x256xf32>
    %cst_150 = arith.constant 0.327591091 : f32
    %421 = vector.broadcast %cst_150 : f32 to vector<8x256xf32>
    %422 = arith.mulf %421, %420 : vector<8x256xf32>
    %cst_151 = arith.constant 1.000000e+00 : f32
    %423 = vector.broadcast %cst_151 : f32 to vector<8x256xf32>
    %424 = arith.addf %423, %422 : vector<8x256xf32>
    %cst_152 = arith.constant 1.000000e+00 : f32
    %425 = vector.broadcast %cst_152 : f32 to vector<8x256xf32>
    %426 = arith.divf %425, %424 : vector<8x256xf32>
    %cst_153 = arith.constant 1.06140542 : f32
    %427 = vector.broadcast %cst_153 : f32 to vector<8x256xf32>
    %428 = arith.mulf %427, %426 : vector<8x256xf32>
    %cst_154 = arith.constant -1.45315206 : f32
    %429 = vector.broadcast %cst_154 : f32 to vector<8x256xf32>
    %430 = arith.addf %428, %429 : vector<8x256xf32>
    %431 = arith.mulf %430, %426 : vector<8x256xf32>
    %cst_155 = arith.constant 1.42141378 : f32
    %432 = vector.broadcast %cst_155 : f32 to vector<8x256xf32>
    %433 = arith.addf %431, %432 : vector<8x256xf32>
    %434 = arith.mulf %433, %426 : vector<8x256xf32>
    %cst_156 = arith.constant -0.284496725 : f32
    %435 = vector.broadcast %cst_156 : f32 to vector<8x256xf32>
    %436 = arith.addf %434, %435 : vector<8x256xf32>
    %437 = arith.mulf %436, %426 : vector<8x256xf32>
    %cst_157 = arith.constant 0.254829586 : f32
    %438 = vector.broadcast %cst_157 : f32 to vector<8x256xf32>
    %439 = arith.addf %437, %438 : vector<8x256xf32>
    %440 = arith.mulf %439, %426 : vector<8x256xf32>
    %cst_158 = arith.constant 0.000000e+00 : f32
    %441 = vector.broadcast %cst_158 : f32 to vector<8x256xf32>
    %442 = arith.subf %441, %420 : vector<8x256xf32>
    %443 = arith.mulf %442, %420 : vector<8x256xf32>
    %444 = math.exp %443 : vector<8x256xf32>
    %445 = arith.mulf %440, %444 : vector<8x256xf32>
    %cst_159 = arith.constant 1.000000e+00 : f32
    %446 = vector.broadcast %cst_159 : f32 to vector<8x256xf32>
    %447 = arith.subf %446, %445 : vector<8x256xf32>
    %cst_160 = arith.constant 0.000000e+00 : f32
    %448 = vector.broadcast %cst_160 : f32 to vector<8x256xf32>
    %449 = arith.cmpf oge, %419, %448 : vector<8x256xf32>
    %cst_161 = arith.constant 0.000000e+00 : f32
    %450 = vector.broadcast %cst_161 : f32 to vector<8x256xf32>
    %451 = arith.subf %450, %447 : vector<8x256xf32>
    %452 = arith.select %449, %447, %451 : vector<8x256xi1>, vector<8x256xf32>
    %cst_162 = arith.constant 1.000000e+00 : f32
    %453 = vector.broadcast %cst_162 : f32 to vector<8x256xf32>
    %454 = arith.addf %453, %452 : vector<8x256xf32>
    %455 = arith.mulf %417, %454 : vector<8x256xf32>
    %456 = tpu.concatenate %383, %455 in 0 : vector<8x256xf32>, vector<8x256xf32> -> vector<16x256xf32>
    %c0_163 = arith.constant 0 : index
    %c0_164 = arith.constant 0 : index
    %c0_165 = arith.constant 0 : index
    %457 = vector.load %arg8[%c0_163, %c0_164, %c0_165] : memref<2x16x144xbf16, #tpu.memory_space<vmem>>, vector<1x16x144xbf16>
    %458 = vector.shape_cast %457 : vector<1x16x144xbf16> to vector<16x144xbf16>
    %c0_166 = arith.constant 0 : index
    %c0_167 = arith.constant 0 : index
    %c0_168 = arith.constant 0 : index
    %459 = vector.load %arg9[%c0_166, %c0_167, %c0_168] : memref<2x16x1xf32, #tpu.memory_space<vmem>>, vector<1x16x1xf32>
    %460 = vector.shape_cast %459 : vector<1x16x1xf32> to vector<16x1xf32>
    %461 = arith.truncf %456 : vector<16x256xf32> to vector<16x256xbf16>
    %c0_169 = arith.constant 0 : index
    %c128_170 = arith.constant 128 : index
    %462 = vector.load %arg11[%c0_169, %c128_170] : memref<16x512xbf16, #tpu.memory_space<vmem>>, vector<16x256xbf16>
    tpu.vector_store %arg11[%c0_169, %c128_170], %461 {strides = array<i32>} : memref<16x512xbf16, #tpu.memory_space<vmem>>, vector<16x256xbf16>,
    %c0_171 = arith.constant 0 : index
    %c111_172 = arith.constant 111 : index
    %463 = vector.load %arg11[%c0_171, %c111_172] : memref<16x512xbf16, #tpu.memory_space<vmem>>, vector<16x256xbf16>
    %c-1_i32_173 = arith.constant -1 : i32
    %464 = vector.broadcast %c-1_i32_173 : i32 to vector<1x256xi32>
    %465 = arith.addi %20, %464 : vector<1x256xi32>
    %c0_i32_174 = arith.constant 0 : i32
    %466 = vector.broadcast %c0_i32_174 : i32 to vector<1x256xi32>
    %467 = arith.cmpi sge, %465, %466 : vector<1x256xi32>
    %c-1_i32_175 = arith.constant -1 : i32
    %468 = vector.broadcast %c-1_i32_175 : i32 to vector<1x256xi32>
    %469 = arith.addi %20, %468 : vector<1x256xi32>
    %c16_i32_176 = arith.constant 16 : i32
    %470 = vector.broadcast %c16_i32_176 : i32 to vector<1x256xi32>
    %471 = arith.cmpi slt, %469, %470 : vector<1x256xi32>
    %472 = arith.andi %467, %471 : vector<1x256xi1>
    %cst_177 = arith.constant 0.000000e+00 : bf16
    %473 = vector.broadcast %cst_177 : bf16 to vector<16x256xbf16>
    %474 = vector.shape_cast %472 : vector<1x256xi1> to vector<1x256xi1>
    %475 = vector.broadcast %474 : vector<1x256xi1> to vector<16x256xi1>
    %476 = arith.select %475, %463, %473 : vector<16x256xi1>, vector<16x256xbf16>
    %c0_178 = arith.constant 0 : index
    %c112_179 = arith.constant 112 : index
    %477 = vector.load %arg11[%c0_178, %c112_179] : memref<16x512xbf16, #tpu.memory_space<vmem>>, vector<16x256xbf16>
    %c0_i32_180 = arith.constant 0 : i32
    %478 = vector.broadcast %c0_i32_180 : i32 to vector<1x256xi32>
    %479 = arith.addi %20, %478 : vector<1x256xi32>
    %c0_i32_181 = arith.constant 0 : i32
    %480 = vector.broadcast %c0_i32_181 : i32 to vector<1x256xi32>
    %481 = arith.cmpi sge, %479, %480 : vector<1x256xi32>
    %c0_i32_182 = arith.constant 0 : i32
    %482 = vector.broadcast %c0_i32_182 : i32 to vector<1x256xi32>
    %483 = arith.addi %20, %482 : vector<1x256xi32>
    %c16_i32_183 = arith.constant 16 : i32
    %484 = vector.broadcast %c16_i32_183 : i32 to vector<1x256xi32>
    %485 = arith.cmpi slt, %483, %484 : vector<1x256xi32>
    %486 = arith.andi %481, %485 : vector<1x256xi1>
    %cst_184 = arith.constant 0.000000e+00 : bf16
    %487 = vector.broadcast %cst_184 : bf16 to vector<16x256xbf16>
    %488 = vector.shape_cast %486 : vector<1x256xi1> to vector<1x256xi1>
    %489 = vector.broadcast %488 : vector<1x256xi1> to vector<16x256xi1>
    %490 = arith.select %489, %477, %487 : vector<16x256xi1>, vector<16x256xbf16>
    %c0_185 = arith.constant 0 : index
    %c113_186 = arith.constant 113 : index
    %491 = vector.load %arg11[%c0_185, %c113_186] : memref<16x512xbf16, #tpu.memory_space<vmem>>, vector<16x256xbf16>
    %c1_i32_187 = arith.constant 1 : i32
    %492 = vector.broadcast %c1_i32_187 : i32 to vector<1x256xi32>
    %493 = arith.addi %20, %492 : vector<1x256xi32>
    %c0_i32_188 = arith.constant 0 : i32
    %494 = vector.broadcast %c0_i32_188 : i32 to vector<1x256xi32>
    %495 = arith.cmpi sge, %493, %494 : vector<1x256xi32>
    %c1_i32_189 = arith.constant 1 : i32
    %496 = vector.broadcast %c1_i32_189 : i32 to vector<1x256xi32>
    %497 = arith.addi %20, %496 : vector<1x256xi32>
    %c16_i32_190 = arith.constant 16 : i32
    %498 = vector.broadcast %c16_i32_190 : i32 to vector<1x256xi32>
    %499 = arith.cmpi slt, %497, %498 : vector<1x256xi32>
    %500 = arith.andi %495, %499 : vector<1x256xi1>
    %cst_191 = arith.constant 0.000000e+00 : bf16
    %501 = vector.broadcast %cst_191 : bf16 to vector<16x256xbf16>
    %502 = vector.shape_cast %500 : vector<1x256xi1> to vector<1x256xi1>
    %503 = vector.broadcast %502 : vector<1x256xi1> to vector<16x256xi1>
    %504 = arith.select %503, %491, %501 : vector<16x256xi1>, vector<16x256xbf16>
    %c0_192 = arith.constant 0 : index
    %c127_193 = arith.constant 127 : index
    %505 = vector.load %arg11[%c0_192, %c127_193] : memref<16x512xbf16, #tpu.memory_space<vmem>>, vector<16x256xbf16>
    %c-1_i32_194 = arith.constant -1 : i32
    %506 = vector.broadcast %c-1_i32_194 : i32 to vector<1x256xi32>
    %507 = arith.addi %20, %506 : vector<1x256xi32>
    %c0_i32_195 = arith.constant 0 : i32
    %508 = vector.broadcast %c0_i32_195 : i32 to vector<1x256xi32>
    %509 = arith.cmpi sge, %507, %508 : vector<1x256xi32>
    %c-1_i32_196 = arith.constant -1 : i32
    %510 = vector.broadcast %c-1_i32_196 : i32 to vector<1x256xi32>
    %511 = arith.addi %20, %510 : vector<1x256xi32>
    %c16_i32_197 = arith.constant 16 : i32
    %512 = vector.broadcast %c16_i32_197 : i32 to vector<1x256xi32>
    %513 = arith.cmpi slt, %511, %512 : vector<1x256xi32>
    %514 = arith.andi %509, %513 : vector<1x256xi1>
    %cst_198 = arith.constant 0.000000e+00 : bf16
    %515 = vector.broadcast %cst_198 : bf16 to vector<16x256xbf16>
    %516 = vector.shape_cast %514 : vector<1x256xi1> to vector<1x256xi1>
    %517 = vector.broadcast %516 : vector<1x256xi1> to vector<16x256xi1>
    %518 = arith.select %517, %505, %515 : vector<16x256xi1>, vector<16x256xbf16>
    %c0_199 = arith.constant 0 : index
    %c128_200 = arith.constant 128 : index
    %519 = vector.load %arg11[%c0_199, %c128_200] : memref<16x512xbf16, #tpu.memory_space<vmem>>, vector<16x256xbf16>
    %c0_i32_201 = arith.constant 0 : i32
    %520 = vector.broadcast %c0_i32_201 : i32 to vector<1x256xi32>
    %521 = arith.addi %20, %520 : vector<1x256xi32>
    %c0_i32_202 = arith.constant 0 : i32
    %522 = vector.broadcast %c0_i32_202 : i32 to vector<1x256xi32>
    %523 = arith.cmpi sge, %521, %522 : vector<1x256xi32>
    %c0_i32_203 = arith.constant 0 : i32
    %524 = vector.broadcast %c0_i32_203 : i32 to vector<1x256xi32>
    %525 = arith.addi %20, %524 : vector<1x256xi32>
    %c16_i32_204 = arith.constant 16 : i32
    %526 = vector.broadcast %c16_i32_204 : i32 to vector<1x256xi32>
    %527 = arith.cmpi slt, %525, %526 : vector<1x256xi32>
    %528 = arith.andi %523, %527 : vector<1x256xi1>
    %cst_205 = arith.constant 0.000000e+00 : bf16
    %529 = vector.broadcast %cst_205 : bf16 to vector<16x256xbf16>
    %530 = vector.shape_cast %528 : vector<1x256xi1> to vector<1x256xi1>
    %531 = vector.broadcast %530 : vector<1x256xi1> to vector<16x256xi1>
    %532 = arith.select %531, %519, %529 : vector<16x256xi1>, vector<16x256xbf16>
    %c0_206 = arith.constant 0 : index
    %c129_207 = arith.constant 129 : index
    %533 = vector.load %arg11[%c0_206, %c129_207] : memref<16x512xbf16, #tpu.memory_space<vmem>>, vector<16x256xbf16>
    %c1_i32_208 = arith.constant 1 : i32
    %534 = vector.broadcast %c1_i32_208 : i32 to vector<1x256xi32>
    %535 = arith.addi %20, %534 : vector<1x256xi32>
    %c0_i32_209 = arith.constant 0 : i32
    %536 = vector.broadcast %c0_i32_209 : i32 to vector<1x256xi32>
    %537 = arith.cmpi sge, %535, %536 : vector<1x256xi32>
    %c1_i32_210 = arith.constant 1 : i32
    %538 = vector.broadcast %c1_i32_210 : i32 to vector<1x256xi32>
    %539 = arith.addi %20, %538 : vector<1x256xi32>
    %c16_i32_211 = arith.constant 16 : i32
    %540 = vector.broadcast %c16_i32_211 : i32 to vector<1x256xi32>
    %541 = arith.cmpi slt, %539, %540 : vector<1x256xi32>
    %542 = arith.andi %537, %541 : vector<1x256xi1>
    %cst_212 = arith.constant 0.000000e+00 : bf16
    %543 = vector.broadcast %cst_212 : bf16 to vector<16x256xbf16>
    %544 = vector.shape_cast %542 : vector<1x256xi1> to vector<1x256xi1>
    %545 = vector.broadcast %544 : vector<1x256xi1> to vector<16x256xi1>
    %546 = arith.select %545, %533, %543 : vector<16x256xi1>, vector<16x256xbf16>
    %c0_213 = arith.constant 0 : index
    %c143_214 = arith.constant 143 : index
    %547 = vector.load %arg11[%c0_213, %c143_214] : memref<16x512xbf16, #tpu.memory_space<vmem>>, vector<16x256xbf16>
    %c-1_i32_215 = arith.constant -1 : i32
    %548 = vector.broadcast %c-1_i32_215 : i32 to vector<1x256xi32>
    %549 = arith.addi %20, %548 : vector<1x256xi32>
    %c0_i32_216 = arith.constant 0 : i32
    %550 = vector.broadcast %c0_i32_216 : i32 to vector<1x256xi32>
    %551 = arith.cmpi sge, %549, %550 : vector<1x256xi32>
    %c-1_i32_217 = arith.constant -1 : i32
    %552 = vector.broadcast %c-1_i32_217 : i32 to vector<1x256xi32>
    %553 = arith.addi %20, %552 : vector<1x256xi32>
    %c16_i32_218 = arith.constant 16 : i32
    %554 = vector.broadcast %c16_i32_218 : i32 to vector<1x256xi32>
    %555 = arith.cmpi slt, %553, %554 : vector<1x256xi32>
    %556 = arith.andi %551, %555 : vector<1x256xi1>
    %cst_219 = arith.constant 0.000000e+00 : bf16
    %557 = vector.broadcast %cst_219 : bf16 to vector<16x256xbf16>
    %558 = vector.shape_cast %556 : vector<1x256xi1> to vector<1x256xi1>
    %559 = vector.broadcast %558 : vector<1x256xi1> to vector<16x256xi1>
    %560 = arith.select %559, %547, %557 : vector<16x256xi1>, vector<16x256xbf16>
    %c0_220 = arith.constant 0 : index
    %c144_221 = arith.constant 144 : index
    %561 = vector.load %arg11[%c0_220, %c144_221] : memref<16x512xbf16, #tpu.memory_space<vmem>>, vector<16x256xbf16>
    %c0_i32_222 = arith.constant 0 : i32
    %562 = vector.broadcast %c0_i32_222 : i32 to vector<1x256xi32>
    %563 = arith.addi %20, %562 : vector<1x256xi32>
    %c0_i32_223 = arith.constant 0 : i32
    %564 = vector.broadcast %c0_i32_223 : i32 to vector<1x256xi32>
    %565 = arith.cmpi sge, %563, %564 : vector<1x256xi32>
    %c0_i32_224 = arith.constant 0 : i32
    %566 = vector.broadcast %c0_i32_224 : i32 to vector<1x256xi32>
    %567 = arith.addi %20, %566 : vector<1x256xi32>
    %c16_i32_225 = arith.constant 16 : i32
    %568 = vector.broadcast %c16_i32_225 : i32 to vector<1x256xi32>
    %569 = arith.cmpi slt, %567, %568 : vector<1x256xi32>
    %570 = arith.andi %565, %569 : vector<1x256xi1>
    %cst_226 = arith.constant 0.000000e+00 : bf16
    %571 = vector.broadcast %cst_226 : bf16 to vector<16x256xbf16>
    %572 = vector.shape_cast %570 : vector<1x256xi1> to vector<1x256xi1>
    %573 = vector.broadcast %572 : vector<1x256xi1> to vector<16x256xi1>
    %574 = arith.select %573, %561, %571 : vector<16x256xi1>, vector<16x256xbf16>
    %c0_227 = arith.constant 0 : index
    %c145_228 = arith.constant 145 : index
    %575 = vector.load %arg11[%c0_227, %c145_228] : memref<16x512xbf16, #tpu.memory_space<vmem>>, vector<16x256xbf16>
    %c1_i32_229 = arith.constant 1 : i32
    %576 = vector.broadcast %c1_i32_229 : i32 to vector<1x256xi32>
    %577 = arith.addi %20, %576 : vector<1x256xi32>
    %c0_i32_230 = arith.constant 0 : i32
    %578 = vector.broadcast %c0_i32_230 : i32 to vector<1x256xi32>
    %579 = arith.cmpi sge, %577, %578 : vector<1x256xi32>
    %c1_i32_231 = arith.constant 1 : i32
    %580 = vector.broadcast %c1_i32_231 : i32 to vector<1x256xi32>
    %581 = arith.addi %20, %580 : vector<1x256xi32>
    %c16_i32_232 = arith.constant 16 : i32
    %582 = vector.broadcast %c16_i32_232 : i32 to vector<1x256xi32>
    %583 = arith.cmpi slt, %581, %582 : vector<1x256xi32>
    %584 = arith.andi %579, %583 : vector<1x256xi1>
    %cst_233 = arith.constant 0.000000e+00 : bf16
    %585 = vector.broadcast %cst_233 : bf16 to vector<16x256xbf16>
    %586 = vector.shape_cast %584 : vector<1x256xi1> to vector<1x256xi1>
    %587 = vector.broadcast %586 : vector<1x256xi1> to vector<16x256xi1>
    %588 = arith.select %587, %575, %585 : vector<16x256xi1>, vector<16x256xbf16>
    %589 = tpu.concatenate %476, %490, %504, %518, %532, %546, %560, %574, %588 in 0 : vector<16x256xbf16>, vector<16x256xbf16>, vector<16x256xbf16>, vector<16x256xbf16>, vector<16x256xbf16>, vector<16x256xbf16>, vector<16x256xbf16>, vector<16x256xbf16>, vector<16x256xbf16> -> vector<144x256xbf16>
    %cst_234 = arith.constant dense<0.000000e+00> : vector<16x256xf32>
    %590 = tpu.matmul %458, %589, %cst_234 {dimension_numbers = #tpu.dot_dimension_numbers<[1], [0], [0], [1], [0, 0, 1, 1], [], []>} : vector<16x144xbf16>, vector<144x256xbf16>, vector<16x256xf32> -> vector<16x256xf32>
    %591 = vector.broadcast %460 : vector<16x1xf32> to vector<16x256xf32>
    %592 = arith.addf %590, %591 : vector<16x256xf32>
    %593 = arith.addf %22, %592 : vector<16x256xf32>
    %c1 = arith.constant 1 : index
    %c0_235 = arith.constant 0 : index
    %c0_236 = arith.constant 0 : index
    %594 = vector.load %arg2[%c1, %c0_235, %c0_236] : memref<2x16x1xf32, #tpu.memory_space<vmem>>, vector<1x16x1xf32>
    %595 = vector.shape_cast %594 : vector<1x16x1xf32> to vector<16x1xf32>
    %c1_237 = arith.constant 1 : index
    %c0_238 = arith.constant 0 : index
    %c0_239 = arith.constant 0 : index
    %596 = vector.load %arg3[%c1_237, %c0_238, %c0_239] : memref<2x16x1xf32, #tpu.memory_space<vmem>>, vector<1x16x1xf32>
    %597 = vector.shape_cast %596 : vector<1x16x1xf32> to vector<16x1xf32>
    %598 = vector.extract_strided_slice %593 {offsets = [0, 0], sizes = [8, 256], strides = [1, 1]} : vector<16x256xf32> to vector<8x256xf32>
    %599 = vector.shape_cast %598 : vector<8x256xf32> to vector<1x8x256xf32>
    %cst_240 = arith.constant dense<0.000000e+00> : vector<1xf32>
    %600 = vector.multi_reduction <add>, %599, %cst_240 [1, 2] : vector<1x8x256xf32> to vector<1xf32>
    %601 = vector.shape_cast %600 : vector<1xf32> to vector<1x1x1xf32>
    %602 = vector.extract %601[0, 0, 0] : f32 from vector<1x1x1xf32>
    %603 = vector.broadcast %602 : f32 to vector<1x1xf32>
    %cst_241 = arith.constant 4.8828125E-4 : f32
    %604 = vector.broadcast %cst_241 : f32 to vector<1x1xf32>
    %605 = arith.mulf %603, %604 : vector<1x1xf32>
    %606 = arith.mulf %598, %598 : vector<8x256xf32>
    %607 = vector.shape_cast %606 : vector<8x256xf32> to vector<1x8x256xf32>
    %cst_242 = arith.constant dense<0.000000e+00> : vector<1xf32>
    %608 = vector.multi_reduction <add>, %607, %cst_242 [1, 2] : vector<1x8x256xf32> to vector<1xf32>
    %609 = vector.shape_cast %608 : vector<1xf32> to vector<1x1x1xf32>
    %610 = vector.extract %609[0, 0, 0] : f32 from vector<1x1x1xf32>
    %611 = vector.broadcast %610 : f32 to vector<1x1xf32>
    %cst_243 = arith.constant 4.8828125E-4 : f32
    %612 = vector.broadcast %cst_243 : f32 to vector<1x1xf32>
    %613 = arith.mulf %611, %612 : vector<1x1xf32>
    %614 = arith.mulf %605, %605 : vector<1x1xf32>
    %615 = arith.subf %613, %614 : vector<1x1xf32>
    %cst_244 = arith.constant 9.99999974E-6 : f32
    %616 = vector.broadcast %cst_244 : f32 to vector<1x1xf32>
    %617 = arith.addf %615, %616 : vector<1x1xf32>
    %618 = math.rsqrt %617 : vector<1x1xf32>
    %619 = vector.extract_strided_slice %595 {offsets = [0, 0], sizes = [8, 1], strides = [1, 1]} : vector<16x1xf32> to vector<8x1xf32>
    %620 = vector.broadcast %618 : vector<1x1xf32> to vector<8x1xf32>
    %621 = arith.mulf %620, %619 : vector<8x1xf32>
    %622 = vector.extract_strided_slice %597 {offsets = [0, 0], sizes = [8, 1], strides = [1, 1]} : vector<16x1xf32> to vector<8x1xf32>
    %623 = vector.broadcast %605 : vector<1x1xf32> to vector<8x1xf32>
    %624 = arith.mulf %623, %621 : vector<8x1xf32>
    %625 = arith.subf %622, %624 : vector<8x1xf32>
    %626 = vector.broadcast %621 : vector<8x1xf32> to vector<8x256xf32>
    %627 = arith.mulf %598, %626 : vector<8x256xf32>
    %628 = vector.broadcast %625 : vector<8x1xf32> to vector<8x256xf32>
    %629 = arith.addf %627, %628 : vector<8x256xf32>
    %cst_245 = arith.constant 5.000000e-01 : f32
    %630 = vector.broadcast %cst_245 : f32 to vector<8x256xf32>
    %631 = arith.mulf %630, %629 : vector<8x256xf32>
    %cst_246 = arith.constant 0.707106769 : f32
    %632 = vector.broadcast %cst_246 : f32 to vector<8x256xf32>
    %633 = arith.mulf %629, %632 : vector<8x256xf32>
    %634 = math.absf %633 : vector<8x256xf32>
    %cst_247 = arith.constant 0.327591091 : f32
    %635 = vector.broadcast %cst_247 : f32 to vector<8x256xf32>
    %636 = arith.mulf %635, %634 : vector<8x256xf32>
    %cst_248 = arith.constant 1.000000e+00 : f32
    %637 = vector.broadcast %cst_248 : f32 to vector<8x256xf32>
    %638 = arith.addf %637, %636 : vector<8x256xf32>
    %cst_249 = arith.constant 1.000000e+00 : f32
    %639 = vector.broadcast %cst_249 : f32 to vector<8x256xf32>
    %640 = arith.divf %639, %638 : vector<8x256xf32>
    %cst_250 = arith.constant 1.06140542 : f32
    %641 = vector.broadcast %cst_250 : f32 to vector<8x256xf32>
    %642 = arith.mulf %641, %640 : vector<8x256xf32>
    %cst_251 = arith.constant -1.45315206 : f32
    %643 = vector.broadcast %cst_251 : f32 to vector<8x256xf32>
    %644 = arith.addf %642, %643 : vector<8x256xf32>
    %645 = arith.mulf %644, %640 : vector<8x256xf32>
    %cst_252 = arith.constant 1.42141378 : f32
    %646 = vector.broadcast %cst_252 : f32 to vector<8x256xf32>
    %647 = arith.addf %645, %646 : vector<8x256xf32>
    %648 = arith.mulf %647, %640 : vector<8x256xf32>
    %cst_253 = arith.constant -0.284496725 : f32
    %649 = vector.broadcast %cst_253 : f32 to vector<8x256xf32>
    %650 = arith.addf %648, %649 : vector<8x256xf32>
    %651 = arith.mulf %650, %640 : vector<8x256xf32>
    %cst_254 = arith.constant 0.254829586 : f32
    %652 = vector.broadcast %cst_254 : f32 to vector<8x256xf32>
    %653 = arith.addf %651, %652 : vector<8x256xf32>
    %654 = arith.mulf %653, %640 : vector<8x256xf32>
    %cst_255 = arith.constant 0.000000e+00 : f32
    %655 = vector.broadcast %cst_255 : f32 to vector<8x256xf32>
    %656 = arith.subf %655, %634 : vector<8x256xf32>
    %657 = arith.mulf %656, %634 : vector<8x256xf32>
    %658 = math.exp %657 : vector<8x256xf32>
    %659 = arith.mulf %654, %658 : vector<8x256xf32>
    %cst_256 = arith.constant 1.000000e+00 : f32
    %660 = vector.broadcast %cst_256 : f32 to vector<8x256xf32>
    %661 = arith.subf %660, %659 : vector<8x256xf32>
    %cst_257 = arith.constant 0.000000e+00 : f32
    %662 = vector.broadcast %cst_257 : f32 to vector<8x256xf32>
    %663 = arith.cmpf oge, %633, %662 : vector<8x256xf32>
    %cst_258 = arith.constant 0.000000e+00 : f32
    %664 = vector.broadcast %cst_258 : f32 to vector<8x256xf32>
    %665 = arith.subf %664, %661 : vector<8x256xf32>
    %666 = arith.select %663, %661, %665 : vector<8x256xi1>, vector<8x256xf32>
    %cst_259 = arith.constant 1.000000e+00 : f32
    %667 = vector.broadcast %cst_259 : f32 to vector<8x256xf32>
    %668 = arith.addf %667, %666 : vector<8x256xf32>
    %669 = arith.mulf %631, %668 : vector<8x256xf32>
    %670 = vector.extract_strided_slice %593 {offsets = [8, 0], sizes = [8, 256], strides = [1, 1]} : vector<16x256xf32> to vector<8x256xf32>
    %671 = vector.shape_cast %670 : vector<8x256xf32> to vector<1x8x256xf32>
    %cst_260 = arith.constant dense<0.000000e+00> : vector<1xf32>
    %672 = vector.multi_reduction <add>, %671, %cst_260 [1, 2] : vector<1x8x256xf32> to vector<1xf32>
    %673 = vector.shape_cast %672 : vector<1xf32> to vector<1x1x1xf32>
    %674 = vector.extract %673[0, 0, 0] : f32 from vector<1x1x1xf32>
    %675 = vector.broadcast %674 : f32 to vector<1x1xf32>
    %cst_261 = arith.constant 4.8828125E-4 : f32
    %676 = vector.broadcast %cst_261 : f32 to vector<1x1xf32>
    %677 = arith.mulf %675, %676 : vector<1x1xf32>
    %678 = arith.mulf %670, %670 : vector<8x256xf32>
    %679 = vector.shape_cast %678 : vector<8x256xf32> to vector<1x8x256xf32>
    %cst_262 = arith.constant dense<0.000000e+00> : vector<1xf32>
    %680 = vector.multi_reduction <add>, %679, %cst_262 [1, 2] : vector<1x8x256xf32> to vector<1xf32>
    %681 = vector.shape_cast %680 : vector<1xf32> to vector<1x1x1xf32>
    %682 = vector.extract %681[0, 0, 0] : f32 from vector<1x1x1xf32>
    %683 = vector.broadcast %682 : f32 to vector<1x1xf32>
    %cst_263 = arith.constant 4.8828125E-4 : f32
    %684 = vector.broadcast %cst_263 : f32 to vector<1x1xf32>
    %685 = arith.mulf %683, %684 : vector<1x1xf32>
    %686 = arith.mulf %677, %677 : vector<1x1xf32>
    %687 = arith.subf %685, %686 : vector<1x1xf32>
    %cst_264 = arith.constant 9.99999974E-6 : f32
    %688 = vector.broadcast %cst_264 : f32 to vector<1x1xf32>
    %689 = arith.addf %687, %688 : vector<1x1xf32>
    %690 = math.rsqrt %689 : vector<1x1xf32>
    %691 = vector.extract_strided_slice %595 {offsets = [8, 0], sizes = [8, 1], strides = [1, 1]} : vector<16x1xf32> to vector<8x1xf32>
    %692 = vector.broadcast %690 : vector<1x1xf32> to vector<8x1xf32>
    %693 = arith.mulf %692, %691 : vector<8x1xf32>
    %694 = vector.extract_strided_slice %597 {offsets = [8, 0], sizes = [8, 1], strides = [1, 1]} : vector<16x1xf32> to vector<8x1xf32>
    %695 = vector.broadcast %677 : vector<1x1xf32> to vector<8x1xf32>
    %696 = arith.mulf %695, %693 : vector<8x1xf32>
    %697 = arith.subf %694, %696 : vector<8x1xf32>
    %698 = vector.broadcast %693 : vector<8x1xf32> to vector<8x256xf32>
    %699 = arith.mulf %670, %698 : vector<8x256xf32>
    %700 = vector.broadcast %697 : vector<8x1xf32> to vector<8x256xf32>
    %701 = arith.addf %699, %700 : vector<8x256xf32>
    %cst_265 = arith.constant 5.000000e-01 : f32
    %702 = vector.broadcast %cst_265 : f32 to vector<8x256xf32>
    %703 = arith.mulf %702, %701 : vector<8x256xf32>
    %cst_266 = arith.constant 0.707106769 : f32
    %704 = vector.broadcast %cst_266 : f32 to vector<8x256xf32>
    %705 = arith.mulf %701, %704 : vector<8x256xf32>
    %706 = math.absf %705 : vector<8x256xf32>
    %cst_267 = arith.constant 0.327591091 : f32
    %707 = vector.broadcast %cst_267 : f32 to vector<8x256xf32>
    %708 = arith.mulf %707, %706 : vector<8x256xf32>
    %cst_268 = arith.constant 1.000000e+00 : f32
    %709 = vector.broadcast %cst_268 : f32 to vector<8x256xf32>
    %710 = arith.addf %709, %708 : vector<8x256xf32>
    %cst_269 = arith.constant 1.000000e+00 : f32
    %711 = vector.broadcast %cst_269 : f32 to vector<8x256xf32>
    %712 = arith.divf %711, %710 : vector<8x256xf32>
    %cst_270 = arith.constant 1.06140542 : f32
    %713 = vector.broadcast %cst_270 : f32 to vector<8x256xf32>
    %714 = arith.mulf %713, %712 : vector<8x256xf32>
    %cst_271 = arith.constant -1.45315206 : f32
    %715 = vector.broadcast %cst_271 : f32 to vector<8x256xf32>
    %716 = arith.addf %714, %715 : vector<8x256xf32>
    %717 = arith.mulf %716, %712 : vector<8x256xf32>
    %cst_272 = arith.constant 1.42141378 : f32
    %718 = vector.broadcast %cst_272 : f32 to vector<8x256xf32>
    %719 = arith.addf %717, %718 : vector<8x256xf32>
    %720 = arith.mulf %719, %712 : vector<8x256xf32>
    %cst_273 = arith.constant -0.284496725 : f32
    %721 = vector.broadcast %cst_273 : f32 to vector<8x256xf32>
    %722 = arith.addf %720, %721 : vector<8x256xf32>
    %723 = arith.mulf %722, %712 : vector<8x256xf32>
    %cst_274 = arith.constant 0.254829586 : f32
    %724 = vector.broadcast %cst_274 : f32 to vector<8x256xf32>
    %725 = arith.addf %723, %724 : vector<8x256xf32>
    %726 = arith.mulf %725, %712 : vector<8x256xf32>
    %cst_275 = arith.constant 0.000000e+00 : f32
    %727 = vector.broadcast %cst_275 : f32 to vector<8x256xf32>
    %728 = arith.subf %727, %706 : vector<8x256xf32>
    %729 = arith.mulf %728, %706 : vector<8x256xf32>
    %730 = math.exp %729 : vector<8x256xf32>
    %731 = arith.mulf %726, %730 : vector<8x256xf32>
    %cst_276 = arith.constant 1.000000e+00 : f32
    %732 = vector.broadcast %cst_276 : f32 to vector<8x256xf32>
    %733 = arith.subf %732, %731 : vector<8x256xf32>
    %cst_277 = arith.constant 0.000000e+00 : f32
    %734 = vector.broadcast %cst_277 : f32 to vector<8x256xf32>
    %735 = arith.cmpf oge, %705, %734 : vector<8x256xf32>
    %cst_278 = arith.constant 0.000000e+00 : f32
    %736 = vector.broadcast %cst_278 : f32 to vector<8x256xf32>
    %737 = arith.subf %736, %733 : vector<8x256xf32>
    %738 = arith.select %735, %733, %737 : vector<8x256xi1>, vector<8x256xf32>
    %cst_279 = arith.constant 1.000000e+00 : f32
    %739 = vector.broadcast %cst_279 : f32 to vector<8x256xf32>
    %740 = arith.addf %739, %738 : vector<8x256xf32>
    %741 = arith.mulf %703, %740 : vector<8x256xf32>
    %742 = tpu.concatenate %669, %741 in 0 : vector<8x256xf32>, vector<8x256xf32> -> vector<16x256xf32>
    %c1_280 = arith.constant 1 : index
    %c0_281 = arith.constant 0 : index
    %c0_282 = arith.constant 0 : index
    %743 = vector.load %arg4[%c1_280, %c0_281, %c0_282] : memref<2x16x144xbf16, #tpu.memory_space<vmem>>, vector<1x16x144xbf16>
    %744 = vector.shape_cast %743 : vector<1x16x144xbf16> to vector<16x144xbf16>
    %c1_283 = arith.constant 1 : index
    %c0_284 = arith.constant 0 : index
    %c0_285 = arith.constant 0 : index
    %745 = vector.load %arg5[%c1_283, %c0_284, %c0_285] : memref<2x16x1xf32, #tpu.memory_space<vmem>>, vector<1x16x1xf32>
    %746 = vector.shape_cast %745 : vector<1x16x1xf32> to vector<16x1xf32>
    %747 = arith.truncf %742 : vector<16x256xf32> to vector<16x256xbf16>
    %c0_286 = arith.constant 0 : index
    %c128_287 = arith.constant 128 : index
    %748 = vector.load %arg11[%c0_286, %c128_287] : memref<16x512xbf16, #tpu.memory_space<vmem>>, vector<16x256xbf16>
    tpu.vector_store %arg11[%c0_286, %c128_287], %747 {strides = array<i32>} : memref<16x512xbf16, #tpu.memory_space<vmem>>, vector<16x256xbf16>,
    %c0_288 = arith.constant 0 : index
    %c94 = arith.constant 94 : index
    %749 = vector.load %arg11[%c0_288, %c94] : memref<16x512xbf16, #tpu.memory_space<vmem>>, vector<16x256xbf16>
    %c-2_i32 = arith.constant -2 : i32
    %750 = vector.broadcast %c-2_i32 : i32 to vector<1x256xi32>
    %751 = arith.addi %20, %750 : vector<1x256xi32>
    %c0_i32_289 = arith.constant 0 : i32
    %752 = vector.broadcast %c0_i32_289 : i32 to vector<1x256xi32>
    %753 = arith.cmpi sge, %751, %752 : vector<1x256xi32>
    %c-2_i32_290 = arith.constant -2 : i32
    %754 = vector.broadcast %c-2_i32_290 : i32 to vector<1x256xi32>
    %755 = arith.addi %20, %754 : vector<1x256xi32>
    %c16_i32_291 = arith.constant 16 : i32
    %756 = vector.broadcast %c16_i32_291 : i32 to vector<1x256xi32>
    %757 = arith.cmpi slt, %755, %756 : vector<1x256xi32>
    %758 = arith.andi %753, %757 : vector<1x256xi1>
    %cst_292 = arith.constant 0.000000e+00 : bf16
    %759 = vector.broadcast %cst_292 : bf16 to vector<16x256xbf16>
    %760 = vector.shape_cast %758 : vector<1x256xi1> to vector<1x256xi1>
    %761 = vector.broadcast %760 : vector<1x256xi1> to vector<16x256xi1>
    %762 = arith.select %761, %749, %759 : vector<16x256xi1>, vector<16x256xbf16>
    %c0_293 = arith.constant 0 : index
    %c96 = arith.constant 96 : index
    %763 = vector.load %arg11[%c0_293, %c96] : memref<16x512xbf16, #tpu.memory_space<vmem>>, vector<16x256xbf16>
    %c0_i32_294 = arith.constant 0 : i32
    %764 = vector.broadcast %c0_i32_294 : i32 to vector<1x256xi32>
    %765 = arith.addi %20, %764 : vector<1x256xi32>
    %c0_i32_295 = arith.constant 0 : i32
    %766 = vector.broadcast %c0_i32_295 : i32 to vector<1x256xi32>
    %767 = arith.cmpi sge, %765, %766 : vector<1x256xi32>
    %c0_i32_296 = arith.constant 0 : i32
    %768 = vector.broadcast %c0_i32_296 : i32 to vector<1x256xi32>
    %769 = arith.addi %20, %768 : vector<1x256xi32>
    %c16_i32_297 = arith.constant 16 : i32
    %770 = vector.broadcast %c16_i32_297 : i32 to vector<1x256xi32>
    %771 = arith.cmpi slt, %769, %770 : vector<1x256xi32>
    %772 = arith.andi %767, %771 : vector<1x256xi1>
    %cst_298 = arith.constant 0.000000e+00 : bf16
    %773 = vector.broadcast %cst_298 : bf16 to vector<16x256xbf16>
    %774 = vector.shape_cast %772 : vector<1x256xi1> to vector<1x256xi1>
    %775 = vector.broadcast %774 : vector<1x256xi1> to vector<16x256xi1>
    %776 = arith.select %775, %763, %773 : vector<16x256xi1>, vector<16x256xbf16>
    %c0_299 = arith.constant 0 : index
    %c98 = arith.constant 98 : index
    %777 = vector.load %arg11[%c0_299, %c98] : memref<16x512xbf16, #tpu.memory_space<vmem>>, vector<16x256xbf16>
    %c2_i32 = arith.constant 2 : i32
    %778 = vector.broadcast %c2_i32 : i32 to vector<1x256xi32>
    %779 = arith.addi %20, %778 : vector<1x256xi32>
    %c0_i32_300 = arith.constant 0 : i32
    %780 = vector.broadcast %c0_i32_300 : i32 to vector<1x256xi32>
    %781 = arith.cmpi sge, %779, %780 : vector<1x256xi32>
    %c2_i32_301 = arith.constant 2 : i32
    %782 = vector.broadcast %c2_i32_301 : i32 to vector<1x256xi32>
    %783 = arith.addi %20, %782 : vector<1x256xi32>
    %c16_i32_302 = arith.constant 16 : i32
    %784 = vector.broadcast %c16_i32_302 : i32 to vector<1x256xi32>
    %785 = arith.cmpi slt, %783, %784 : vector<1x256xi32>
    %786 = arith.andi %781, %785 : vector<1x256xi1>
    %cst_303 = arith.constant 0.000000e+00 : bf16
    %787 = vector.broadcast %cst_303 : bf16 to vector<16x256xbf16>
    %788 = vector.shape_cast %786 : vector<1x256xi1> to vector<1x256xi1>
    %789 = vector.broadcast %788 : vector<1x256xi1> to vector<16x256xi1>
    %790 = arith.select %789, %777, %787 : vector<16x256xi1>, vector<16x256xbf16>
    %c0_304 = arith.constant 0 : index
    %c126 = arith.constant 126 : index
    %791 = vector.load %arg11[%c0_304, %c126] : memref<16x512xbf16, #tpu.memory_space<vmem>>, vector<16x256xbf16>
    %c-2_i32_305 = arith.constant -2 : i32
    %792 = vector.broadcast %c-2_i32_305 : i32 to vector<1x256xi32>
    %793 = arith.addi %20, %792 : vector<1x256xi32>
    %c0_i32_306 = arith.constant 0 : i32
    %794 = vector.broadcast %c0_i32_306 : i32 to vector<1x256xi32>
    %795 = arith.cmpi sge, %793, %794 : vector<1x256xi32>
    %c-2_i32_307 = arith.constant -2 : i32
    %796 = vector.broadcast %c-2_i32_307 : i32 to vector<1x256xi32>
    %797 = arith.addi %20, %796 : vector<1x256xi32>
    %c16_i32_308 = arith.constant 16 : i32
    %798 = vector.broadcast %c16_i32_308 : i32 to vector<1x256xi32>
    %799 = arith.cmpi slt, %797, %798 : vector<1x256xi32>
    %800 = arith.andi %795, %799 : vector<1x256xi1>
    %cst_309 = arith.constant 0.000000e+00 : bf16
    %801 = vector.broadcast %cst_309 : bf16 to vector<16x256xbf16>
    %802 = vector.shape_cast %800 : vector<1x256xi1> to vector<1x256xi1>
    %803 = vector.broadcast %802 : vector<1x256xi1> to vector<16x256xi1>
    %804 = arith.select %803, %791, %801 : vector<16x256xi1>, vector<16x256xbf16>
    %c0_310 = arith.constant 0 : index
    %c128_311 = arith.constant 128 : index
    %805 = vector.load %arg11[%c0_310, %c128_311] : memref<16x512xbf16, #tpu.memory_space<vmem>>, vector<16x256xbf16>
    %c0_i32_312 = arith.constant 0 : i32
    %806 = vector.broadcast %c0_i32_312 : i32 to vector<1x256xi32>
    %807 = arith.addi %20, %806 : vector<1x256xi32>
    %c0_i32_313 = arith.constant 0 : i32
    %808 = vector.broadcast %c0_i32_313 : i32 to vector<1x256xi32>
    %809 = arith.cmpi sge, %807, %808 : vector<1x256xi32>
    %c0_i32_314 = arith.constant 0 : i32
    %810 = vector.broadcast %c0_i32_314 : i32 to vector<1x256xi32>
    %811 = arith.addi %20, %810 : vector<1x256xi32>
    %c16_i32_315 = arith.constant 16 : i32
    %812 = vector.broadcast %c16_i32_315 : i32 to vector<1x256xi32>
    %813 = arith.cmpi slt, %811, %812 : vector<1x256xi32>
    %814 = arith.andi %809, %813 : vector<1x256xi1>
    %cst_316 = arith.constant 0.000000e+00 : bf16
    %815 = vector.broadcast %cst_316 : bf16 to vector<16x256xbf16>
    %816 = vector.shape_cast %814 : vector<1x256xi1> to vector<1x256xi1>
    %817 = vector.broadcast %816 : vector<1x256xi1> to vector<16x256xi1>
    %818 = arith.select %817, %805, %815 : vector<16x256xi1>, vector<16x256xbf16>
    %c0_317 = arith.constant 0 : index
    %c130 = arith.constant 130 : index
    %819 = vector.load %arg11[%c0_317, %c130] : memref<16x512xbf16, #tpu.memory_space<vmem>>, vector<16x256xbf16>
    %c2_i32_318 = arith.constant 2 : i32
    %820 = vector.broadcast %c2_i32_318 : i32 to vector<1x256xi32>
    %821 = arith.addi %20, %820 : vector<1x256xi32>
    %c0_i32_319 = arith.constant 0 : i32
    %822 = vector.broadcast %c0_i32_319 : i32 to vector<1x256xi32>
    %823 = arith.cmpi sge, %821, %822 : vector<1x256xi32>
    %c2_i32_320 = arith.constant 2 : i32
    %824 = vector.broadcast %c2_i32_320 : i32 to vector<1x256xi32>
    %825 = arith.addi %20, %824 : vector<1x256xi32>
    %c16_i32_321 = arith.constant 16 : i32
    %826 = vector.broadcast %c16_i32_321 : i32 to vector<1x256xi32>
    %827 = arith.cmpi slt, %825, %826 : vector<1x256xi32>
    %828 = arith.andi %823, %827 : vector<1x256xi1>
    %cst_322 = arith.constant 0.000000e+00 : bf16
    %829 = vector.broadcast %cst_322 : bf16 to vector<16x256xbf16>
    %830 = vector.shape_cast %828 : vector<1x256xi1> to vector<1x256xi1>
    %831 = vector.broadcast %830 : vector<1x256xi1> to vector<16x256xi1>
    %832 = arith.select %831, %819, %829 : vector<16x256xi1>, vector<16x256xbf16>
    %c0_323 = arith.constant 0 : index
    %c158 = arith.constant 158 : index
    %833 = vector.load %arg11[%c0_323, %c158] : memref<16x512xbf16, #tpu.memory_space<vmem>>, vector<16x256xbf16>
    %c-2_i32_324 = arith.constant -2 : i32
    %834 = vector.broadcast %c-2_i32_324 : i32 to vector<1x256xi32>
    %835 = arith.addi %20, %834 : vector<1x256xi32>
    %c0_i32_325 = arith.constant 0 : i32
    %836 = vector.broadcast %c0_i32_325 : i32 to vector<1x256xi32>
    %837 = arith.cmpi sge, %835, %836 : vector<1x256xi32>
    %c-2_i32_326 = arith.constant -2 : i32
    %838 = vector.broadcast %c-2_i32_326 : i32 to vector<1x256xi32>
    %839 = arith.addi %20, %838 : vector<1x256xi32>
    %c16_i32_327 = arith.constant 16 : i32
    %840 = vector.broadcast %c16_i32_327 : i32 to vector<1x256xi32>
    %841 = arith.cmpi slt, %839, %840 : vector<1x256xi32>
    %842 = arith.andi %837, %841 : vector<1x256xi1>
    %cst_328 = arith.constant 0.000000e+00 : bf16
    %843 = vector.broadcast %cst_328 : bf16 to vector<16x256xbf16>
    %844 = vector.shape_cast %842 : vector<1x256xi1> to vector<1x256xi1>
    %845 = vector.broadcast %844 : vector<1x256xi1> to vector<16x256xi1>
    %846 = arith.select %845, %833, %843 : vector<16x256xi1>, vector<16x256xbf16>
    %c0_329 = arith.constant 0 : index
    %c160 = arith.constant 160 : index
    %847 = vector.load %arg11[%c0_329, %c160] : memref<16x512xbf16, #tpu.memory_space<vmem>>, vector<16x256xbf16>
    %c0_i32_330 = arith.constant 0 : i32
    %848 = vector.broadcast %c0_i32_330 : i32 to vector<1x256xi32>
    %849 = arith.addi %20, %848 : vector<1x256xi32>
    %c0_i32_331 = arith.constant 0 : i32
    %850 = vector.broadcast %c0_i32_331 : i32 to vector<1x256xi32>
    %851 = arith.cmpi sge, %849, %850 : vector<1x256xi32>
    %c0_i32_332 = arith.constant 0 : i32
    %852 = vector.broadcast %c0_i32_332 : i32 to vector<1x256xi32>
    %853 = arith.addi %20, %852 : vector<1x256xi32>
    %c16_i32_333 = arith.constant 16 : i32
    %854 = vector.broadcast %c16_i32_333 : i32 to vector<1x256xi32>
    %855 = arith.cmpi slt, %853, %854 : vector<1x256xi32>
    %856 = arith.andi %851, %855 : vector<1x256xi1>
    %cst_334 = arith.constant 0.000000e+00 : bf16
    %857 = vector.broadcast %cst_334 : bf16 to vector<16x256xbf16>
    %858 = vector.shape_cast %856 : vector<1x256xi1> to vector<1x256xi1>
    %859 = vector.broadcast %858 : vector<1x256xi1> to vector<16x256xi1>
    %860 = arith.select %859, %847, %857 : vector<16x256xi1>, vector<16x256xbf16>
    %c0_335 = arith.constant 0 : index
    %c162 = arith.constant 162 : index
    %861 = vector.load %arg11[%c0_335, %c162] : memref<16x512xbf16, #tpu.memory_space<vmem>>, vector<16x256xbf16>
    %c2_i32_336 = arith.constant 2 : i32
    %862 = vector.broadcast %c2_i32_336 : i32 to vector<1x256xi32>
    %863 = arith.addi %20, %862 : vector<1x256xi32>
    %c0_i32_337 = arith.constant 0 : i32
    %864 = vector.broadcast %c0_i32_337 : i32 to vector<1x256xi32>
    %865 = arith.cmpi sge, %863, %864 : vector<1x256xi32>
    %c2_i32_338 = arith.constant 2 : i32
    %866 = vector.broadcast %c2_i32_338 : i32 to vector<1x256xi32>
    %867 = arith.addi %20, %866 : vector<1x256xi32>
    %c16_i32_339 = arith.constant 16 : i32
    %868 = vector.broadcast %c16_i32_339 : i32 to vector<1x256xi32>
    %869 = arith.cmpi slt, %867, %868 : vector<1x256xi32>
    %870 = arith.andi %865, %869 : vector<1x256xi1>
    %cst_340 = arith.constant 0.000000e+00 : bf16
    %871 = vector.broadcast %cst_340 : bf16 to vector<16x256xbf16>
    %872 = vector.shape_cast %870 : vector<1x256xi1> to vector<1x256xi1>
    %873 = vector.broadcast %872 : vector<1x256xi1> to vector<16x256xi1>
    %874 = arith.select %873, %861, %871 : vector<16x256xi1>, vector<16x256xbf16>
    %875 = tpu.concatenate %762, %776, %790, %804, %818, %832, %846, %860, %874 in 0 : vector<16x256xbf16>, vector<16x256xbf16>, vector<16x256xbf16>, vector<16x256xbf16>, vector<16x256xbf16>, vector<16x256xbf16>, vector<16x256xbf16>, vector<16x256xbf16>, vector<16x256xbf16> -> vector<144x256xbf16>
    %cst_341 = arith.constant dense<0.000000e+00> : vector<16x256xf32>
    %876 = tpu.matmul %744, %875, %cst_341 {dimension_numbers = #tpu.dot_dimension_numbers<[1], [0], [0], [1], [0, 0, 1, 1], [], []>} : vector<16x144xbf16>, vector<144x256xbf16>, vector<16x256xf32> -> vector<16x256xf32>
    %877 = vector.broadcast %746 : vector<16x1xf32> to vector<16x256xf32>
    %878 = arith.addf %876, %877 : vector<16x256xf32>
    %c1_342 = arith.constant 1 : index
    %c0_343 = arith.constant 0 : index
    %c0_344 = arith.constant 0 : index
    %879 = vector.load %arg6[%c1_342, %c0_343, %c0_344] : memref<2x16x1xf32, #tpu.memory_space<vmem>>, vector<1x16x1xf32>
    %880 = vector.shape_cast %879 : vector<1x16x1xf32> to vector<16x1xf32>
    %c1_345 = arith.constant 1 : index
    %c0_346 = arith.constant 0 : index
    %c0_347 = arith.constant 0 : index
    %881 = vector.load %arg7[%c1_345, %c0_346, %c0_347] : memref<2x16x1xf32, #tpu.memory_space<vmem>>, vector<1x16x1xf32>
    %882 = vector.shape_cast %881 : vector<1x16x1xf32> to vector<16x1xf32>
    %883 = vector.extract_strided_slice %878 {offsets = [0, 0], sizes = [8, 256], strides = [1, 1]} : vector<16x256xf32> to vector<8x256xf32>
    %884 = vector.shape_cast %883 : vector<8x256xf32> to vector<1x8x256xf32>
    %cst_348 = arith.constant dense<0.000000e+00> : vector<1xf32>
    %885 = vector.multi_reduction <add>, %884, %cst_348 [1, 2] : vector<1x8x256xf32> to vector<1xf32>
    %886 = vector.shape_cast %885 : vector<1xf32> to vector<1x1x1xf32>
    %887 = vector.extract %886[0, 0, 0] : f32 from vector<1x1x1xf32>
    %888 = vector.broadcast %887 : f32 to vector<1x1xf32>
    %cst_349 = arith.constant 4.8828125E-4 : f32
    %889 = vector.broadcast %cst_349 : f32 to vector<1x1xf32>
    %890 = arith.mulf %888, %889 : vector<1x1xf32>
    %891 = arith.mulf %883, %883 : vector<8x256xf32>
    %892 = vector.shape_cast %891 : vector<8x256xf32> to vector<1x8x256xf32>
    %cst_350 = arith.constant dense<0.000000e+00> : vector<1xf32>
    %893 = vector.multi_reduction <add>, %892, %cst_350 [1, 2] : vector<1x8x256xf32> to vector<1xf32>
    %894 = vector.shape_cast %893 : vector<1xf32> to vector<1x1x1xf32>
    %895 = vector.extract %894[0, 0, 0] : f32 from vector<1x1x1xf32>
    %896 = vector.broadcast %895 : f32 to vector<1x1xf32>
    %cst_351 = arith.constant 4.8828125E-4 : f32
    %897 = vector.broadcast %cst_351 : f32 to vector<1x1xf32>
    %898 = arith.mulf %896, %897 : vector<1x1xf32>
    %899 = arith.mulf %890, %890 : vector<1x1xf32>
    %900 = arith.subf %898, %899 : vector<1x1xf32>
    %cst_352 = arith.constant 9.99999974E-6 : f32
    %901 = vector.broadcast %cst_352 : f32 to vector<1x1xf32>
    %902 = arith.addf %900, %901 : vector<1x1xf32>
    %903 = math.rsqrt %902 : vector<1x1xf32>
    %904 = vector.extract_strided_slice %880 {offsets = [0, 0], sizes = [8, 1], strides = [1, 1]} : vector<16x1xf32> to vector<8x1xf32>
    %905 = vector.broadcast %903 : vector<1x1xf32> to vector<8x1xf32>
    %906 = arith.mulf %905, %904 : vector<8x1xf32>
    %907 = vector.extract_strided_slice %882 {offsets = [0, 0], sizes = [8, 1], strides = [1, 1]} : vector<16x1xf32> to vector<8x1xf32>
    %908 = vector.broadcast %890 : vector<1x1xf32> to vector<8x1xf32>
    %909 = arith.mulf %908, %906 : vector<8x1xf32>
    %910 = arith.subf %907, %909 : vector<8x1xf32>
    %911 = vector.broadcast %906 : vector<8x1xf32> to vector<8x256xf32>
    %912 = arith.mulf %883, %911 : vector<8x256xf32>
    %913 = vector.broadcast %910 : vector<8x1xf32> to vector<8x256xf32>
    %914 = arith.addf %912, %913 : vector<8x256xf32>
    %cst_353 = arith.constant 5.000000e-01 : f32
    %915 = vector.broadcast %cst_353 : f32 to vector<8x256xf32>
    %916 = arith.mulf %915, %914 : vector<8x256xf32>
    %cst_354 = arith.constant 0.707106769 : f32
    %917 = vector.broadcast %cst_354 : f32 to vector<8x256xf32>
    %918 = arith.mulf %914, %917 : vector<8x256xf32>
    %919 = math.absf %918 : vector<8x256xf32>
    %cst_355 = arith.constant 0.327591091 : f32
    %920 = vector.broadcast %cst_355 : f32 to vector<8x256xf32>
    %921 = arith.mulf %920, %919 : vector<8x256xf32>
    %cst_356 = arith.constant 1.000000e+00 : f32
    %922 = vector.broadcast %cst_356 : f32 to vector<8x256xf32>
    %923 = arith.addf %922, %921 : vector<8x256xf32>
    %cst_357 = arith.constant 1.000000e+00 : f32
    %924 = vector.broadcast %cst_357 : f32 to vector<8x256xf32>
    %925 = arith.divf %924, %923 : vector<8x256xf32>
    %cst_358 = arith.constant 1.06140542 : f32
    %926 = vector.broadcast %cst_358 : f32 to vector<8x256xf32>
    %927 = arith.mulf %926, %925 : vector<8x256xf32>
    %cst_359 = arith.constant -1.45315206 : f32
    %928 = vector.broadcast %cst_359 : f32 to vector<8x256xf32>
    %929 = arith.addf %927, %928 : vector<8x256xf32>
    %930 = arith.mulf %929, %925 : vector<8x256xf32>
    %cst_360 = arith.constant 1.42141378 : f32
    %931 = vector.broadcast %cst_360 : f32 to vector<8x256xf32>
    %932 = arith.addf %930, %931 : vector<8x256xf32>
    %933 = arith.mulf %932, %925 : vector<8x256xf32>
    %cst_361 = arith.constant -0.284496725 : f32
    %934 = vector.broadcast %cst_361 : f32 to vector<8x256xf32>
    %935 = arith.addf %933, %934 : vector<8x256xf32>
    %936 = arith.mulf %935, %925 : vector<8x256xf32>
    %cst_362 = arith.constant 0.254829586 : f32
    %937 = vector.broadcast %cst_362 : f32 to vector<8x256xf32>
    %938 = arith.addf %936, %937 : vector<8x256xf32>
    %939 = arith.mulf %938, %925 : vector<8x256xf32>
    %cst_363 = arith.constant 0.000000e+00 : f32
    %940 = vector.broadcast %cst_363 : f32 to vector<8x256xf32>
    %941 = arith.subf %940, %919 : vector<8x256xf32>
    %942 = arith.mulf %941, %919 : vector<8x256xf32>
    %943 = math.exp %942 : vector<8x256xf32>
    %944 = arith.mulf %939, %943 : vector<8x256xf32>
    %cst_364 = arith.constant 1.000000e+00 : f32
    %945 = vector.broadcast %cst_364 : f32 to vector<8x256xf32>
    %946 = arith.subf %945, %944 : vector<8x256xf32>
    %cst_365 = arith.constant 0.000000e+00 : f32
    %947 = vector.broadcast %cst_365 : f32 to vector<8x256xf32>
    %948 = arith.cmpf oge, %918, %947 : vector<8x256xf32>
    %cst_366 = arith.constant 0.000000e+00 : f32
    %949 = vector.broadcast %cst_366 : f32 to vector<8x256xf32>
    %950 = arith.subf %949, %946 : vector<8x256xf32>
    %951 = arith.select %948, %946, %950 : vector<8x256xi1>, vector<8x256xf32>
    %cst_367 = arith.constant 1.000000e+00 : f32
    %952 = vector.broadcast %cst_367 : f32 to vector<8x256xf32>
    %953 = arith.addf %952, %951 : vector<8x256xf32>
    %954 = arith.mulf %916, %953 : vector<8x256xf32>
    %955 = vector.extract_strided_slice %878 {offsets = [8, 0], sizes = [8, 256], strides = [1, 1]} : vector<16x256xf32> to vector<8x256xf32>
    %956 = vector.shape_cast %955 : vector<8x256xf32> to vector<1x8x256xf32>
    %cst_368 = arith.constant dense<0.000000e+00> : vector<1xf32>
    %957 = vector.multi_reduction <add>, %956, %cst_368 [1, 2] : vector<1x8x256xf32> to vector<1xf32>
    %958 = vector.shape_cast %957 : vector<1xf32> to vector<1x1x1xf32>
    %959 = vector.extract %958[0, 0, 0] : f32 from vector<1x1x1xf32>
    %960 = vector.broadcast %959 : f32 to vector<1x1xf32>
    %cst_369 = arith.constant 4.8828125E-4 : f32
    %961 = vector.broadcast %cst_369 : f32 to vector<1x1xf32>
    %962 = arith.mulf %960, %961 : vector<1x1xf32>
    %963 = arith.mulf %955, %955 : vector<8x256xf32>
    %964 = vector.shape_cast %963 : vector<8x256xf32> to vector<1x8x256xf32>
    %cst_370 = arith.constant dense<0.000000e+00> : vector<1xf32>
    %965 = vector.multi_reduction <add>, %964, %cst_370 [1, 2] : vector<1x8x256xf32> to vector<1xf32>
    %966 = vector.shape_cast %965 : vector<1xf32> to vector<1x1x1xf32>
    %967 = vector.extract %966[0, 0, 0] : f32 from vector<1x1x1xf32>
    %968 = vector.broadcast %967 : f32 to vector<1x1xf32>
    %cst_371 = arith.constant 4.8828125E-4 : f32
    %969 = vector.broadcast %cst_371 : f32 to vector<1x1xf32>
    %970 = arith.mulf %968, %969 : vector<1x1xf32>
    %971 = arith.mulf %962, %962 : vector<1x1xf32>
    %972 = arith.subf %970, %971 : vector<1x1xf32>
    %cst_372 = arith.constant 9.99999974E-6 : f32
    %973 = vector.broadcast %cst_372 : f32 to vector<1x1xf32>
    %974 = arith.addf %972, %973 : vector<1x1xf32>
    %975 = math.rsqrt %974 : vector<1x1xf32>
    %976 = vector.extract_strided_slice %880 {offsets = [8, 0], sizes = [8, 1], strides = [1, 1]} : vector<16x1xf32> to vector<8x1xf32>
    %977 = vector.broadcast %975 : vector<1x1xf32> to vector<8x1xf32>
    %978 = arith.mulf %977, %976 : vector<8x1xf32>
    %979 = vector.extract_strided_slice %882 {offsets = [8, 0], sizes = [8, 1], strides = [1, 1]} : vector<16x1xf32> to vector<8x1xf32>
    %980 = vector.broadcast %962 : vector<1x1xf32> to vector<8x1xf32>
    %981 = arith.mulf %980, %978 : vector<8x1xf32>
    %982 = arith.subf %979, %981 : vector<8x1xf32>
    %983 = vector.broadcast %978 : vector<8x1xf32> to vector<8x256xf32>
    %984 = arith.mulf %955, %983 : vector<8x256xf32>
    %985 = vector.broadcast %982 : vector<8x1xf32> to vector<8x256xf32>
    %986 = arith.addf %984, %985 : vector<8x256xf32>
    %cst_373 = arith.constant 5.000000e-01 : f32
    %987 = vector.broadcast %cst_373 : f32 to vector<8x256xf32>
    %988 = arith.mulf %987, %986 : vector<8x256xf32>
    %cst_374 = arith.constant 0.707106769 : f32
    %989 = vector.broadcast %cst_374 : f32 to vector<8x256xf32>
    %990 = arith.mulf %986, %989 : vector<8x256xf32>
    %991 = math.absf %990 : vector<8x256xf32>
    %cst_375 = arith.constant 0.327591091 : f32
    %992 = vector.broadcast %cst_375 : f32 to vector<8x256xf32>
    %993 = arith.mulf %992, %991 : vector<8x256xf32>
    %cst_376 = arith.constant 1.000000e+00 : f32
    %994 = vector.broadcast %cst_376 : f32 to vector<8x256xf32>
    %995 = arith.addf %994, %993 : vector<8x256xf32>
    %cst_377 = arith.constant 1.000000e+00 : f32
    %996 = vector.broadcast %cst_377 : f32 to vector<8x256xf32>
    %997 = arith.divf %996, %995 : vector<8x256xf32>
    %cst_378 = arith.constant 1.06140542 : f32
    %998 = vector.broadcast %cst_378 : f32 to vector<8x256xf32>
    %999 = arith.mulf %998, %997 : vector<8x256xf32>
    %cst_379 = arith.constant -1.45315206 : f32
    %1000 = vector.broadcast %cst_379 : f32 to vector<8x256xf32>
    %1001 = arith.addf %999, %1000 : vector<8x256xf32>
    %1002 = arith.mulf %1001, %997 : vector<8x256xf32>
    %cst_380 = arith.constant 1.42141378 : f32
    %1003 = vector.broadcast %cst_380 : f32 to vector<8x256xf32>
    %1004 = arith.addf %1002, %1003 : vector<8x256xf32>
    %1005 = arith.mulf %1004, %997 : vector<8x256xf32>
    %cst_381 = arith.constant -0.284496725 : f32
    %1006 = vector.broadcast %cst_381 : f32 to vector<8x256xf32>
    %1007 = arith.addf %1005, %1006 : vector<8x256xf32>
    %1008 = arith.mulf %1007, %997 : vector<8x256xf32>
    %cst_382 = arith.constant 0.254829586 : f32
    %1009 = vector.broadcast %cst_382 : f32 to vector<8x256xf32>
    %1010 = arith.addf %1008, %1009 : vector<8x256xf32>
    %1011 = arith.mulf %1010, %997 : vector<8x256xf32>
    %cst_383 = arith.constant 0.000000e+00 : f32
    %1012 = vector.broadcast %cst_383 : f32 to vector<8x256xf32>
    %1013 = arith.subf %1012, %991 : vector<8x256xf32>
    %1014 = arith.mulf %1013, %991 : vector<8x256xf32>
    %1015 = math.exp %1014 : vector<8x256xf32>
    %1016 = arith.mulf %1011, %1015 : vector<8x256xf32>
    %cst_384 = arith.constant 1.000000e+00 : f32
    %1017 = vector.broadcast %cst_384 : f32 to vector<8x256xf32>
    %1018 = arith.subf %1017, %1016 : vector<8x256xf32>
    %cst_385 = arith.constant 0.000000e+00 : f32
    %1019 = vector.broadcast %cst_385 : f32 to vector<8x256xf32>
    %1020 = arith.cmpf oge, %990, %1019 : vector<8x256xf32>
    %cst_386 = arith.constant 0.000000e+00 : f32
    %1021 = vector.broadcast %cst_386 : f32 to vector<8x256xf32>
    %1022 = arith.subf %1021, %1018 : vector<8x256xf32>
    %1023 = arith.select %1020, %1018, %1022 : vector<8x256xi1>, vector<8x256xf32>
    %cst_387 = arith.constant 1.000000e+00 : f32
    %1024 = vector.broadcast %cst_387 : f32 to vector<8x256xf32>
    %1025 = arith.addf %1024, %1023 : vector<8x256xf32>
    %1026 = arith.mulf %988, %1025 : vector<8x256xf32>
    %1027 = tpu.concatenate %954, %1026 in 0 : vector<8x256xf32>, vector<8x256xf32> -> vector<16x256xf32>
    %c1_388 = arith.constant 1 : index
    %c0_389 = arith.constant 0 : index
    %c0_390 = arith.constant 0 : index
    %1028 = vector.load %arg8[%c1_388, %c0_389, %c0_390] : memref<2x16x144xbf16, #tpu.memory_space<vmem>>, vector<1x16x144xbf16>
    %1029 = vector.shape_cast %1028 : vector<1x16x144xbf16> to vector<16x144xbf16>
    %c1_391 = arith.constant 1 : index
    %c0_392 = arith.constant 0 : index
    %c0_393 = arith.constant 0 : index
    %1030 = vector.load %arg9[%c1_391, %c0_392, %c0_393] : memref<2x16x1xf32, #tpu.memory_space<vmem>>, vector<1x16x1xf32>
    %1031 = vector.shape_cast %1030 : vector<1x16x1xf32> to vector<16x1xf32>
    %1032 = arith.truncf %1027 : vector<16x256xf32> to vector<16x256xbf16>
    %c0_394 = arith.constant 0 : index
    %c128_395 = arith.constant 128 : index
    %1033 = vector.load %arg11[%c0_394, %c128_395] : memref<16x512xbf16, #tpu.memory_space<vmem>>, vector<16x256xbf16>
    tpu.vector_store %arg11[%c0_394, %c128_395], %1032 {strides = array<i32>} : memref<16x512xbf16, #tpu.memory_space<vmem>>, vector<16x256xbf16>,
    %c0_396 = arith.constant 0 : index
    %c94_397 = arith.constant 94 : index
    %1034 = vector.load %arg11[%c0_396, %c94_397] : memref<16x512xbf16, #tpu.memory_space<vmem>>, vector<16x256xbf16>
    %c-2_i32_398 = arith.constant -2 : i32
    %1035 = vector.broadcast %c-2_i32_398 : i32 to vector<1x256xi32>
    %1036 = arith.addi %20, %1035 : vector<1x256xi32>
    %c0_i32_399 = arith.constant 0 : i32
    %1037 = vector.broadcast %c0_i32_399 : i32 to vector<1x256xi32>
    %1038 = arith.cmpi sge, %1036, %1037 : vector<1x256xi32>
    %c-2_i32_400 = arith.constant -2 : i32
    %1039 = vector.broadcast %c-2_i32_400 : i32 to vector<1x256xi32>
    %1040 = arith.addi %20, %1039 : vector<1x256xi32>
    %c16_i32_401 = arith.constant 16 : i32
    %1041 = vector.broadcast %c16_i32_401 : i32 to vector<1x256xi32>
    %1042 = arith.cmpi slt, %1040, %1041 : vector<1x256xi32>
    %1043 = arith.andi %1038, %1042 : vector<1x256xi1>
    %cst_402 = arith.constant 0.000000e+00 : bf16
    %1044 = vector.broadcast %cst_402 : bf16 to vector<16x256xbf16>
    %1045 = vector.shape_cast %1043 : vector<1x256xi1> to vector<1x256xi1>
    %1046 = vector.broadcast %1045 : vector<1x256xi1> to vector<16x256xi1>
    %1047 = arith.select %1046, %1034, %1044 : vector<16x256xi1>, vector<16x256xbf16>
    %c0_403 = arith.constant 0 : index
    %c96_404 = arith.constant 96 : index
    %1048 = vector.load %arg11[%c0_403, %c96_404] : memref<16x512xbf16, #tpu.memory_space<vmem>>, vector<16x256xbf16>
    %c0_i32_405 = arith.constant 0 : i32
    %1049 = vector.broadcast %c0_i32_405 : i32 to vector<1x256xi32>
    %1050 = arith.addi %20, %1049 : vector<1x256xi32>
    %c0_i32_406 = arith.constant 0 : i32
    %1051 = vector.broadcast %c0_i32_406 : i32 to vector<1x256xi32>
    %1052 = arith.cmpi sge, %1050, %1051 : vector<1x256xi32>
    %c0_i32_407 = arith.constant 0 : i32
    %1053 = vector.broadcast %c0_i32_407 : i32 to vector<1x256xi32>
    %1054 = arith.addi %20, %1053 : vector<1x256xi32>
    %c16_i32_408 = arith.constant 16 : i32
    %1055 = vector.broadcast %c16_i32_408 : i32 to vector<1x256xi32>
    %1056 = arith.cmpi slt, %1054, %1055 : vector<1x256xi32>
    %1057 = arith.andi %1052, %1056 : vector<1x256xi1>
    %cst_409 = arith.constant 0.000000e+00 : bf16
    %1058 = vector.broadcast %cst_409 : bf16 to vector<16x256xbf16>
    %1059 = vector.shape_cast %1057 : vector<1x256xi1> to vector<1x256xi1>
    %1060 = vector.broadcast %1059 : vector<1x256xi1> to vector<16x256xi1>
    %1061 = arith.select %1060, %1048, %1058 : vector<16x256xi1>, vector<16x256xbf16>
    %c0_410 = arith.constant 0 : index
    %c98_411 = arith.constant 98 : index
    %1062 = vector.load %arg11[%c0_410, %c98_411] : memref<16x512xbf16, #tpu.memory_space<vmem>>, vector<16x256xbf16>
    %c2_i32_412 = arith.constant 2 : i32
    %1063 = vector.broadcast %c2_i32_412 : i32 to vector<1x256xi32>
    %1064 = arith.addi %20, %1063 : vector<1x256xi32>
    %c0_i32_413 = arith.constant 0 : i32
    %1065 = vector.broadcast %c0_i32_413 : i32 to vector<1x256xi32>
    %1066 = arith.cmpi sge, %1064, %1065 : vector<1x256xi32>
    %c2_i32_414 = arith.constant 2 : i32
    %1067 = vector.broadcast %c2_i32_414 : i32 to vector<1x256xi32>
    %1068 = arith.addi %20, %1067 : vector<1x256xi32>
    %c16_i32_415 = arith.constant 16 : i32
    %1069 = vector.broadcast %c16_i32_415 : i32 to vector<1x256xi32>
    %1070 = arith.cmpi slt, %1068, %1069 : vector<1x256xi32>
    %1071 = arith.andi %1066, %1070 : vector<1x256xi1>
    %cst_416 = arith.constant 0.000000e+00 : bf16
    %1072 = vector.broadcast %cst_416 : bf16 to vector<16x256xbf16>
    %1073 = vector.shape_cast %1071 : vector<1x256xi1> to vector<1x256xi1>
    %1074 = vector.broadcast %1073 : vector<1x256xi1> to vector<16x256xi1>
    %1075 = arith.select %1074, %1062, %1072 : vector<16x256xi1>, vector<16x256xbf16>
    %c0_417 = arith.constant 0 : index
    %c126_418 = arith.constant 126 : index
    %1076 = vector.load %arg11[%c0_417, %c126_418] : memref<16x512xbf16, #tpu.memory_space<vmem>>, vector<16x256xbf16>
    %c-2_i32_419 = arith.constant -2 : i32
    %1077 = vector.broadcast %c-2_i32_419 : i32 to vector<1x256xi32>
    %1078 = arith.addi %20, %1077 : vector<1x256xi32>
    %c0_i32_420 = arith.constant 0 : i32
    %1079 = vector.broadcast %c0_i32_420 : i32 to vector<1x256xi32>
    %1080 = arith.cmpi sge, %1078, %1079 : vector<1x256xi32>
    %c-2_i32_421 = arith.constant -2 : i32
    %1081 = vector.broadcast %c-2_i32_421 : i32 to vector<1x256xi32>
    %1082 = arith.addi %20, %1081 : vector<1x256xi32>
    %c16_i32_422 = arith.constant 16 : i32
    %1083 = vector.broadcast %c16_i32_422 : i32 to vector<1x256xi32>
    %1084 = arith.cmpi slt, %1082, %1083 : vector<1x256xi32>
    %1085 = arith.andi %1080, %1084 : vector<1x256xi1>
    %cst_423 = arith.constant 0.000000e+00 : bf16
    %1086 = vector.broadcast %cst_423 : bf16 to vector<16x256xbf16>
    %1087 = vector.shape_cast %1085 : vector<1x256xi1> to vector<1x256xi1>
    %1088 = vector.broadcast %1087 : vector<1x256xi1> to vector<16x256xi1>
    %1089 = arith.select %1088, %1076, %1086 : vector<16x256xi1>, vector<16x256xbf16>
    %c0_424 = arith.constant 0 : index
    %c128_425 = arith.constant 128 : index
    %1090 = vector.load %arg11[%c0_424, %c128_425] : memref<16x512xbf16, #tpu.memory_space<vmem>>, vector<16x256xbf16>
    %c0_i32_426 = arith.constant 0 : i32
    %1091 = vector.broadcast %c0_i32_426 : i32 to vector<1x256xi32>
    %1092 = arith.addi %20, %1091 : vector<1x256xi32>
    %c0_i32_427 = arith.constant 0 : i32
    %1093 = vector.broadcast %c0_i32_427 : i32 to vector<1x256xi32>
    %1094 = arith.cmpi sge, %1092, %1093 : vector<1x256xi32>
    %c0_i32_428 = arith.constant 0 : i32
    %1095 = vector.broadcast %c0_i32_428 : i32 to vector<1x256xi32>
    %1096 = arith.addi %20, %1095 : vector<1x256xi32>
    %c16_i32_429 = arith.constant 16 : i32
    %1097 = vector.broadcast %c16_i32_429 : i32 to vector<1x256xi32>
    %1098 = arith.cmpi slt, %1096, %1097 : vector<1x256xi32>
    %1099 = arith.andi %1094, %1098 : vector<1x256xi1>
    %cst_430 = arith.constant 0.000000e+00 : bf16
    %1100 = vector.broadcast %cst_430 : bf16 to vector<16x256xbf16>
    %1101 = vector.shape_cast %1099 : vector<1x256xi1> to vector<1x256xi1>
    %1102 = vector.broadcast %1101 : vector<1x256xi1> to vector<16x256xi1>
    %1103 = arith.select %1102, %1090, %1100 : vector<16x256xi1>, vector<16x256xbf16>
    %c0_431 = arith.constant 0 : index
    %c130_432 = arith.constant 130 : index
    %1104 = vector.load %arg11[%c0_431, %c130_432] : memref<16x512xbf16, #tpu.memory_space<vmem>>, vector<16x256xbf16>
    %c2_i32_433 = arith.constant 2 : i32
    %1105 = vector.broadcast %c2_i32_433 : i32 to vector<1x256xi32>
    %1106 = arith.addi %20, %1105 : vector<1x256xi32>
    %c0_i32_434 = arith.constant 0 : i32
    %1107 = vector.broadcast %c0_i32_434 : i32 to vector<1x256xi32>
    %1108 = arith.cmpi sge, %1106, %1107 : vector<1x256xi32>
    %c2_i32_435 = arith.constant 2 : i32
    %1109 = vector.broadcast %c2_i32_435 : i32 to vector<1x256xi32>
    %1110 = arith.addi %20, %1109 : vector<1x256xi32>
    %c16_i32_436 = arith.constant 16 : i32
    %1111 = vector.broadcast %c16_i32_436 : i32 to vector<1x256xi32>
    %1112 = arith.cmpi slt, %1110, %1111 : vector<1x256xi32>
    %1113 = arith.andi %1108, %1112 : vector<1x256xi1>
    %cst_437 = arith.constant 0.000000e+00 : bf16
    %1114 = vector.broadcast %cst_437 : bf16 to vector<16x256xbf16>
    %1115 = vector.shape_cast %1113 : vector<1x256xi1> to vector<1x256xi1>
    %1116 = vector.broadcast %1115 : vector<1x256xi1> to vector<16x256xi1>
    %1117 = arith.select %1116, %1104, %1114 : vector<16x256xi1>, vector<16x256xbf16>
    %c0_438 = arith.constant 0 : index
    %c158_439 = arith.constant 158 : index
    %1118 = vector.load %arg11[%c0_438, %c158_439] : memref<16x512xbf16, #tpu.memory_space<vmem>>, vector<16x256xbf16>
    %c-2_i32_440 = arith.constant -2 : i32
    %1119 = vector.broadcast %c-2_i32_440 : i32 to vector<1x256xi32>
    %1120 = arith.addi %20, %1119 : vector<1x256xi32>
    %c0_i32_441 = arith.constant 0 : i32
    %1121 = vector.broadcast %c0_i32_441 : i32 to vector<1x256xi32>
    %1122 = arith.cmpi sge, %1120, %1121 : vector<1x256xi32>
    %c-2_i32_442 = arith.constant -2 : i32
    %1123 = vector.broadcast %c-2_i32_442 : i32 to vector<1x256xi32>
    %1124 = arith.addi %20, %1123 : vector<1x256xi32>
    %c16_i32_443 = arith.constant 16 : i32
    %1125 = vector.broadcast %c16_i32_443 : i32 to vector<1x256xi32>
    %1126 = arith.cmpi slt, %1124, %1125 : vector<1x256xi32>
    %1127 = arith.andi %1122, %1126 : vector<1x256xi1>
    %cst_444 = arith.constant 0.000000e+00 : bf16
    %1128 = vector.broadcast %cst_444 : bf16 to vector<16x256xbf16>
    %1129 = vector.shape_cast %1127 : vector<1x256xi1> to vector<1x256xi1>
    %1130 = vector.broadcast %1129 : vector<1x256xi1> to vector<16x256xi1>
    %1131 = arith.select %1130, %1118, %1128 : vector<16x256xi1>, vector<16x256xbf16>
    %c0_445 = arith.constant 0 : index
    %c160_446 = arith.constant 160 : index
    %1132 = vector.load %arg11[%c0_445, %c160_446] : memref<16x512xbf16, #tpu.memory_space<vmem>>, vector<16x256xbf16>
    %c0_i32_447 = arith.constant 0 : i32
    %1133 = vector.broadcast %c0_i32_447 : i32 to vector<1x256xi32>
    %1134 = arith.addi %20, %1133 : vector<1x256xi32>
    %c0_i32_448 = arith.constant 0 : i32
    %1135 = vector.broadcast %c0_i32_448 : i32 to vector<1x256xi32>
    %1136 = arith.cmpi sge, %1134, %1135 : vector<1x256xi32>
    %c0_i32_449 = arith.constant 0 : i32
    %1137 = vector.broadcast %c0_i32_449 : i32 to vector<1x256xi32>
    %1138 = arith.addi %20, %1137 : vector<1x256xi32>
    %c16_i32_450 = arith.constant 16 : i32
    %1139 = vector.broadcast %c16_i32_450 : i32 to vector<1x256xi32>
    %1140 = arith.cmpi slt, %1138, %1139 : vector<1x256xi32>
    %1141 = arith.andi %1136, %1140 : vector<1x256xi1>
    %cst_451 = arith.constant 0.000000e+00 : bf16
    %1142 = vector.broadcast %cst_451 : bf16 to vector<16x256xbf16>
    %1143 = vector.shape_cast %1141 : vector<1x256xi1> to vector<1x256xi1>
    %1144 = vector.broadcast %1143 : vector<1x256xi1> to vector<16x256xi1>
    %1145 = arith.select %1144, %1132, %1142 : vector<16x256xi1>, vector<16x256xbf16>
    %c0_452 = arith.constant 0 : index
    %c162_453 = arith.constant 162 : index
    %1146 = vector.load %arg11[%c0_452, %c162_453] : memref<16x512xbf16, #tpu.memory_space<vmem>>, vector<16x256xbf16>
    %c2_i32_454 = arith.constant 2 : i32
    %1147 = vector.broadcast %c2_i32_454 : i32 to vector<1x256xi32>
    %1148 = arith.addi %20, %1147 : vector<1x256xi32>
    %c0_i32_455 = arith.constant 0 : i32
    %1149 = vector.broadcast %c0_i32_455 : i32 to vector<1x256xi32>
    %1150 = arith.cmpi sge, %1148, %1149 : vector<1x256xi32>
    %c2_i32_456 = arith.constant 2 : i32
    %1151 = vector.broadcast %c2_i32_456 : i32 to vector<1x256xi32>
    %1152 = arith.addi %20, %1151 : vector<1x256xi32>
    %c16_i32_457 = arith.constant 16 : i32
    %1153 = vector.broadcast %c16_i32_457 : i32 to vector<1x256xi32>
    %1154 = arith.cmpi slt, %1152, %1153 : vector<1x256xi32>
    %1155 = arith.andi %1150, %1154 : vector<1x256xi1>
    %cst_458 = arith.constant 0.000000e+00 : bf16
    %1156 = vector.broadcast %cst_458 : bf16 to vector<16x256xbf16>
    %1157 = vector.shape_cast %1155 : vector<1x256xi1> to vector<1x256xi1>
    %1158 = vector.broadcast %1157 : vector<1x256xi1> to vector<16x256xi1>
    %1159 = arith.select %1158, %1146, %1156 : vector<16x256xi1>, vector<16x256xbf16>
    %1160 = tpu.concatenate %1047, %1061, %1075, %1089, %1103, %1117, %1131, %1145, %1159 in 0 : vector<16x256xbf16>, vector<16x256xbf16>, vector<16x256xbf16>, vector<16x256xbf16>, vector<16x256xbf16>, vector<16x256xbf16>, vector<16x256xbf16>, vector<16x256xbf16>, vector<16x256xbf16> -> vector<144x256xbf16>
    %cst_459 = arith.constant dense<0.000000e+00> : vector<16x256xf32>
    %1161 = tpu.matmul %1029, %1160, %cst_459 {dimension_numbers = #tpu.dot_dimension_numbers<[1], [0], [0], [1], [0, 0, 1, 1], [], []>} : vector<16x144xbf16>, vector<144x256xbf16>, vector<16x256xf32> -> vector<16x256xf32>
    %1162 = vector.broadcast %1031 : vector<16x1xf32> to vector<16x256xf32>
    %1163 = arith.addf %1161, %1162 : vector<16x256xf32>
    %1164 = arith.addf %593, %1163 : vector<16x256xf32>
    %c0_460 = arith.constant 0 : index
    %c0_461 = arith.constant 0 : index
    %c0_462 = arith.constant 0 : index
    %1165 = vector.load %arg10[%c0_460, %c0_461, %c0_462] : memref<1x16x256xf32, #tpu.memory_space<vmem>>, vector<1x16x256xf32>
    %1166 = vector.shape_cast %1165 : vector<1x16x256xf32> to vector<16x256xf32>
    %1167 = vector.shape_cast %1164 : vector<16x256xf32> to vector<1x16x256xf32>
    tpu.vector_store %arg10[%c0_460, %c0_461, %c0_462], %1167 {strides = array<i32>} : memref<1x16x256xf32, #tpu.memory_space<vmem>>, vector<1x16x256xf32>,
    return
  }
  func.func @transform_0(%arg0: i32) -> (i32, i32, i32) {
    %c0_i32 = arith.constant 0 : i32
    %c0_i32_0 = arith.constant 0 : i32
    %c0_i32_1 = arith.constant 0 : i32
    return %arg0, %c0_i32, %c0_i32_0 : i32, i32, i32
  }
  func.func @transform_1(%arg0: i32) -> (i32, i32, i32) {
    %c0_i32 = arith.constant 0 : i32
    %c0_i32_0 = arith.constant 0 : i32
    %c0_i32_1 = arith.constant 0 : i32
    %c0_i32_2 = arith.constant 0 : i32
    return %c0_i32, %c0_i32_0, %c0_i32_1 : i32, i32, i32
  }
  func.func @transform_2(%arg0: i32) -> (i32, i32, i32) {
    %c0_i32 = arith.constant 0 : i32
    %c0_i32_0 = arith.constant 0 : i32
    %c0_i32_1 = arith.constant 0 : i32
    %c0_i32_2 = arith.constant 0 : i32
    return %c0_i32, %c0_i32_0, %c0_i32_1 : i32, i32, i32
  }
  func.func @transform_3(%arg0: i32) -> (i32, i32, i32) {
    %c0_i32 = arith.constant 0 : i32
    %c0_i32_0 = arith.constant 0 : i32
    %c0_i32_1 = arith.constant 0 : i32
    %c0_i32_2 = arith.constant 0 : i32
    return %c0_i32, %c0_i32_0, %c0_i32_1 : i32, i32, i32
  }
  func.func @transform_4(%arg0: i32) -> (i32, i32, i32) {
    %c0_i32 = arith.constant 0 : i32
    %c0_i32_0 = arith.constant 0 : i32
    %c0_i32_1 = arith.constant 0 : i32
    %c0_i32_2 = arith.constant 0 : i32
    return %c0_i32, %c0_i32_0, %c0_i32_1 : i32, i32, i32
  }
  func.func @transform_5(%arg0: i32) -> (i32, i32, i32) {
    %c0_i32 = arith.constant 0 : i32
    %c0_i32_0 = arith.constant 0 : i32
    %c0_i32_1 = arith.constant 0 : i32
    %c0_i32_2 = arith.constant 0 : i32
    return %c0_i32, %c0_i32_0, %c0_i32_1 : i32, i32, i32
  }
  func.func @transform_6(%arg0: i32) -> (i32, i32, i32) {
    %c0_i32 = arith.constant 0 : i32
    %c0_i32_0 = arith.constant 0 : i32
    %c0_i32_1 = arith.constant 0 : i32
    %c0_i32_2 = arith.constant 0 : i32
    return %c0_i32, %c0_i32_0, %c0_i32_1 : i32, i32, i32
  }
  func.func @transform_7(%arg0: i32) -> (i32, i32, i32) {
    %c0_i32 = arith.constant 0 : i32
    %c0_i32_0 = arith.constant 0 : i32
    %c0_i32_1 = arith.constant 0 : i32
    %c0_i32_2 = arith.constant 0 : i32
    return %c0_i32, %c0_i32_0, %c0_i32_1 : i32, i32, i32
  }
  func.func @transform_8(%arg0: i32) -> (i32, i32, i32) {
    %c0_i32 = arith.constant 0 : i32
    %c0_i32_0 = arith.constant 0 : i32
    %c0_i32_1 = arith.constant 0 : i32
    %c0_i32_2 = arith.constant 0 : i32
    return %c0_i32, %c0_i32_0, %c0_i32_1 : i32, i32, i32
  }
  func.func @transform_9(%arg0: i32) -> (i32, i32, i32) {
    %c0_i32 = arith.constant 0 : i32
    %c0_i32_0 = arith.constant 0 : i32
    %c0_i32_1 = arith.constant 0 : i32
    return %arg0, %c0_i32, %c0_i32_0 : i32, i32, i32
  }
}

</mosaic_0001>

<bundles_post_ra>
// kernel: tpu_custom_call.1
= control target key start
LH: loop header
LB: loop body
LE: loop exit
PB: predicated region body
PF: predicated region fallthrough
CT: control target
= control target key end

     0   :  { %14 = vsyncpa [#allocation4], 0  ;;  %s4238_s0 = inlined_call_operand.vmem [shape: f32[2,16,256], index: 0, kind: input, shape index: {}]   ;;  %s4239_s1 = inlined_call_operand.vmem [shape: f32[2,16,1], index: 1, kind: input, shape index: {}]   ;;  %s4240_s2 = inlined_call_operand.vmem [shape: f32[2,16,1], index: 2, kind: input, shape index: {}]   ;;  %s4241_s3 = inlined_call_operand.vmem [shape: bf16[2,16,144], index: 3, kind: input, shape index: {}]   ;;  %s4242_s4 = inlined_call_operand.vmem [shape: f32[2,16,1], index: 4, kind: input, shape index: {}]   ;;  %s4243_s5 = inlined_call_operand.vmem [shape: f32[2,16,1], index: 5, kind: input, shape index: {}]   ;;  %s4244_s6 = inlined_call_operand.vmem [shape: f32[2,16,1], index: 6, kind: input, shape index: {}]   ;;  %s4245_s7 = inlined_call_operand.vmem [shape: bf16[2,16,144], index: 7, kind: input, shape index: {}]   ;;  %s4246_s8 = inlined_call_operand.vmem [shape: f32[2,16,1], index: 8, kind: input, shape index: {}]   ;;  %s4247_s9 = inlined_call_operand.hbm [shape: f32[2,16,256], index: 9, kind: output, shape index: {}]  }
   0x1   :  { %16 = vsyncpa [#allocation4 + $0x1], 0  ;;  %s3055_s30 = smov 0   ;;  %s3057_s10 = smov 0  }
   0x2   :  { %s3059_s11 = smov 0   ;;  %s3061_s12 = smov 0  }
   0x3 LB: > { %s3076_s13 = sadd.s32 4294967295, %s2976_s12   ;;  %s2677_s14 = sadd.s32 4294967294, %s2976_s12   ;;  %s2976_s12 = sphi %s3061_s12, %s4368_s12   ;;  %s2972_s11 = sphi %s3059_s11, %s4367_s11   ;;  %s2968_s10 = sphi %s3057_s10, %s4366_s10   ;;  %s2964_s30 = sphi %s3055_s30, %s4365_s30  }
   0x4   : > { %s3080_s15 = sadd.s32 1, %s2976_s12   ;;  %s223_s16 = sadd.s32 1, %s2972_s11 }
   0x5   : > { %s220_s17 = ssub.s32 %s2976_s12, %s3080_s15  ;;  %p233_p0 = scmp.ne.s32.totalorder %s2972_s11, %s2968_s10 }
   0x6   : > { %p221_p1 = scmp.eq.s32.totalorder %s220_s17, 0  ;;  %p234_p2 = scmp.eq.s32.totalorder %s3076_s13, 1 }
   0x7   : > { %p239_p3 = scmp.ne.s32.totalorder %s2968_s10, %s2964_s30  ;;  %p240_p4 = scmp.eq.s32.totalorder %s2677_s14, 1 }
   0x8   : > { %s3091_s18 = scalar_select %p221_p1, %s2972_s11, %s223_s16  }
   0x9   : > { %p3093_p5 = por %p234_p2, %p233_p0  ;;  %p3097_p6 = por %p240_p4, %p239_p3 }
   0xa   : > { %p2680_p7 = scmp.ge.s32.totalorder %s2976_s12, 1  ;;  %p290_p8 = scmp.lt.s32.totalorder %s2976_s12, 3 }
   0xc   : > { %p291_p9 = pnand %p2680_p7, %p290_p8 }
   0xd   : > { %p326_p10 = scmp.lt.s32.totalorder (!%p291_p9), %s3076_s13, 1  ;;  %v2978_v12 = vmov (!%p291_p9), 0   ;;  %v336_v41 = vlaneseq (!%p291_p9)  ;;  %v367_v62 = vld [vmem:[%s4239_s1] sm:$0xff] (!%p291_p9)  ;;  %s2979_s24 = smov (!%p291_p9), 127   ;;  %vm2980_vm6 = vmmov (!%p291_p9), 1   ;;  %vm4260_vm12 = vcmask (!%p291_p9), 916480  }
   0xe   : > { %294 = sbr.rel (%p291_p9) target bundleno = 3745 (0xea1), region = 56  ;;  %2816 = vset.pattern.permute.xlu0 (!%p291_p9), %v2978_v12  ;;  %2817 = vset.pattern.permute.xlu1 (!%p291_p9), %v2978_v12  ;;  %vm628_vm7 = vmpackc.low (!%p291_p9), %vm2980_vm6, %vm2980_vm6  ;;  %s2983_s14 = smov (!%p291_p9), 112   ;;  %vm676_vm13 = vcmask (!%p291_p9), 924672   ;;  %vm4256_vm14 = vcmask (!%p291_p9), 1039360  }
   0xf   : > { %v337_v44 = vand.u32 (!%p291_p9), 127, %v336_v41  ;;  %s4259_s16 = smov (!%p291_p9), 16   ;;  %s4265_s17 = smov (!%p291_p9), 17  }
  0x10   : > { %s2988_s23 = smov (!%p291_p9), 126  }
  0x11   : > { %v338_v49 = vadd.s32 (!%p291_p9), 128, %v337_v44  ;;  %v3136_v56 = vand.u32 (!%p291_p9), 15, %v337_v44 }
  0x13   : > { %v3138_v57 = vand.u32 (!%p291_p9), 15, %v338_v49  ;;  %v584_v59 = vadd.s32 (!%p291_p9), 4294967295, %v3136_v56  ;;  %v650_v63 = vadd.s32 (!%p291_p9), 1, %v3136_v56 }
  0x15   : > { %s327_s21 = scalar_select %p326_p10, %s3076_s13, 1  ;;  %v585_v60 = vadd.s32 4294967295, %v3138_v57  ;;  %vm586_vm0 = vcmp.ge.s32.totalorder %v584_v59, 0  ;;  %vm654_vm3 = vcmp.lt.s32.totalorder %v650_v63, 16 }
  0x17   : > { %s2717_s22 = sshll.u32 %s327_s21, 5  ;;  %vm587_vm1 = vcmp.ge.s32.totalorder %v585_v60, 0  ;;  %s2986_s21 = smov 113  }
  0x18   : > { %s3108_s25 = scalar_lea.vmem %s4238_s0, %s2717_s22  ;;  %vm596_vm2 = vmpackc.low %vm587_vm1, %vm586_vm0  ;;  %s4263_s22 = smov 111  }
  0x19   : > { %v3111_v0 = vld [vmem:[%s3108_s25 + $0x10] sm:$0xff]  ;;  %v3114_v1 = vld [vmem:[%s3108_s25 + $0x18] sm:$0xff]  ;;  %v3117_v2 = vld [vmem:[%s3108_s25] sm:$0xff] }
  0x1a   : > { %v472_v3 = vadd.f32 %v3114_v1, %v3111_v0  ;;  %v3122_v4 = vld [vmem:[%s3108_s25 + $0x8] sm:$0xff]  ;;  %v484_v5 = vmul.f32 %v3111_v0, %v3111_v0  ;;  %v485_v6 = vmul.f32 %v3114_v1, %v3114_v1  ;;  %v383_v7 = vmul.f32 %v3117_v2, %v3117_v2 }
  0x1b   : > { %v371_v8 = vadd.f32 %v3122_v4, %v3117_v2  ;;  %v384_v9 = vmul.f32 %v3122_v4, %v3122_v4 }
  0x1c   : > { %473 = vadd.xlane.f32.xlu1 %v472_v3  ;;  %v486_v10 = vadd.f32 %v485_v6, %v484_v5  ;;  %v651_v3 = vadd.s32 1, %v3138_v57  ;;  %v599_v5 = vshrl.u32 %v336_v41, 7 }
  0x1d   : > { %372 = vadd.xlane.f32.xlu0 %v371_v8  ;;  %v385_v11 = vadd.f32 %v384_v9, %v383_v7  ;;  %v597_v7 = vsel %vm596_vm2, 65537, %v2978_v12  ;;  %v368_v9 = vld [vmem:[%s4239_s1 + $0x8] sm:$0xff] }
  0x1e   : > { %vm655_vm4 = vcmp.lt.s32.totalorder %v651_v3, 16 }
  0x1f   : > { %vm662_vm5 = vmpackc.low %vm655_vm4, %vm654_vm3 }
  0x20   : > { %487 = vadd.xlane.f32.xlu1 %v486_v10  ;;  %v3151_v10 = vsub.s32 4, %v599_v5 }
  0x21   : > { %386 = vadd.xlane.f32.xlu0 %v385_v11 }
  0xa9   : > { %v474_v13 = vpop.xlane.xlu1 %473 }
  0xaa   : > { %v475_v14 = vrot.slane %v474_v13, 4  ;;  %v373_v15 = vpop.xlane.xlu0 %372 }
  0xab   : > { %v374_v16 = vrot.slane %v373_v15, 4 }
  0xac   : > { %v476_v17 = vadd.f32 %v475_v14, %v474_v13  ;;  %v605_v13 = vrot.slane %v597_v7, %v3151_v10 }
  0xad   : > { %v375_v18 = vadd.f32 %v374_v16, %v373_v15  ;;  %v488_v19 = vpop.xlane.xlu1 %487  ;;  %v369_v16 = vld [vmem:[%s4240_s2] sm:$0xff] }
  0xae   : > { %v489_v20 = vrot.slane %v488_v19, 4  ;;  %v387_v21 = vpop.xlane.xlu0 %386  ;;  %v477_v22 = vrot.slane %v476_v17, 2 }
  0xaf   : > { %v388_v23 = vrot.slane %v387_v21, 4  ;;  %v376_v24 = vrot.slane %v375_v18, 2 }
  0xb0   : > { %v490_v25 = vadd.f32 %v489_v20, %v488_v19  ;;  %v478_v28 = vadd.f32 %v477_v22, %v476_v17  ;;  %v663_v19 = vsel %vm662_vm5, 65537, %v2978_v12  ;;  %v370_v20 = vld [vmem:[%s4240_s2 + $0x8] sm:$0xff]  ;;  %v3163_v22 = vsub.s32 0, %v599_v5 }
  0xb1   : > { %v389_v26 = vadd.f32 %v388_v23, %v387_v21  ;;  %v377_v27 = vadd.f32 %v376_v24, %v375_v18  ;;  %v671_v21 = vrot.slane %v663_v19, %v3151_v10  ;;  %v629_v23 = vsel %vm628_vm7, 65537, %v2978_v12 }
  0xb2   : > { %v491_v29 = vrot.slane %v490_v25, 2  ;;  %v479_v35 = vrot.slane %v478_v28, 1  ;;  %vm707_vm5 = vcmask 7168  }
  0xb3   : > { %v378_v30 = vrot.slane %v377_v27, 1  ;;  %v390_v31 = vrot.slane %v389_v26, 2 }
  0xb4   : > { %v492_v32 = vadd.f32 %v491_v29, %v490_v25  ;;  %v480_v40 = vadd.f32 %v479_v35, %v478_v28  ;;  %v3167_v25 = vrot.slane %v629_v23, %v3163_v22  ;;  %v601_v28 = vrot.slane %v597_v7, %v3163_v22 }
  0xb5   : > { %v379_v33 = vadd.f32 %v378_v30, %v377_v27  ;;  %v391_v34 = vadd.f32 %v390_v31, %v389_v26  ;;  %v3170_v26 = vrot.slane %v629_v23, %v3151_v10  ;;  %v667_v27 = vrot.slane %v663_v19, %v3163_v22 }
  0xb6   : > { %v493_v36 = vrot.slane %v492_v32, 1  ;;  %vm4252_vm7 = vcmp.ne.s16.totalorder %v3167_v25, 0 }
  0xb7   : > { %2719 = vpush %v379_v33  ;;  %v392_v37 = vrot.slane %v391_v34, 1  ;;  %vm697_vm6 = vcmp.ne.s16.totalorder %v3170_v26, 0 }
  0xb8   : > { %v494_v39 = vadd.f32 %v493_v36, %v492_v32 }
  0xb9   : > { %v393_v38 = vadd.f32 %v392_v37, %v391_v34 }
  0xbb   : > { %2721 = vpush %v393_v38 }
  0xbc   : > { %2723 = vpush %v480_v40 }
  0xbd   : > { %2725 = vpush %v494_v39 }
  0xe8   : > { %s2720_s26 = spop %2719 }
  0xe9   : > { %v381_v42 = vstv %s2720_s26  ;;  %s4271_s26 = smov 110  }
  0xea   : > { %v382_v43 = vmul.f32 0.00048828125, %v381_v42 }
  0xec   : > { %s2722_s27 = spop %2721  ;;  %v397_v46 = vmul.f32 %v382_v43, %v382_v43 }
  0xed   : > { %v395_v45 = vstv %s2722_s27  ;;  %s2724_s28 = spop %2723  ;;  %s4267_s27 = smov 95  }
  0xee   : > { %v396_v47 = vmul.f32 0.00048828125, %v395_v45  ;;  %v482_v48 = vstv %s2724_s28  ;;  %s2726_s29 = spop %2725  ;;  %s2981_s28 = smov 1  }
  0xef   : > { %v483_v50 = vmul.f32 0.00048828125, %v482_v48  ;;  %v496_v51 = vstv %s2726_s29  ;;  %s2982_s29 = smov 15  }
  0xf0   : > { %v398_v52 = vsub.f32 %v396_v47, %v397_v46  ;;  %v497_v54 = vmul.f32 0.00048828125, %v496_v51 }
  0xf1   : > { %v498_v53 = vmul.f32 %v483_v50, %v483_v50 }
  0xf2   : > { %v399_v55 = vadd.f32 1e-05, %v398_v52 }
  0xf3   : > { %v499_v58 = vsub.f32 %v497_v54, %v498_v53 }
  0xf4   : > { %2830 = vrsqrt.f32 %v399_v55 }
  0xf5   : > { %v500_v61 = vadd.f32 1e-05, %v499_v58 }
  0xf7   : > { %2832 = vrsqrt.f32 %v500_v61 }
  0xfe   : > { %v2831_v6 = vpop.eup %2830 }
  0xff   : > { %v401_v8 = vmul.f32 %v2831_v6, %v367_v62 }
 0x101   : > { %v2833_v11 = vpop.eup %2832  ;;  %406 = vperm.xlu0 %2816, %v401_v8   ;;  %v402_v15 = vmul.f32 %v401_v8, %v382_v43 }
 0x102   : > { %v502_v14 = vmul.f32 %v2833_v11, %v368_v9 }
 0x103   : > { %v403_v17 = vsub.f32 %v369_v16, %v402_v15 }
 0x104   : > { %507 = vperm.xlu1 %2817, %v502_v14   ;;  %v503_v18 = vmul.f32 %v502_v14, %v483_v50 }
 0x105   : > { %686 = vrot.lane.b32.xlu0 %v605_v13, %s2979_s24 }
 0x106   : > { %v504_v24 = vsub.f32 %v370_v20, %v503_v18 }
 0x108   : > { %413 = vperm.xlu1 %2817, %v403_v17  }
 0x109   : > { %705 = vrot.lane.b32.xlu0 %v671_v21, %s2981_s28 }
 0x10c   : > { %514 = vperm.xlu1 %2817, %v504_v24  }
 0x10d   : > { %717 = vrot.lane.b32.xlu0 %v605_v13, %s2982_s29 }
 0x110   : > { %638 = vrot.lane.b32.xlu1 %v3167_v25, %s2983_s14 }
 0x111   : > { %729 = vrot.lane.b32.xlu0 %v3170_v26, %s4259_s16 }
 0x114   : > { %640 = vrot.lane.b32.xlu1 %v3170_v26, %s2983_s14 }
 0x115   : > { %741 = vrot.lane.b32.xlu0 %v671_v21, %s4265_s17 }
 0x118   : > { %672 = vrot.lane.b32.xlu1 %v667_v27, %s2986_s21 }
 0x119   : > { %608 = vrot.lane.b32.xlu0 %v605_v13, %s4263_s22 }
 0x11c   : > { %674 = vrot.lane.b32.xlu1 %v671_v21, %s2986_s21 }
 0x11d   : > { %765 = vrot.lane.b32.xlu0 %v2978_v12, %s2988_s23 }
 0x120   : > { %684 = vrot.lane.b32.xlu1 %v601_v28, %s2979_s24 }
 0x121   : > { %799 = vrot.lane.b32.xlu0 %v2978_v12, %s4271_s26 }
 0x124   : > { %703 = vrot.lane.b32.xlu1 %v667_v27, %s2981_s28  ;;  %s4269_s28 = smov 96  }
 0x125   : > { %823 = vrot.lane.b32.xlu0 %v2978_v12, %s4267_s27 }
 0x128   : > { %715 = vrot.lane.b32.xlu1 %v601_v28, %s2982_s29  ;;  %s4261_s29 = smov 94  }
 0x12c   : > { %727 = vrot.lane.b32.xlu1 %v3167_v25, %s4259_s16 }
 0x130   : > { %739 = vrot.lane.b32.xlu1 %v667_v27, %s4265_s17 }
 0x134   : > { %606 = vrot.lane.b32.xlu1 %v601_v28, %s4263_s22 }
 0x138   : > { %754 = vrot.lane.b32.xlu1 %v2978_v12, %s2979_s24 }
 0x13c   : > { %777 = vrot.lane.b32.xlu1 %v2978_v12, %s2983_s14 }
 0x140   : > { %811 = vrot.lane.b32.xlu1 %v2978_v12, %s4269_s28 }
 0x180   : > { %v407_v29 = vpop.permute.xlu0 %406 }
 0x181   : > { %v409_v31 = vmul.f32 %v407_v29, %v3117_v2  ;;  %v410_v32 = vmul.f32 %v407_v29, %v3122_v4 }
 0x183   : > { %v508_v30 = vpop.permute.xlu1 %507 }
 0x184   : > { %v510_v38 = vmul.f32 %v508_v30, %v3111_v0  ;;  %v511_v39 = vmul.f32 %v508_v30, %v3114_v1 }
 0x187   : > { %v414_v33 = vpop.permute.xlu1 %413 }
 0x188   : > { %v3201_v34 = vadd.f32 %v414_v33, %v409_v31  ;;  %v3203_v35 = vadd.f32 %v414_v33, %v410_v32 }
 0x18a   : > { %v3206_v36 = vmul.f32 0.70710677, %v3201_v34  ;;  %v3209_v37 = vmul.f32 0.70710677, %v3203_v35 }
 0x18b   : > { %v515_v40 = vpop.permute.xlu1 %514 }
 0x18c   : > { %v422_v2 = vand.u32 2147483647, %v3206_v36  ;;  %v423_v4 = vand.u32 2147483647, %v3209_v37  ;;  %v3215_v41 = vadd.f32 %v515_v40, %v510_v38  ;;  %v3217_v42 = vadd.f32 %v515_v40, %v511_v39 }
 0x18d   : > { %vm462_vm8 = vcmp.ge.f32.partialorder %v3206_v36, 0.0  ;;  %vm463_vm9 = vcmp.ge.f32.partialorder %v3209_v37, 0.0  ;;  %v418_v36 = vmul.f32 0.5, %v3201_v34  ;;  %v3245_v34 = vpop.permute.xlu0 %686 }
 0x18e   : > { %v424_v43 = vmul.f32 0.3275911, %v422_v2  ;;  %v425_v44 = vmul.f32 0.3275911, %v423_v4  ;;  %v3220_v45 = vmul.f32 0.70710677, %v3215_v41 }
 0x18f   : > { %v3223_v46 = vmul.f32 0.70710677, %v3217_v42  ;;  %v450_v53 = vsub.f32 0.0, %v422_v2  ;;  %v451_v54 = vsub.f32 0.0, %v423_v4  ;;  %v639_v33 = vpop.permute.xlu1 %638  ;;  %v519_v37 = vmul.f32 0.5, %v3215_v41 }
 0x190   : > { %v426_v0 = vadd.f32 1.0, %v424_v43  ;;  %v427_v47 = vadd.f32 1.0, %v425_v44  ;;  %v523_v1 = vand.u32 2147483647, %v3220_v45  ;;  %vm563_vm10 = vcmp.ge.f32.partialorder %v3220_v45, 0.0 }
 0x191   : > { %v524_v48 = vand.u32 2147483647, %v3223_v46  ;;  %v452_v58 = vmul.f32 %v450_v53, %v422_v2  ;;  %v453_v61 = vmul.f32 %v451_v54, %v423_v4  ;;  %vm564_vm11 = vcmp.ge.f32.partialorder %v3223_v46, 0.0 }
 0x192   : > { %2834 = vrcp.f32 %v426_v0  ;;  %v525_v49 = vmul.f32 0.3275911, %v523_v1  ;;  %v551_v62 = vsub.f32 0.0, %v523_v1  ;;  %vm692_vm4 = vcmp.ne.s16.totalorder %v3245_v34, 0 }
 0x193   : > { %2836 = vrcp.f32 %v427_v47  ;;  %v526_v50 = vmul.f32 0.3275911, %v524_v48  ;;  %v552_v3 = vsub.f32 0.0, %v524_v48  ;;  %v454_v7 = vmul.f32 1.442695, %v452_v58 }
 0x194   : > { %v527_v51 = vadd.f32 1.0, %v525_v49  ;;  %v456_v11 = vmul.f32 1.442695, %v453_v61  ;;  %v553_v13 = vmul.f32 %v551_v62, %v523_v1 }
 0x195   : > { %v528_v52 = vadd.f32 1.0, %v526_v50  ;;  %v554_v17 = vmul.f32 %v552_v3, %v524_v48  ;;  %v3227_v50 = vpop.permute.xlu1 %640 }
 0x196   : > { %2838 = vrcp.f32 %v527_v51  ;;  %v555_v27 = vmul.f32 1.442695, %v553_v13  ;;  %vm646_vm0 = vcmp.ne.s16.totalorder %v3227_v50, 0 }
 0x197   : > { %2840 = vrcp.f32 %v528_v52  ;;  %v557_v30 = vmul.f32 1.442695, %v554_v17 }
 0x198   : > { %2842 = vpow2.f32 %v454_v7 }
 0x199   : > { %2844 = vpow2.f32 %v456_v11  ;;  %v673_v13 = vpop.permute.xlu1 %672 }
 0x19a   : > { %2846 = vpow2.f32 %v555_v27 }
 0x19b   : > { %2848 = vpow2.f32 %v557_v30  ;;  %v419_v30 = vmul.f32 0.5, %v3203_v35 }
 0x19c   : > { %v2835_v55 = vpop.eup %2834 }
 0x19d   : > { %v2837_v59 = vpop.eup %2836  ;;  %v432_v60 = vmul.f32 1.0614054, %v2835_v55 }
 0x19e   : > { %v433_v63 = vmul.f32 1.0614054, %v2837_v59 }
 0x19f   : > { %v434_v5 = vadd.f32 -1.4531521, %v432_v60 }
 0x1a0   : > { %v435_v6 = vadd.f32 -1.4531521, %v433_v63  ;;  %v2839_v8 = vpop.eup %2838 }
 0x1a1   : > { %v436_v9 = vmul.f32 %v2835_v55, %v434_v5  ;;  %v2841_v14 = vpop.eup %2840  ;;  %v533_v16 = vmul.f32 1.0614054, %v2839_v8 }
 0x1a2   : > { %v437_v15 = vmul.f32 %v2837_v59, %v435_v6  ;;  %v534_v19 = vmul.f32 1.0614054, %v2841_v14  ;;  %v2843_v51 = vpop.eup %2842 }
 0x1a3   : > { %v438_v18 = vadd.f32 1.4214138, %v436_v9  ;;  %v535_v21 = vadd.f32 -1.4531521, %v533_v16  ;;  %v2845_v54 = vpop.eup %2844 }
 0x1a4   : > { %v439_v20 = vadd.f32 1.4214138, %v437_v15  ;;  %v536_v24 = vadd.f32 -1.4531521, %v534_v19  ;;  %v2847_v7 = vpop.eup %2846 }
 0x1a5   : > { %v440_v23 = vmul.f32 %v2835_v55, %v438_v18  ;;  %v537_v29 = vmul.f32 %v2839_v8, %v535_v21 }
 0x1a6   : > { %v441_v28 = vmul.f32 %v2837_v59, %v439_v20  ;;  %v538_v32 = vmul.f32 %v2841_v14, %v536_v24  ;;  %v3232_v24 = vpop.permute.xlu1 %674 }
 0x1a7   : > { %v442_v31 = vadd.f32 -0.28449672, %v440_v23  ;;  %v539_v39 = vadd.f32 1.4214138, %v537_v29  ;;  %v3251_v35 = vsel %vm676_vm13, %v673_v13, %v3232_v24  ;;  %vm680_vm1 = vcmp.ne.s16.totalorder %v3232_v24, 0 }
 0x1a8   : > { %v443_v38 = vadd.f32 -0.28449672, %v441_v28  ;;  %v540_v2 = vadd.f32 1.4214138, %v538_v32  ;;  %vm679_vm2 = vcmp.ne.s16.totalorder %v3251_v35, 0 }
 0x1a9   : > { %v444_v40 = vmul.f32 %v2835_v55, %v442_v31  ;;  %v541_v43 = vmul.f32 %v2839_v8, %v539_v39  ;;  %v520_v31 = vmul.f32 0.5, %v3217_v42  ;;  %v3241_v39 = vsel %vm4260_vm12, %v639_v33, %v3227_v50 }
 0x1aa   : > { %v445_v4 = vmul.f32 %v2837_v59, %v443_v38  ;;  %v542_v0 = vmul.f32 %v2841_v14, %v540_v2  ;;  %v685_v41 = vpop.permute.xlu1 %684  ;;  %vm645_vm15 = vcmp.ne.s16.totalorder %v3241_v39, 0 }
 0x1ab   : > { %v446_v44 = vadd.f32 0.2548296, %v444_v40  ;;  %v543_v1 = vadd.f32 -0.28449672, %v541_v43  ;;  %v3264_v43 = vsel %vm4256_vm14, %v685_v41, %v3245_v34 }
 0x1ac   : > { %v447_v47 = vadd.f32 0.2548296, %v445_v4  ;;  %v544_v49 = vadd.f32 -0.28449672, %v542_v0  ;;  %vm691_vm3 = vcmp.ne.s16.totalorder %v3264_v43, 0 }
 0x1ad   : > { %v448_v48 = vmul.f32 %v2835_v55, %v446_v44  ;;  %v545_v53 = vmul.f32 %v2839_v8, %v543_v1  ;;  %v2849_v55 = vpop.eup %2848  ;;  %v706_v44 = vpop.permute.xlu0 %705 }
 0x1ae   : > { %v449_v52 = vmul.f32 %v2837_v59, %v447_v47  ;;  %v546_v60 = vmul.f32 %v2841_v14, %v544_v49  ;;  %v3268_v0 = vpop.permute.xlu1 %703 }
 0x1af   : > { %v458_v58 = vmul.f32 %v2843_v51, %v448_v48  ;;  %v547_v62 = vadd.f32 0.2548296, %v545_v53  ;;  %v3293_v53 = vsel %vm707_vm5, %v3268_v0, %v706_v44 }
 0x1b0   : > { %v459_v61 = vmul.f32 %v2845_v54, %v449_v52  ;;  %v548_v3 = vadd.f32 0.2548296, %v546_v60 }
 0x1b1   : > { %v460_v63 = vsub.f32 1.0, %v458_v58  ;;  %v549_v6 = vmul.f32 %v2839_v8, %v547_v62  ;;  %v718_v51 = vpop.permute.xlu0 %717 }
 0x1b2   : > { %v461_v5 = vsub.f32 1.0, %v459_v61  ;;  %v550_v11 = vmul.f32 %v2841_v14, %v548_v3  ;;  %v3288_v52 = vpop.permute.xlu1 %715 }
 0x1b3   : > { %v464_v9 = vsub.f32 0.0, %v460_v63  ;;  %v559_v16 = vmul.f32 %v2847_v7, %v549_v6  ;;  %vm4251_vm13 = vcmp.ne.s16.totalorder %v3288_v52, 0 }
 0x1b4   : > { %v465_v15 = vsub.f32 0.0, %v461_v5  ;;  %v560_v59 = vmul.f32 %v2849_v55, %v550_v11 }
 0x1b5   : > { %v466_v17 = vsel %vm462_vm8, %v460_v63, %v464_v9  ;;  %v561_v18 = vsub.f32 1.0, %v559_v16  ;;  %vm719_vm8 = vcmask 121856   ;;  %v730_v61 = vpop.permute.xlu0 %729 }
 0x1b6   : > { %v467_v19 = vsel %vm463_vm9, %v461_v5, %v465_v15  ;;  %v562_v20 = vsub.f32 1.0, %v560_v59  ;;  %v468_v23 = vadd.f32 1.0, %v466_v17  ;;  %vm4249_vm9 = vcmp.ne.s16.totalorder %v3293_v53, 0  ;;  %v3308_v62 = vpop.permute.xlu1 %727 }
 0x1b7   : > { %v565_v21 = vsub.f32 0.0, %v561_v18  ;;  %v469_v14 = vadd.f32 1.0, %v467_v19  ;;  %v3306_v60 = vsel %vm719_vm8, %v3288_v52, %v718_v51  ;;  %vm743_vm8 = vcmask 138240  }
 0x1b8   : > { %v566_v8 = vsub.f32 0.0, %v562_v20  ;;  %v470_v45 = vmul.f32 %v468_v23, %v418_v36  ;;  %vm4250_vm5 = vcmp.ne.s16.totalorder %v3306_v60, 0 }
 0x1b9   : > { %v567_v27 = vsel %vm563_vm10, %v561_v18, %v565_v21  ;;  %v471_v46 = vmul.f32 %v469_v14, %v419_v30  ;;  %vm4248_vm10 = vcmp.ne.s16.totalorder %v3268_v0, 0  ;;  %v742_v9 = vpop.permute.xlu0 %741 }
 0x1ba   : > { %v568_v28 = vsel %vm564_vm11, %v562_v20, %v566_v8  ;;  %v569_v29 = vadd.f32 1.0, %v567_v27  ;;  %vm4274_vm11 = vcmask 130048   ;;  %v3332_v11 = vpop.permute.xlu1 %739 }
 0x1bb   : > { %v570_v32 = vadd.f32 1.0, %v568_v28  ;;  %v3322_v5 = vsel %vm4274_vm11, %v3308_v62, %v730_v61  ;;  %v3338_v13 = vsel %vm743_vm8, %v3332_v11, %v742_v9 }
 0x1bc   : > { %v571_v38 = vmul.f32 %v569_v29, %v519_v37 }
 0x1bd   : > { %v572_v40 = vmul.f32 %v570_v32, %v520_v31  ;;  %v3350_v16 = vpop.permute.xlu0 %608 }
 0x1be   : > { %v3243_v2 = vpack.c.bf16 %v571_v38, %v470_v45  ;;  %v607_v59 = vpop.permute.xlu1 %606 }
 0x1bf   : > { %v3247_v4 = vpack.c.bf16 %v572_v40, %v471_v46 }
 0x1c0   : > { %v648_v42 = vsel %vm645_vm15, %v3243_v2, 0  ;;  %v682_v1 = vsel %vm679_vm2, %v3243_v2, 0  ;;  %v694_v48 = vsel %vm691_vm3, %v3243_v2, 0  ;;  %v698_v58 = vsel %vm4252_vm7, %v3243_v2, 0 }
 0x1c1   : > { %v649_v33 = vsel %vm646_vm0, %v3247_v4, 0  ;;  %756 = vrot.lane.b32.xlu1 %v648_v42, %s2979_s24  ;;  %v683_v47 = vsel %vm680_vm1, %v3247_v4, 0  ;;  %v695_v49 = vsel %vm692_vm4, %v3247_v4, 0  ;;  %v699_v54 = vsel %vm697_vm6, %v3247_v4, 0  ;;  %v766_v8 = vpop.permute.xlu0 %765 }
 0x1c2   : > { %758 = vrot.lane.b32.xlu0 %v649_v33, %s2979_s24  ;;  %v713_v63 = vsel %vm4249_vm9, %v3247_v4, 0  ;;  %v712_v3 = vsel %vm4248_vm10, %v3243_v2, 0  ;;  %v724_v6 = vsel %vm4251_vm13, %v3243_v2, 0  ;;  %v725_v7 = vsel %vm4250_vm5, %v3247_v4, 0  ;;  %v755_v23 = vpop.permute.xlu1 %754 }
 0x1c3   : > { %vm734_vm10 = vcmp.ne.s16.totalorder %v3322_v5, 0  ;;  %vm4253_vm9 = vcmp.ne.s16.totalorder %v3308_v62, 0  ;;  %vm4254_vm5 = vcmp.ne.s16.totalorder %v3332_v11, 0  ;;  %vm746_vm13 = vcmp.ne.s16.totalorder %v3338_v13, 0 }
 0x1c4   : > { %v737_v55 = vsel %vm734_vm10, %v3247_v4, 0  ;;  %v736_v15 = vsel %vm4253_vm9, %v3243_v2, 0  ;;  %vm4258_vm7 = vcmask 908288   ;;  %v748_v17 = vsel %vm4254_vm5, %v3243_v2, 0 }
 0x1c5   : > { %769 = vrot.lane.b32.xlu1 %v683_v47, %s2988_s23  ;;  %v749_v18 = vsel %vm746_vm13, %v3247_v4, 0  ;;  %v3362_v19 = vsel %vm4258_vm7, %v607_v59, %v3350_v16  ;;  %vm614_vm9 = vcmp.ne.s16.totalorder %v3350_v16, 0  ;;  %v800_v27 = vpop.permute.xlu0 %799 }
 0x1c6   : > { %767 = vrot.lane.b32.xlu0 %v682_v1, %s2988_s23  ;;  %vm4255_vm5 = vcmp.ne.s16.totalorder %v3362_v19, 0  ;;  %v617_v20 = vsel %vm614_vm9, %v3247_v4, 0  ;;  %v778_v14 = vpop.permute.xlu1 %777 }
 0x1c7   : > { %v616_v21 = vsel %vm4255_vm5, %v3243_v2, 0  ;;  %vm4257_vm5 = vcmask 1031168  }
 0x1c9   : > { %779 = vrot.lane.b32.xlu1 %v694_v48, %s2983_s14  ;;  %v824_v37 = vpop.permute.xlu0 %823 }
 0x1ca   : > { %781 = vrot.lane.b32.xlu0 %v695_v49, %s2983_s14  ;;  %v812_v36 = vpop.permute.xlu1 %811 }
 0x1cd   : > { %789 = vrot.lane.b32.xlu1 %v699_v54, %s4263_s22 }
 0x1ce   : > { %787 = vrot.lane.b32.xlu0 %v698_v58, %s4263_s22 }
 0x1d1   : > { %797 = vrot.lane.b32.xlu1 %v713_v63, %s4271_s26 }
 0x1d2   : > { %795 = vrot.lane.b32.xlu0 %v712_v3, %s4271_s26  ;;  %s4301_s26 = smov 96  }
 0x1d5   : > { %807 = vrot.lane.b32.xlu1 %v724_v6, %s4269_s28 }
 0x1d6   : > { %809 = vrot.lane.b32.xlu0 %v725_v7, %s4269_s28  ;;  %s4312_s28 = smov 17  }
 0x1d9   : > { %821 = vrot.lane.b32.xlu1 %v737_v55, %s4267_s27 }
 0x1da   : > { %819 = vrot.lane.b32.xlu0 %v736_v15, %s4267_s27  ;;  %s4302_s27 = smov 95  }
 0x1dd   : > { %831 = vrot.lane.b32.xlu1 %v748_v17, %s4261_s29 }
 0x1de   : > { %833 = vrot.lane.b32.xlu0 %v749_v18, %s4261_s29  ;;  %v2820_v18 = vld [vmem:[%s4241_s3 + $0x4] ss:$8 sps:$4 sm:$0xff]  }
 0x1df   : > { %2686 = vmatprep.mubr.msk.bf16.mxu0 %vm4274_vm11, %v2820_v18 }
 0x1e1   : > { %835 = vrot.lane.b32.xlu1 %v2978_v12, %s4261_s29 }
 0x1e2   : > { %862 = vrot.lane.b32.xlu0 %v2978_v12, %s4265_s17 }
 0x1e5   : > { %866 = vrot.lane.b32.xlu1 %v617_v20, %s4265_s17 }
 0x1e6   : > { %864 = vrot.lane.b32.xlu0 %v616_v21, %s4265_s17 }
 0x233   : > { %v757_v28 = vpop.permute.xlu1 %756 }
 0x234   : > { %v759_v29 = vpop.permute.xlu0 %758  ;;  %v760_v1 = vsel %vm4256_vm14, %v755_v23, %v757_v28 }
 0x235   : > { %872 = vrot.lane.b32.xlu0 %v759_v29, %s4265_s17  ;;  %v761_v42 = vsel %vm4256_vm14, %v757_v28, %v759_v29  ;;  %vm801_vm14 = vcmask 900096  }
 0x237   : > { %v770_v30 = vpop.permute.xlu1 %769 }
 0x238   : > { %v768_v31 = vpop.permute.xlu0 %767  ;;  %878 = vrot.lane.b32.xlu1 %v770_v30, %s4265_s17 }
 0x239   : > { %v773_v44 = vsel %vm4257_vm5, %v768_v31, %v770_v30  ;;  %v772_v49 = vsel %vm4257_vm5, %v766_v8, %v768_v31  ;;  %vm4276_vm5 = vcmask 785408  }
 0x23b   : > { %v780_v32 = vpop.permute.xlu1 %779 }
 0x23c   : > { %v782_v45 = vpop.permute.xlu0 %781  ;;  %v783_v3 = vsel %vm4260_vm12, %v778_v14, %v780_v32 }
 0x23d   : > { %884 = vrot.lane.b32.xlu0 %v782_v45, %s4265_s17  ;;  %v784_v54 = vsel %vm4260_vm12, %v780_v32, %v782_v45  ;;  %vm4273_vm12 = vcmask 769024  }
 0x23f   : > { %v790_v38 = vpop.permute.xlu1 %789 }
 0x240   : > { %v788_v46 = vpop.permute.xlu0 %787  ;;  %890 = vrot.lane.b32.xlu1 %v790_v38, %s4265_s17 }
 0x241   : > { %886 = vrot.lane.b32.xlu0 %v788_v46, %s4265_s17  ;;  %v791_v61 = vsel %vm4258_vm7, %v788_v46, %v790_v38  ;;  %vm4275_vm7 = vcmask 777216  }
 0x243   : > { %v798_v40 = vpop.permute.xlu1 %797 }
 0x244   : > { %v796_v2 = vpop.permute.xlu0 %795  ;;  %v803_v7 = vsel %vm801_vm14, %v798_v40, %v800_v27  ;;  %v576_v27 = vld [vmem:[%s4242_s4 + $0x8] sm:$0xff] }
 0x245   : > { %892 = vrot.lane.b32.xlu1 %v796_v2, %s4265_s17  ;;  %v802_v17 = vsel %vm801_vm14, %v796_v2, %v798_v40 }
 0x247   : > { %v808_v41 = vpop.permute.xlu1 %807 }
 0x248   : > { %v810_v4 = vpop.permute.xlu0 %809  ;;  %898 = vrot.lane.b32.xlu0 %v808_v41, %s4265_s17 }
 0x249   : > { %870 = vrot.lane.b32.xlu1 %v761_v42, %s4265_s17  ;;  %v814_v59 = vsel %vm4276_vm5, %v808_v41, %v810_v4  ;;  %v815_v21 = vsel %vm4276_vm5, %v810_v4, %v812_v36  ;;  %v575_v36 = vld [vmem:[%s4242_s4] sm:$0xff] }
 0x24b   : > { %v822_v33 = vpop.permute.xlu1 %821 }
 0x24c   : > { %v820_v47 = vpop.permute.xlu0 %819  ;;  %876 = vrot.lane.b32.xlu0 %v773_v44, %s4265_s17  ;;  %v827_v20 = vsel %vm4275_vm7, %v822_v33, %v824_v37 }
 0x24d   : > { %868 = vrot.lane.b32.xlu1 %v760_v1, %s4265_s17  ;;  %v826_v8 = vsel %vm4275_vm7, %v820_v47, %v822_v33 }
 0x24f   : > { %v832_v48 = vpop.permute.xlu1 %831 }
 0x250   : > { %v834_v51 = vpop.permute.xlu0 %833  ;;  %874 = vrot.lane.b32.xlu0 %v772_v49, %s4265_s17 }
 0x251   : > { %882 = vrot.lane.b32.xlu1 %v784_v54, %s4265_s17  ;;  %v838_v23 = vsel %vm4273_vm12, %v832_v48, %v834_v51 }
 0x253   : > { %v836_v58 = vpop.permute.xlu1 %835 }
 0x254   : > { %v863_v63 = vpop.permute.xlu0 %862  ;;  %888 = vrot.lane.b32.xlu0 %v791_v61, %s4265_s17  ;;  %v839_v14 = vsel %vm4273_vm12, %v834_v51, %v836_v58 }
 0x255   : > { %880 = vrot.lane.b32.xlu1 %v783_v3, %s4265_s17 }
 0x257   : > { %v867_v6 = vpop.permute.xlu1 %866 }
 0x258   : > { %v865_v9 = vpop.permute.xlu0 %864  ;;  %896 = vrot.lane.b32.xlu0 %v803_v7, %s4265_s17 }
 0x259   : > { %904 = vrot.lane.b32.xlu1 %v820_v47, %s4265_s17  ;;  %v917_v55 = vsel %vm743_vm8, %v865_v9, %v867_v6  ;;  %v916_v15 = vsel %vm743_vm8, %v863_v63, %v865_v9 }
 0x25a   : > { %956 = vmatprep.subr.bf16.mxu0 %v917_v55 }
 0x25b   : > { %957 = vmatpush1.bf16.msra.mxu0 %v916_v15 }
 0x25c   : > { %900 = vrot.lane.b32.xlu0 %v814_v59, %s4265_s17 }
 0x25d   : > { %894 = vrot.lane.b32.xlu1 %v802_v17, %s4265_s17 }
 0x260   : > { %908 = vrot.lane.b32.xlu0 %v827_v20, %s4265_s17 }
 0x261   : > { %902 = vrot.lane.b32.xlu1 %v815_v21, %s4265_s17 }
 0x264   : > { %912 = vrot.lane.b32.xlu0 %v838_v23, %s4265_s17 }
 0x265   : > { %906 = vrot.lane.b32.xlu1 %v826_v8, %s4265_s17 }
 0x268   : > { %910 = vrot.lane.b32.xlu0 %v832_v48, %s4265_s17 }
 0x269   : > { %914 = vrot.lane.b32.xlu1 %v839_v14, %s4265_s17  ;;  %s4300_s17 = smov 110  }
 0x26c   : > { %847 = vperm.xlu0 %2816, %v576_v27  }
 0x26d   : > { %842 = vperm.xlu1 %2817, %v575_v36   ;;  %v2818_v36 = vld [vmem:[%s4241_s3] ss:$8 sps:$4 sm:$0xff]  }
 0x2a7   : > { %v873_v37 = vpop.permute.xlu0 %872 }
 0x2aa   : > { %v879_v28 = vpop.permute.xlu1 %878 }
 0x2af   : > { %v885_v29 = vpop.permute.xlu0 %884 }
 0x2b2   : > { %v891_v30 = vpop.permute.xlu1 %890 }
 0x2b3   : > { %v887_v31 = vpop.permute.xlu0 %886 }
 0x2b7   : > { %v893_v32 = vpop.permute.xlu1 %892 }
 0x2ba   : > { %v899_v45 = vpop.permute.xlu0 %898 }
 0x2bb   : > { %v871_v38 = vpop.permute.xlu1 %870 }
 0x2bc   : > { %v919_v46 = vsel %vm743_vm8, %v871_v38, %v873_v37 }
 0x2bd   : > { %958 = vmatprep.subr.bf16.mxu0 %v919_v46 }
 0x2be   : > { %v877_v40 = vpop.permute.xlu0 %876 }
 0x2bf   : > { %v869_v2 = vpop.permute.xlu1 %868  ;;  %v921_v41 = vsel %vm743_vm8, %v877_v40, %v879_v28 }
 0x2c0   : > { %v918_v4 = vsel %vm743_vm8, %v869_v2, %v871_v38 }
 0x2c1   : > { %959 = vmatpush1.bf16.msra.mxu0 %v918_v4 }
 0x2c2   : > { %960 = vmatprep.subr.bf16.mxu0 %v921_v41  ;;  %v875_v42 = vpop.permute.xlu0 %874 }
 0x2c3   : > { %v883_v33 = vpop.permute.xlu1 %882  ;;  %v920_v44 = vsel %vm743_vm8, %v875_v42, %v877_v40 }
 0x2c4   : > { %v923_v47 = vsel %vm743_vm8, %v883_v33, %v885_v29 }
 0x2c5   : > { %961 = vmatpush1.bf16.msra.mxu0 %v920_v44 }
 0x2c6   : > { %962 = vmatprep.subr.bf16.mxu0 %v923_v47  ;;  %v889_v1 = vpop.permute.xlu0 %888 }
 0x2c7   : > { %v881_v48 = vpop.permute.xlu1 %880  ;;  %v925_v49 = vsel %vm743_vm8, %v889_v1, %v891_v30  ;;  %v924_v61 = vsel %vm743_vm8, %v887_v31, %v889_v1 }
 0x2c8   : > { %v922_v51 = vsel %vm743_vm8, %v881_v48, %v883_v33 }
 0x2c9   : > { %963 = vmatpush1.bf16.msra.mxu0 %v922_v51 }
 0x2ca   : > { %964 = vmatprep.subr.bf16.mxu0 %v925_v49  ;;  %v897_v54 = vpop.permute.xlu0 %896 }
 0x2cb   : > { %v905_v58 = vpop.permute.xlu1 %904 }
 0x2cd   : > { %965 = vmatpush1.bf16.msra.mxu0 %v924_v61 }
 0x2ce   : > { %v901_v63 = vpop.permute.xlu0 %900 }
 0x2cf   : > { %v895_v3 = vpop.permute.xlu1 %894  ;;  %v928_v59 = vsel %vm743_vm8, %v899_v45, %v901_v63 }
 0x2d0   : > { %v927_v6 = vsel %vm743_vm8, %v895_v3, %v897_v54  ;;  %v926_v7 = vsel %vm743_vm8, %v893_v32, %v895_v3 }
 0x2d1   : > { %966 = vmatprep.subr.bf16.mxu0 %v927_v6 }
 0x2d2   : > { %967 = vmatpush1.bf16.msra.mxu0 %v926_v7  ;;  %v909_v9 = vpop.permute.xlu0 %908 }
 0x2d3   : > { %v903_v55 = vpop.permute.xlu1 %902 }
 0x2d4   : > { %v929_v15 = vsel %vm743_vm8, %v901_v63, %v903_v55 }
 0x2d5   : > { %968 = vmatprep.subr.bf16.mxu0 %v929_v15 }
 0x2d6   : > { %969 = vmatpush1.bf16.msra.mxu0 %v928_v59  ;;  %v913_v17 = vpop.permute.xlu0 %912 }
 0x2d7   : > { %v907_v18 = vpop.permute.xlu1 %906 }
 0x2d8   : > { %v931_v20 = vsel %vm743_vm8, %v907_v18, %v909_v9  ;;  %v930_v21 = vsel %vm743_vm8, %v905_v58, %v907_v18 }
 0x2d9   : > { %970 = vmatprep.subr.bf16.mxu0 %v931_v20 }
 0x2da   : > { %971 = vmatpush1.bf16.msra.mxu0 %v930_v21  ;;  %v911_v23 = vpop.permute.xlu0 %910 }
 0x2db   : > { %v915_v8 = vpop.permute.xlu1 %914  ;;  %v932_v14 = vsel %vm743_vm8, %v911_v23, %v913_v17 }
 0x2dc   : > { %v933_v27 = vsel %vm743_vm8, %v913_v17, %v915_v8 }
 0x2dd   : > { %972 = vmatprep.subr.bf16.mxu0 %v933_v27 }
 0x2de   : > { %973 = vmatpush1.bf16.msra.mxu0 %v932_v14 }
 0x2e1   : > { %989 = vmatmul.mubr.bf16.vlgmr.msra.gmra.mrb[0].mxu0 %v2818_v36 }
 0x2eb   : > { %v848_v31 = vpop.permute.xlu0 %847 }
 0x2ec   : > { %v843_v37 = vpop.permute.xlu1 %842 }
 0x3b4   : > { %v990_v28 = vpop.f32.mrb[0].mxu0 }
 0x3b5   : > { %v3448_v29 = vadd.f32 %v990_v28, %v843_v37  ;;  %v992_v30 = vpop.f32.mrb[1].mxu0 }
 0x3b6   : > { %v3450_v32 = vadd.f32 %v992_v30, %v843_v37  ;;  %v994_v45 = vpop.f32.mrb[2].mxu0 }
 0x3b7   : > { %v3452_v38 = vadd.f32 %v994_v45, %v848_v31  ;;  %v996_v46 = vpop.f32.mrb[3].mxu0  ;;  %v1015_v40 = vmul.f32 %v3448_v29, %v3448_v29 }
 0x3b8   : > { %v3456_v2 = vadd.f32 %v996_v46, %v848_v31  ;;  %v1003_v41 = vadd.f32 %v3450_v32, %v3448_v29  ;;  %v1016_v4 = vmul.f32 %v3450_v32, %v3450_v32 }
 0x3b9   : > { %v1116_v42 = vmul.f32 %v3452_v38, %v3452_v38 }
 0x3ba   : > { %1004 = vadd.xlane.f32.xlu1 %v1003_v41  ;;  %v1017_v33 = vadd.f32 %v1016_v4, %v1015_v40  ;;  %v1117_v44 = vmul.f32 %v3456_v2, %v3456_v2  ;;  %v1104_v1 = vadd.f32 %v3456_v2, %v3452_v38 }
 0x3bc   : > { %1018 = vadd.xlane.f32.xlu0 %v1017_v33  ;;  %v1118_v47 = vadd.f32 %v1117_v44, %v1116_v42 }
 0x3be   : > { %1119 = vadd.xlane.f32.xlu1 %v1118_v47 }
 0x3c0   : > { %1105 = vadd.xlane.f32.xlu0 %v1104_v1 }
 0x447   : > { %v1005_v48 = vpop.xlane.xlu1 %1004 }
 0x448   : > { %v1006_v49 = vrot.slane %v1005_v48, 4 }
 0x449   : > { %v1019_v51 = vpop.xlane.xlu0 %1018 }
 0x44a   : > { %v1007_v54 = vadd.f32 %v1006_v49, %v1005_v48  ;;  %v1020_v58 = vrot.slane %v1019_v51, 4 }
 0x44b   : > { %v1120_v61 = vpop.xlane.xlu1 %1119 }
 0x44c   : > { %v1021_v63 = vadd.f32 %v1020_v58, %v1019_v51  ;;  %v1121_v3 = vrot.slane %v1120_v61, 4  ;;  %v1008_v6 = vrot.slane %v1007_v54, 2 }
 0x44d   : > { %v1106_v7 = vpop.xlane.xlu0 %1105 }
 0x44e   : > { %v1122_v9 = vadd.f32 %v1121_v3, %v1120_v61  ;;  %v1107_v55 = vrot.slane %v1106_v7, 4  ;;  %v1009_v15 = vadd.f32 %v1008_v6, %v1007_v54  ;;  %v1022_v59 = vrot.slane %v1021_v63, 2  ;;  %v999_v61 = vld [vmem:[%s4243_s5] sm:$0xff]  ;;  %v1000_v6 = vld [vmem:[%s4243_s5 + $0x8] sm:$0xff] }
 0x450   : > { %v1108_v17 = vadd.f32 %v1107_v55, %v1106_v7  ;;  %v1010_v18 = vrot.slane %v1009_v15, 1  ;;  %v1023_v20 = vadd.f32 %v1022_v59, %v1021_v63  ;;  %v1123_v21 = vrot.slane %v1122_v9, 2  ;;  %v1002_v59 = vld [vmem:[%s4244_s6 + $0x8] sm:$0xff] }
 0x452   : > { %v1011_v23 = vadd.f32 %v1010_v18, %v1009_v15  ;;  %v1024_v8 = vrot.slane %v1023_v20, 1  ;;  %v1109_v14 = vrot.slane %v1108_v17, 2  ;;  %v1124_v27 = vadd.f32 %v1123_v21, %v1122_v9  ;;  %v1001_v15 = vld [vmem:[%s4244_s6] sm:$0xff] }
 0x454   : > { %2727 = vpush %v1011_v23  ;;  %v1025_v36 = vadd.f32 %v1024_v8, %v1023_v20  ;;  %v1110_v37 = vadd.f32 %v1109_v14, %v1108_v17  ;;  %v1125_v28 = vrot.slane %v1124_v27, 1 }
 0x456   : > { %2729 = vpush %v1025_v36  ;;  %v1111_v30 = vrot.slane %v1110_v37, 1  ;;  %v1126_v45 = vadd.f32 %v1125_v28, %v1124_v27 }
 0x458   : > { %v1112_v31 = vadd.f32 %v1111_v30, %v1110_v37 }
 0x45a   : > { %2731 = vpush %v1112_v31 }
 0x45b   : > { %2733 = vpush %v1126_v45 }
 0x485   : > { %s2728_s16 = spop %2727 }
 0x486   : > { %v1013_v46 = vstv %s2728_s16 }
 0x487   : > { %v1014_v40 = vmul.f32 0.00048828125, %v1013_v46  ;;  %s2730_s21 = spop %2729 }
 0x488   : > { %v1027_v41 = vstv %s2730_s21 }
 0x489   : > { %v1029_v4 = vmul.f32 %v1014_v40, %v1014_v40  ;;  %v1028_v42 = vmul.f32 0.00048828125, %v1027_v41 }
 0x48b   : > { %v1030_v33 = vsub.f32 %v1028_v42, %v1029_v4  ;;  %s2732_s22 = spop %2731 }
 0x48c   : > { %v1114_v44 = vstv %s2732_s22  ;;  %s2734_s29 = spop %2733 }
 0x48d   : > { %v1031_v47 = vadd.f32 1e-05, %v1030_v33  ;;  %v1115_v1 = vmul.f32 0.00048828125, %v1114_v44  ;;  %v1128_v48 = vstv %s2734_s29  ;;  %s2994_s29 = smov 2  }
 0x48e   : > { %v1129_v51 = vmul.f32 0.00048828125, %v1128_v48 }
 0x48f   : > { %2850 = vrsqrt.f32 %v1031_v47  ;;  %v1130_v49 = vmul.f32 %v1115_v1, %v1115_v1 }
 0x491   : > { %v1131_v54 = vsub.f32 %v1129_v51, %v1130_v49 }
 0x493   : > { %v1132_v58 = vadd.f32 1e-05, %v1131_v54 }
 0x495   : > { %2852 = vrsqrt.f32 %v1132_v58 }
 0x499   : > { %v2851_v63 = vpop.eup %2850 }
 0x49a   : > { %v1033_v3 = vmul.f32 %v2851_v63, %v999_v61 }
 0x49c   : > { %1038 = vperm.xlu0 %2816, %v1033_v3   ;;  %v1034_v55 = vmul.f32 %v1033_v3, %v1014_v40 }
 0x49e   : > { %v1035_v18 = vsub.f32 %v1001_v15, %v1034_v55 }
 0x49f   : > { %v2853_v7 = vpop.eup %2852 }
 0x4a0   : > { %v1134_v9 = vmul.f32 %v2853_v7, %v1000_v6 }
 0x4a2   : > { %1139 = vperm.xlu1 %2817, %v1134_v9   ;;  %v1135_v17 = vmul.f32 %v1134_v9, %v1115_v1 }
 0x4a4   : > { %v1136_v20 = vsub.f32 %v1002_v59, %v1135_v17 }
 0x4a6   : > { %1045 = vperm.xlu1 %2817, %v1035_v18   ;;  %1146 = vperm.xlu0 %2816, %v1136_v20  }
 0x4aa   : > { %1248 = vrot.lane.b32.xlu1 %v2978_v12, %s2979_s24  ;;  %1259 = vrot.lane.b32.xlu0 %v2978_v12, %s2988_s23 }
 0x4ae   : > { %1270 = vrot.lane.b32.xlu1 %v2978_v12, %s2983_s14  ;;  %1292 = vrot.lane.b32.xlu0 %v2978_v12, %s4300_s17 }
 0x4b2   : > { %1303 = vrot.lane.b32.xlu1 %v2978_v12, %s4301_s26  ;;  %1314 = vrot.lane.b32.xlu0 %v2978_v12, %s4302_s27 }
 0x51b   : > { %v1039_v21 = vpop.permute.xlu0 %1038 }
 0x51c   : > { %v1041_v8 = vmul.f32 %v1039_v21, %v3448_v29  ;;  %v1042_v14 = vmul.f32 %v1039_v21, %v3450_v32 }
 0x521   : > { %v1140_v23 = vpop.permute.xlu1 %1139 }
 0x522   : > { %v1142_v27 = vmul.f32 %v1140_v23, %v3452_v38  ;;  %v1143_v36 = vmul.f32 %v1140_v23, %v3456_v2 }
 0x525   : > { %v1046_v37 = vpop.permute.xlu1 %1045  ;;  %v1147_v28 = vpop.permute.xlu0 %1146 }
 0x526   : > { %v3496_v30 = vadd.f32 %v1046_v37, %v1041_v8  ;;  %v3498_v31 = vadd.f32 %v1046_v37, %v1042_v14  ;;  %v3500_v45 = vadd.f32 %v1147_v28, %v1142_v27  ;;  %v3502_v46 = vadd.f32 %v1147_v28, %v1143_v36 }
 0x528   : > { %v3505_v40 = vmul.f32 0.70710677, %v3496_v30  ;;  %v3508_v29 = vmul.f32 0.70710677, %v3498_v31  ;;  %v3511_v32 = vmul.f32 0.70710677, %v3500_v45 }
 0x529   : > { %v3514_v38 = vmul.f32 0.70710677, %v3502_v46  ;;  %v1260_v13 = vpop.permute.xlu0 %1259 }
 0x52a   : > { %v1054_v2 = vand.u32 2147483647, %v3505_v40  ;;  %v1055_v41 = vand.u32 2147483647, %v3508_v29  ;;  %v1155_v4 = vand.u32 2147483647, %v3511_v32 }
 0x52b   : > { %v1156_v42 = vand.u32 2147483647, %v3514_v38  ;;  %vm1094_vm12 = vcmp.ge.f32.partialorder %v3505_v40, 0.0  ;;  %vm1095_vm11 = vcmp.ge.f32.partialorder %v3508_v29, 0.0  ;;  %vm1195_vm7 = vcmp.ge.f32.partialorder %v3511_v32, 0.0 }
 0x52c   : > { %v1056_v33 = vmul.f32 0.3275911, %v1054_v2  ;;  %v1057_v44 = vmul.f32 0.3275911, %v1055_v41  ;;  %v1157_v47 = vmul.f32 0.3275911, %v1155_v4 }
 0x52d   : > { %v1158_v1 = vmul.f32 0.3275911, %v1156_v42  ;;  %v1082_v58 = vsub.f32 0.0, %v1054_v2  ;;  %v1083_v61 = vsub.f32 0.0, %v1055_v41  ;;  %v1183_v6 = vsub.f32 0.0, %v1155_v4 }
 0x52e   : > { %v1058_v48 = vadd.f32 1.0, %v1056_v33  ;;  %v1059_v49 = vadd.f32 1.0, %v1057_v44  ;;  %v1159_v51 = vadd.f32 1.0, %v1157_v47  ;;  %v1184_v15 = vsub.f32 0.0, %v1156_v42 }
 0x52f   : > { %v1160_v54 = vadd.f32 1.0, %v1158_v1  ;;  %v1084_v3 = vmul.f32 %v1082_v58, %v1054_v2  ;;  %v1085_v55 = vmul.f32 %v1083_v61, %v1055_v41  ;;  %v1185_v23 = vmul.f32 %v1183_v6, %v1155_v4 }
 0x530   : > { %2854 = vrcp.f32 %v1058_v48  ;;  %v1186_v37 = vmul.f32 %v1184_v15, %v1156_v42  ;;  %vm1196_vm5 = vcmp.ge.f32.partialorder %v3514_v38, 0.0  ;;  %v1151_v29 = vmul.f32 0.5, %v3500_v45 }
 0x531   : > { %2856 = vrcp.f32 %v1059_v49  ;;  %v1086_v21 = vmul.f32 1.442695, %v1084_v3  ;;  %v1088_v27 = vmul.f32 1.442695, %v1085_v55  ;;  %v1187_v41 = vmul.f32 1.442695, %v1185_v23 }
 0x532   : > { %2858 = vrcp.f32 %v1159_v51  ;;  %v1189_v51 = vmul.f32 1.442695, %v1186_v37 }
 0x533   : > { %2860 = vrcp.f32 %v1160_v54 }
 0x534   : > { %2862 = vpow2.f32 %v1086_v21 }
 0x535   : > { %2864 = vpow2.f32 %v1088_v27 }
 0x536   : > { %2866 = vpow2.f32 %v1187_v41 }
 0x537   : > { %2868 = vpow2.f32 %v1189_v51 }
 0x53a   : > { %v2855_v63 = vpop.eup %2854 }
 0x53b   : > { %v2857_v7 = vpop.eup %2856  ;;  %v1064_v9 = vmul.f32 1.0614054, %v2855_v63 }
 0x53c   : > { %v1065_v59 = vmul.f32 1.0614054, %v2857_v7  ;;  %v2859_v18 = vpop.eup %2858 }
 0x53d   : > { %v1066_v17 = vadd.f32 -1.4531521, %v1064_v9  ;;  %v2861_v8 = vpop.eup %2860  ;;  %v1165_v36 = vmul.f32 1.0614054, %v2859_v18 }
 0x53e   : > { %v1067_v20 = vadd.f32 -1.4531521, %v1065_v59  ;;  %v1166_v33 = vmul.f32 1.0614054, %v2861_v8  ;;  %v2863_v27 = vpop.eup %2862 }
 0x53f   : > { %v1068_v14 = vmul.f32 %v2855_v63, %v1066_v17  ;;  %v1167_v2 = vadd.f32 -1.4531521, %v1165_v36 }
 0x540   : > { %v1069_v28 = vmul.f32 %v2857_v7, %v1067_v20  ;;  %v1168_v1 = vadd.f32 -1.4531521, %v1166_v33 }
 0x541   : > { %v1070_v44 = vadd.f32 1.4214138, %v1068_v14  ;;  %v1169_v49 = vmul.f32 %v2859_v18, %v1167_v2 }
 0x542   : > { %v1071_v47 = vadd.f32 1.4214138, %v1069_v28  ;;  %v1170_v58 = vmul.f32 %v2861_v8, %v1168_v1  ;;  %v2865_v28 = vpop.eup %2864 }
 0x543   : > { %v1072_v48 = vmul.f32 %v2855_v63, %v1070_v44  ;;  %v1171_v61 = vadd.f32 1.4214138, %v1169_v49 }
 0x544   : > { %v1073_v54 = vmul.f32 %v2857_v7, %v1071_v47  ;;  %v1172_v6 = vadd.f32 1.4214138, %v1170_v58 }
 0x545   : > { %v1074_v4 = vadd.f32 -0.28449672, %v1072_v48  ;;  %v1173_v9 = vmul.f32 %v2859_v18, %v1171_v61  ;;  %v2867_v48 = vpop.eup %2866 }
 0x546   : > { %v1075_v3 = vadd.f32 -0.28449672, %v1073_v54  ;;  %v1174_v15 = vmul.f32 %v2861_v8, %v1172_v6  ;;  %v2869_v54 = vpop.eup %2868 }
 0x547   : > { %v1076_v42 = vmul.f32 %v2855_v63, %v1074_v4  ;;  %v1175_v17 = vadd.f32 -0.28449672, %v1173_v9 }
 0x548   : > { %v1077_v55 = vmul.f32 %v2857_v7, %v1075_v3  ;;  %v1176_v21 = vadd.f32 -0.28449672, %v1174_v15 }
 0x549   : > { %v1078_v59 = vadd.f32 0.2548296, %v1076_v42  ;;  %v1177_v14 = vmul.f32 %v2859_v18, %v1175_v17 }
 0x54a   : > { %v1079_v20 = vadd.f32 0.2548296, %v1077_v55  ;;  %v1178_v37 = vmul.f32 %v2861_v8, %v1176_v21 }
 0x54b   : > { %v1080_v23 = vmul.f32 %v2855_v63, %v1078_v59  ;;  %v1179_v44 = vadd.f32 0.2548296, %v1177_v14  ;;  %v1051_v59 = vmul.f32 0.5, %v3498_v31  ;;  %v1152_v14 = vmul.f32 0.5, %v3502_v46 }
 0x54c   : > { %v1081_v36 = vmul.f32 %v2857_v7, %v1079_v20  ;;  %v1180_v47 = vadd.f32 0.2548296, %v1178_v37 }
 0x54d   : > { %v1090_v33 = vmul.f32 %v2863_v27, %v1080_v23  ;;  %v1181_v41 = vmul.f32 %v2859_v18, %v1179_v44  ;;  %v1050_v18 = vmul.f32 0.5, %v3496_v30 }
 0x54e   : > { %v1091_v2 = vmul.f32 %v2865_v28, %v1081_v36  ;;  %v1182_v51 = vmul.f32 %v2861_v8, %v1180_v47 }
 0x54f   : > { %v1092_v1 = vsub.f32 1.0, %v1090_v33  ;;  %v1191_v4 = vmul.f32 %v2867_v48, %v1181_v41 }
 0x550   : > { %v1093_v49 = vsub.f32 1.0, %v1091_v2  ;;  %v1192_v61 = vmul.f32 %v2869_v54, %v1182_v51  ;;  %v1293_v2 = vpop.permute.xlu0 %1292 }
 0x551   : > { %v1096_v58 = vsub.f32 0.0, %v1092_v1  ;;  %v1193_v3 = vsub.f32 1.0, %v1191_v4 }
 0x552   : > { %v1097_v63 = vsub.f32 0.0, %v1093_v49  ;;  %v1194_v9 = vsub.f32 1.0, %v1192_v61 }
 0x553   : > { %v1098_v7 = vsel %vm1094_vm12, %v1092_v1, %v1096_v58  ;;  %v1197_v15 = vsub.f32 0.0, %v1193_v3  ;;  %vm4303_vm12 = vcmp.ne.s16.totalorder %v3167_v25, 0 }
 0x554   : > { %v1099_v6 = vsel %vm1095_vm11, %v1093_v49, %v1097_v63  ;;  %v1100_v42 = vadd.f32 1.0, %v1098_v7  ;;  %v1198_v8 = vsub.f32 0.0, %v1194_v9  ;;  %v1315_v1 = vpop.permute.xlu0 %1314 }
 0x555   : > { %v1101_v55 = vadd.f32 1.0, %v1099_v6  ;;  %v1199_v40 = vsel %vm1195_vm7, %v1193_v3, %v1197_v15  ;;  %vm4313_vm7 = vcmp.ne.s16.totalorder %v3362_v19, 0 }
 0x556   : > { %v1102_v17 = vmul.f32 %v1100_v42, %v1050_v18  ;;  %v1200_v20 = vsel %vm1196_vm5, %v1194_v9, %v1198_v8  ;;  %v1201_v21 = vadd.f32 1.0, %v1199_v40  ;;  %vm4318_vm5 = vcmask 916480  }
 0x557   : > { %v1103_v23 = vmul.f32 %v1101_v55, %v1051_v59  ;;  %v1202_v27 = vadd.f32 1.0, %v1200_v20 }
 0x558   : > { %v1203_v36 = vmul.f32 %v1201_v21, %v1151_v29 }
 0x559   : > { %v1204_v37 = vmul.f32 %v1202_v27, %v1152_v14 }
 0x55a   : > { %v1209_v30 = vpack.c.bf16 %v1203_v36, %v1102_v17 }
 0x55b   : > { %v1210_v28 = vpack.c.bf16 %v1204_v37, %v1103_v23 }
 0x55c   : > { %v1220_v32 = vsel %vm645_vm15, %v1209_v30, 0  ;;  %v1223_v46 = vsel %vm679_vm2, %v1209_v30, 0  ;;  %v1226_v39 = vsel %vm691_vm3, %v1209_v30, 0  ;;  %v1228_v35 = vsel %vm4303_vm12, %v1209_v30, 0 }
 0x55d   : > { %v1221_v31 = vsel %vm646_vm0, %v1210_v28, 0  ;;  %1250 = vrot.lane.b32.xlu1 %v1220_v32, %s2979_s24  ;;  %v1224_v45 = vsel %vm680_vm1, %v1210_v28, 0  ;;  %v1227_v50 = vsel %vm692_vm4, %v1210_v28, 0  ;;  %v1229_v24 = vsel %vm697_vm6, %v1210_v28, 0 }
 0x55e   : > { %1252 = vrot.lane.b32.xlu0 %v1221_v31, %s2979_s24  ;;  %s4304_s24 = smov 111   ;;  %vm4305_vm15 = vcmp.ne.s16.totalorder %v3293_v53, 0  ;;  %vm4306_vm0 = vcmp.ne.s16.totalorder %v3268_v0, 0  ;;  %vm4307_vm1 = vcmp.ne.s16.totalorder %v3288_v52, 0  ;;  %vm4308_vm2 = vcmp.ne.s16.totalorder %v3306_v60, 0 }
 0x55f   : > { %v1234_v43 = vsel %vm4305_vm15, %v1210_v28, 0  ;;  %v1233_v34 = vsel %vm4306_vm0, %v1209_v30, 0  ;;  %v1236_v38 = vsel %vm4307_vm1, %v1209_v30, 0  ;;  %v1237_v33 = vsel %vm4308_vm2, %v1210_v28, 0  ;;  %vm4320_vm15 = vmmov %vm4318_vm5 }
 0x560   : > { %v1240_v53 = vsel %vm734_vm10, %v1210_v28, 0  ;;  %vm4309_vm3 = vcmp.ne.s16.totalorder %v3308_v62, 0  ;;  %vm4310_vm4 = vcmp.ne.s16.totalorder %v3332_v11, 0  ;;  %v1243_v60 = vsel %vm746_vm13, %v1210_v28, 0  ;;  %v1249_v11 = vpop.permute.xlu1 %1248 }
 0x561   : > { %1263 = vrot.lane.b32.xlu1 %v1224_v45, %s2988_s23  ;;  %v1239_v0 = vsel %vm4309_vm3, %v1209_v30, 0  ;;  %v1242_v52 = vsel %vm4310_vm4, %v1209_v30, 0  ;;  %v1218_v62 = vsel %vm614_vm9, %v1210_v28, 0  ;;  %v1217_v5 = vsel %vm4313_vm7, %v1209_v30, 0  ;;  %v2823_v28 = vld [vmem:[%s4245_s7 + $0x4] ss:$8 sps:$4 sm:$0xff]  }
 0x562   : > { %1261 = vrot.lane.b32.xlu0 %v1223_v46, %s2988_s23  ;;  %vm4314_vm9 = vcmask 1039360   ;;  %vm4315_vm10 = vcmask 1031168   ;;  %vm4319_vm12 = vcmask 908288   ;;  %vm4321_vm0 = vcmask 785408  }
 0x563   : > { %vm4316_vm11 = vmmov %vm4314_vm9  ;;  %vm4322_vm1 = vcmask 777216   ;;  %vm4324_vm3 = vcmask 130048   ;;  %vm4325_vm4 = vcmask 769024  }
 0x564   : > { %v1271_v44 = vpop.permute.xlu1 %1270  ;;  %vm4317_vm13 = vmmov %vm4315_vm10  ;;  %2689 = vmatprep.mubr.msk.bf16.mxu1 %vm4324_vm3, %v2823_v28 }
 0x565   : > { %1272 = vrot.lane.b32.xlu1 %v1226_v39, %s2983_s14  ;;  %vm4323_vm2 = vmmov %vm4321_vm0 }
 0x566   : > { %1274 = vrot.lane.b32.xlu0 %v1227_v50, %s2983_s14  ;;  %s4311_s14 = smov 94   ;;  %vm4326_vm7 = vmmov %vm4322_vm1  ;;  %v1208_v50 = vld [vmem:[%s4246_s8 + $0x8] sm:$0xff] }
 0x568   : > { %v1304_v47 = vpop.permute.xlu1 %1303 }
 0x569   : > { %1282 = vrot.lane.b32.xlu1 %v1229_v24, %s4304_s24  ;;  %v1207_v24 = vld [vmem:[%s4246_s8] sm:$0xff] }
 0x56a   : > { %1280 = vrot.lane.b32.xlu0 %v1228_v35, %s4304_s24  ;;  %s4287_s24 = smov 34  }
 0x56d   : > { %1290 = vrot.lane.b32.xlu1 %v1234_v43, %s4300_s17 }
 0x56e   : > { %1288 = vrot.lane.b32.xlu0 %v1233_v34, %s4300_s17  ;;  %s2995_s17 = smov 30  }
 0x571   : > { %1299 = vrot.lane.b32.xlu1 %v1236_v38, %s4301_s26 }
 0x572   : > { %1301 = vrot.lane.b32.xlu0 %v1237_v33, %s4301_s26 }
 0x575   : > { %1312 = vrot.lane.b32.xlu1 %v1240_v53, %s4302_s27 }
 0x576   : > { %1310 = vrot.lane.b32.xlu0 %v1239_v0, %s4302_s27  ;;  %s2996_s27 = smov 32  }
 0x579   : > { %1321 = vrot.lane.b32.xlu1 %v1242_v52, %s4311_s14 }
 0x57a   : > { %1323 = vrot.lane.b32.xlu0 %v1243_v60, %s4311_s14 }
 0x57d   : > { %1325 = vrot.lane.b32.xlu1 %v2978_v12, %s4311_s14 }
 0x57e   : > { %1351 = vrot.lane.b32.xlu0 %v2978_v12, %s4312_s28 }
 0x581   : > { %1355 = vrot.lane.b32.xlu1 %v1218_v62, %s4312_s28 }
 0x582   : > { %1353 = vrot.lane.b32.xlu0 %v1217_v5, %s4312_s28 }
 0x5cf   : > { %v1251_v41 = vpop.permute.xlu1 %1250 }
 0x5d0   : > { %v1253_v48 = vpop.permute.xlu0 %1252  ;;  %v1254_v55 = vsel %vm4316_vm11, %v1249_v11, %v1251_v41 }
 0x5d1   : > { %1361 = vrot.lane.b32.xlu0 %v1253_v48, %s4312_s28  ;;  %v1255_v3 = vsel %vm4314_vm9, %v1251_v41, %v1253_v48 }
 0x5d3   : > { %v1264_v49 = vpop.permute.xlu1 %1263 }
 0x5d4   : > { %v1262_v16 = vpop.permute.xlu0 %1261  ;;  %1367 = vrot.lane.b32.xlu1 %v1264_v49, %s4312_s28 }
 0x5d5   : > { %v1266_v42 = vsel %vm4315_vm10, %v1262_v16, %v1264_v49  ;;  %v1265_v18 = vsel %vm4317_vm13, %v1260_v13, %v1262_v16 }
 0x5d7   : > { %v1273_v51 = vpop.permute.xlu1 %1272 }
 0x5d8   : > { %v1275_v54 = vpop.permute.xlu0 %1274  ;;  %v1276_v20 = vsel %vm4320_vm15, %v1271_v44, %v1273_v51 }
 0x5d9   : > { %1373 = vrot.lane.b32.xlu0 %v1275_v54, %s4312_s28  ;;  %v1277_v59 = vsel %vm4318_vm5, %v1273_v51, %v1275_v54 }
 0x5db   : > { %v1283_v19 = vpop.permute.xlu1 %1282 }
 0x5dc   : > { %v1281_v58 = vpop.permute.xlu0 %1280  ;;  %1379 = vrot.lane.b32.xlu1 %v1283_v19, %s4312_s28 }
 0x5dd   : > { %1375 = vrot.lane.b32.xlu0 %v1281_v58, %s4312_s28  ;;  %v1284_v17 = vsel %vm4319_vm12, %v1281_v58, %v1283_v19 }
 0x5df   : > { %v1291_v4 = vpop.permute.xlu1 %1290 }
 0x5e0   : > { %v1289_v63 = vpop.permute.xlu0 %1288  ;;  %v1295_v23 = vsel %vm801_vm14, %v1291_v4, %v1293_v2 }
 0x5e1   : > { %1381 = vrot.lane.b32.xlu1 %v1289_v63, %s4312_s28  ;;  %v1294_v30 = vsel %vm801_vm14, %v1289_v63, %v1291_v4  ;;  %vm4327_vm14 = vmmov %vm4325_vm4 }
 0x5e3   : > { %v1300_v61 = vpop.permute.xlu1 %1299 }
 0x5e4   : > { %v1302_v7 = vpop.permute.xlu0 %1301  ;;  %1387 = vrot.lane.b32.xlu0 %v1300_v61, %s4312_s28 }
 0x5e5   : > { %1359 = vrot.lane.b32.xlu1 %v1255_v3, %s4312_s28  ;;  %v1305_v37 = vsel %vm4321_vm0, %v1300_v61, %v1302_v7  ;;  %v1306_v31 = vsel %vm4323_vm2, %v1302_v7, %v1304_v47 }
 0x5e7   : > { %v1313_v6 = vpop.permute.xlu1 %1312 }
 0x5e8   : > { %v1311_v9 = vpop.permute.xlu0 %1310  ;;  %1365 = vrot.lane.b32.xlu0 %v1266_v42, %s4312_s28  ;;  %v1317_v32 = vsel %vm4322_vm1, %v1313_v6, %v1315_v1 }
 0x5e9   : > { %1357 = vrot.lane.b32.xlu1 %v1254_v55, %s4312_s28  ;;  %v1316_v46 = vsel %vm4326_vm7, %v1311_v9, %v1313_v6 }
 0x5eb   : > { %v1322_v15 = vpop.permute.xlu1 %1321 }
 0x5ec   : > { %v1324_v8 = vpop.permute.xlu0 %1323  ;;  %1363 = vrot.lane.b32.xlu0 %v1265_v18, %s4312_s28 }
 0x5ed   : > { %1371 = vrot.lane.b32.xlu1 %v1277_v59, %s4312_s28  ;;  %v1327_v45 = vsel %vm4325_vm4, %v1322_v15, %v1324_v8  ;;  %vm1782_vm4 = vcmask 801792  }
 0x5ef   : > { %v1326_v40 = vpop.permute.xlu1 %1325 }
 0x5f0   : > { %v1352_v29 = vpop.permute.xlu0 %1351  ;;  %1377 = vrot.lane.b32.xlu0 %v1284_v17, %s4312_s28  ;;  %v1328_v39 = vsel %vm4327_vm14, %v1324_v8, %v1326_v40 }
 0x5f1   : > { %1369 = vrot.lane.b32.xlu1 %v1276_v20, %s4312_s28 }
 0x5f3   : > { %v1356_v21 = vpop.permute.xlu1 %1355 }
 0x5f4   : > { %v1354_v14 = vpop.permute.xlu0 %1353  ;;  %1385 = vrot.lane.b32.xlu0 %v1295_v23, %s4312_s28 }
 0x5f5   : > { %1393 = vrot.lane.b32.xlu1 %v1311_v9, %s4312_s28  ;;  %v1406_v27 = vsel %vm743_vm8, %v1354_v14, %v1356_v21  ;;  %v1405_v36 = vsel %vm743_vm8, %v1352_v29, %v1354_v14  ;;  %v2821_v29 = vld [vmem:[%s4245_s7] ss:$8 sps:$4 sm:$0xff]  }
 0x5f6   : > { %1444 = vmatprep.subr.bf16.mxu1 %v1406_v27 }
 0x5f7   : > { %1445 = vmatpush1.bf16.msra.mxu1 %v1405_v36 }
 0x5f8   : > { %1389 = vrot.lane.b32.xlu0 %v1305_v37, %s4312_s28 }
 0x5f9   : > { %1383 = vrot.lane.b32.xlu1 %v1294_v30, %s4312_s28  ;;  %v2910_v30 = vld [vmem:[%s3108_s25] sm:$0xff] }
 0x5fc   : > { %1397 = vrot.lane.b32.xlu0 %v1317_v32, %s4312_s28 }
 0x5fd   : > { %1391 = vrot.lane.b32.xlu1 %v1306_v31, %s4312_s28 }
 0x600   : > { %1401 = vrot.lane.b32.xlu0 %v1327_v45, %s4312_s28  ;;  %v2911_v45 = vld [vmem:[%s3108_s25 + $0x8] sm:$0xff] }
 0x601   : > { %1395 = vrot.lane.b32.xlu1 %v1316_v46, %s4312_s28 }
 0x604   : > { %1399 = vrot.lane.b32.xlu0 %v1322_v15, %s4312_s28 }
 0x605   : > { %1403 = vrot.lane.b32.xlu1 %v1328_v39, %s4312_s28  ;;  %s2998_s28 = smov 124  }
 0x608   : > { %1336 = vperm.xlu0 %2816, %v1208_v50   ;;  %v2912_v50 = vld [vmem:[%s3108_s25 + $0x10] sm:$0xff] }
 0x609   : > { %1331 = vperm.xlu1 %2817, %v1207_v24  }
 0x643   : > { %v1362_v35 = vpop.permute.xlu0 %1361 }
 0x646   : > { %v1368_v43 = vpop.permute.xlu1 %1367 }
 0x64b   : > { %v1374_v34 = vpop.permute.xlu0 %1373 }
 0x64e   : > { %v1380_v38 = vpop.permute.xlu1 %1379 }
 0x64f   : > { %v1376_v33 = vpop.permute.xlu0 %1375 }
 0x653   : > { %v1382_v53 = vpop.permute.xlu1 %1381 }
 0x656   : > { %v1388_v0 = vpop.permute.xlu0 %1387 }
 0x657   : > { %v1360_v52 = vpop.permute.xlu1 %1359 }
 0x658   : > { %v1408_v60 = vsel %vm743_vm8, %v1360_v52, %v1362_v35 }
 0x659   : > { %1446 = vmatprep.subr.bf16.mxu1 %v1408_v60 }
 0x65a   : > { %v1366_v62 = vpop.permute.xlu0 %1365 }
 0x65b   : > { %v1358_v5 = vpop.permute.xlu1 %1357  ;;  %v1410_v11 = vsel %vm743_vm8, %v1366_v62, %v1368_v43  ;;  %v2913_v43 = vld [vmem:[%s3108_s25 + $0x18] sm:$0xff] }
 0x65c   : > { %v1407_v13 = vsel %vm743_vm8, %v1358_v5, %v1360_v52 }
 0x65d   : > { %1447 = vmatpush1.bf16.msra.mxu1 %v1407_v13 }
 0x65e   : > { %1448 = vmatprep.subr.bf16.mxu1 %v1410_v11  ;;  %v1364_v44 = vpop.permute.xlu0 %1363 }
 0x65f   : > { %v1372_v2 = vpop.permute.xlu1 %1371  ;;  %v1409_v47 = vsel %vm743_vm8, %v1364_v44, %v1366_v62 }
 0x660   : > { %v1412_v1 = vsel %vm743_vm8, %v1372_v2, %v1374_v34 }
 0x661   : > { %1449 = vmatpush1.bf16.msra.mxu1 %v1409_v47 }
 0x662   : > { %1450 = vmatprep.subr.bf16.mxu1 %v1412_v1  ;;  %v1378_v41 = vpop.permute.xlu0 %1377 }
 0x663   : > { %v1370_v48 = vpop.permute.xlu1 %1369  ;;  %v1414_v49 = vsel %vm743_vm8, %v1378_v41, %v1380_v38  ;;  %v1413_v19 = vsel %vm743_vm8, %v1376_v33, %v1378_v41 }
 0x664   : > { %v1411_v16 = vsel %vm743_vm8, %v1370_v48, %v1372_v2 }
 0x665   : > { %1451 = vmatpush1.bf16.msra.mxu1 %v1411_v16 }
 0x666   : > { %1452 = vmatprep.subr.bf16.mxu1 %v1414_v49  ;;  %v1386_v51 = vpop.permute.xlu0 %1385 }
 0x667   : > { %v1394_v54 = vpop.permute.xlu1 %1393 }
 0x669   : > { %1453 = vmatpush1.bf16.msra.mxu1 %v1413_v19 }
 0x66a   : > { %v1390_v58 = vpop.permute.xlu0 %1389 }
 0x66b   : > { %v1384_v4 = vpop.permute.xlu1 %1383  ;;  %v1417_v42 = vsel %vm743_vm8, %v1388_v0, %v1390_v58 }
 0x66c   : > { %v1416_v63 = vsel %vm743_vm8, %v1384_v4, %v1386_v51  ;;  %v1415_v61 = vsel %vm743_vm8, %v1382_v53, %v1384_v4 }
 0x66d   : > { %1454 = vmatprep.subr.bf16.mxu1 %v1416_v63 }
 0x66e   : > { %1455 = vmatpush1.bf16.msra.mxu1 %v1415_v61  ;;  %v1398_v7 = vpop.permute.xlu0 %1397 }
 0x66f   : > { %v1392_v3 = vpop.permute.xlu1 %1391 }
 0x670   : > { %v1418_v6 = vsel %vm743_vm8, %v1390_v58, %v1392_v3 }
 0x671   : > { %1456 = vmatprep.subr.bf16.mxu1 %v1418_v6 }
 0x672   : > { %1457 = vmatpush1.bf16.msra.mxu1 %v1417_v42  ;;  %v1402_v9 = vpop.permute.xlu0 %1401 }
 0x673   : > { %v1396_v55 = vpop.permute.xlu1 %1395 }
 0x674   : > { %v1420_v15 = vsel %vm743_vm8, %v1396_v55, %v1398_v7  ;;  %v1419_v18 = vsel %vm743_vm8, %v1394_v54, %v1396_v55 }
 0x675   : > { %1458 = vmatprep.subr.bf16.mxu1 %v1420_v15 }
 0x676   : > { %1459 = vmatpush1.bf16.msra.mxu1 %v1419_v18  ;;  %v1400_v8 = vpop.permute.xlu0 %1399 }
 0x677   : > { %v1404_v59 = vpop.permute.xlu1 %1403  ;;  %v1421_v40 = vsel %vm743_vm8, %v1400_v8, %v1402_v9 }
 0x678   : > { %v1422_v17 = vsel %vm743_vm8, %v1402_v9, %v1404_v59 }
 0x679   : > { %1460 = vmatprep.subr.bf16.mxu1 %v1422_v17 }
 0x67a   : > { %1461 = vmatpush1.bf16.msra.mxu1 %v1421_v40 }
 0x67d   : > { %1477 = vmatmul.mubr.bf16.vlgmr.msra.gmra.mrb[0].mxu1 %v2821_v29 }
 0x687   : > { %v1337_v27 = vpop.permute.xlu0 %1336 }
 0x688   : > { %v1332_v20 = vpop.permute.xlu1 %1331 }
 0x750   : > { %v1478_v21 = vpop.f32.mrb[0].mxu1 }
 0x751   : > { %v1479_v23 = vadd.f32 %v1478_v21, %v1332_v20  ;;  %v1480_v14 = vpop.f32.mrb[1].mxu1 }
 0x752   : > { %v1481_v36 = vadd.f32 %v1480_v14, %v1332_v20  ;;  %v1482_v37 = vpop.f32.mrb[2].mxu1 }
 0x753   : > { %v3657_v28 = vadd.f32 %v2910_v30, %v1479_v23  ;;  %v1483_v32 = vadd.f32 %v1482_v37, %v1337_v27  ;;  %v1484_v31 = vpop.f32.mrb[3].mxu1 }
 0x754   : > { %v3660_v46 = vadd.f32 %v2911_v45, %v1481_v36  ;;  %v1485_v39 = vadd.f32 %v1484_v31, %v1337_v27 }
 0x755   : > { %v3663_v24 = vadd.f32 %v2912_v50, %v1483_v32  ;;  %v1509_v35 = vmul.f32 %v3657_v28, %v3657_v28 }
 0x756   : > { %v3668_v34 = vadd.f32 %v2913_v43, %v1485_v39  ;;  %v1497_v38 = vadd.f32 %v3660_v46, %v3657_v28  ;;  %v1510_v33 = vmul.f32 %v3660_v46, %v3660_v46  ;;  %v2690_v39 = vld [vmem:[%s4239_s1 + $0x10] sm:$0xff]  ;;  %v2691_v43 = vld [vmem:[%s4239_s1 + $0x18] sm:$0xff] }
 0x757   : > { %v1610_v53 = vmul.f32 %v3663_v24, %v3663_v24 }
 0x758   : > { %1498 = vadd.xlane.f32.xlu1 %v1497_v38  ;;  %v1511_v0 = vadd.f32 %v1510_v33, %v1509_v35  ;;  %v1611_v52 = vmul.f32 %v3668_v34, %v3668_v34  ;;  %v1598_v62 = vadd.f32 %v3668_v34, %v3663_v24  ;;  %v1756_v38 = vadd.s32 2, %v3136_v56 }
 0x759   : > { %v1757_v33 = vadd.s32 2, %v3138_v57 }
 0x75a   : > { %1512 = vadd.xlane.f32.xlu0 %v1511_v0  ;;  %v1612_v60 = vadd.f32 %v1611_v52, %v1610_v53  ;;  %vm1760_vm8 = vcmp.lt.s32.totalorder %v1756_v38, 16 }
 0x75b   : > { %vm1761_vm9 = vcmp.lt.s32.totalorder %v1757_v33, 16 }
 0x75c   : > { %1613 = vadd.xlane.f32.xlu1 %v1612_v60  ;;  %v2692_v60 = vld [vmem:[%s4240_s2 + $0x10] sm:$0xff]  ;;  %vm1768_vm10 = vmpackc.low %vm1761_vm9, %vm1760_vm8  ;;  %vm4328_vm8 = vcmask 1031168  }
 0x75e   : > { %1599 = vadd.xlane.f32.xlu0 %v1598_v62  ;;  %v2693_v62 = vld [vmem:[%s4240_s2 + $0x18] sm:$0xff] }
 0x7e5   : > { %v1499_v5 = vpop.xlane.xlu1 %1498 }
 0x7e6   : > { %v1500_v11 = vrot.slane %v1499_v5, 4 }
 0x7e7   : > { %v1513_v13 = vpop.xlane.xlu0 %1512 }
 0x7e8   : > { %v1501_v44 = vadd.f32 %v1500_v11, %v1499_v5  ;;  %v1514_v2 = vrot.slane %v1513_v13, 4  ;;  %v1712_v5 = vadd.s32 4294967294, %v3136_v56  ;;  %v1713_v11 = vadd.s32 4294967294, %v3138_v57 }
 0x7e9   : > { %v1614_v47 = vpop.xlane.xlu1 %1613 }
 0x7ea   : > { %v1515_v1 = vadd.f32 %v1514_v2, %v1513_v13  ;;  %v1615_v41 = vrot.slane %v1614_v47, 4  ;;  %v1502_v48 = vrot.slane %v1501_v44, 2  ;;  %vm1714_vm11 = vcmp.ge.s32.totalorder %v1712_v5, 0 }
 0x7eb   : > { %v1600_v49 = vpop.xlane.xlu0 %1599  ;;  %vm1715_vm13 = vcmp.ge.s32.totalorder %v1713_v11, 0 }
 0x7ec   : > { %v1616_v16 = vadd.f32 %v1615_v41, %v1614_v47  ;;  %v1601_v51 = vrot.slane %v1600_v49, 4  ;;  %v1503_v54 = vadd.f32 %v1502_v48, %v1501_v44  ;;  %v1516_v19 = vrot.slane %v1515_v1, 2  ;;  %vm1724_vm5 = vmpackc.low %vm1715_vm13, %vm1714_vm11 }
 0x7ed   : > { %v1769_v47 = vsel %vm1768_vm10, 65537, %v2978_v12  ;;  %vm1810_vm13 = vcmask 15360  }
 0x7ee   : > { %v1602_v58 = vadd.f32 %v1601_v51, %v1600_v49  ;;  %v1504_v4 = vrot.slane %v1503_v54, 1  ;;  %v1517_v63 = vadd.f32 %v1516_v19, %v1515_v1  ;;  %v1617_v61 = vrot.slane %v1616_v16, 2 }
 0x7ef   : > { %v1773_v56 = vrot.slane %v1769_v47, %v3163_v22  ;;  %v1777_v57 = vrot.slane %v1769_v47, %v3151_v10  ;;  %v1725_v1 = vsel %vm1724_vm5, 65537, %v2978_v12 }
 0x7f0   : > { %v1505_v7 = vadd.f32 %v1504_v4, %v1503_v54  ;;  %v1518_v3 = vrot.slane %v1517_v63, 1  ;;  %v1603_v6 = vrot.slane %v1602_v58, 2  ;;  %v1618_v42 = vadd.f32 %v1617_v61, %v1616_v16 }
 0x7f1   : > { %v1729_v41 = vrot.slane %v1725_v1, %v3163_v22  ;;  %v1733_v48 = vrot.slane %v1725_v1, %v3151_v10 }
 0x7f2   : > { %2735 = vpush %v1505_v7  ;;  %v1519_v9 = vadd.f32 %v1518_v3, %v1517_v63  ;;  %v1604_v55 = vadd.f32 %v1603_v6, %v1602_v58  ;;  %v1619_v15 = vrot.slane %v1618_v42, 1 }
 0x7f4   : > { %2737 = vpush %v1519_v9  ;;  %v1605_v18 = vrot.slane %v1604_v55, 1  ;;  %v1620_v59 = vadd.f32 %v1619_v15, %v1618_v42 }
 0x7f6   : > { %v1606_v8 = vadd.f32 %v1605_v18, %v1604_v55 }
 0x7f8   : > { %2739 = vpush %v1606_v8 }
 0x7f9   : > { %2741 = vpush %v1620_v59 }
 0x823   : > { %s2736_s25 = spop %2735 }
 0x824   : > { %v1507_v40 = vstv %s2736_s25  ;;  %s4293_s25 = smov 92  }
 0x825   : > { %v1508_v17 = vmul.f32 0.00048828125, %v1507_v40  ;;  %s2738_s16 = spop %2737 }
 0x826   : > { %v1521_v29 = vstv %s2738_s16  ;;  %s4291_s16 = smov 64  }
 0x827   : > { %v1523_v20 = vmul.f32 %v1508_v17, %v1508_v17  ;;  %v1522_v21 = vmul.f32 0.00048828125, %v1521_v29 }
 0x829   : > { %v1524_v23 = vsub.f32 %v1522_v21, %v1523_v20  ;;  %s2740_s21 = spop %2739 }
 0x82a   : > { %v1608_v14 = vstv %s2740_s21  ;;  %s2742_s22 = spop %2741  ;;  %s4289_s21 = smov 62  }
 0x82b   : > { %v1525_v27 = vadd.f32 1e-05, %v1524_v23  ;;  %v1609_v36 = vmul.f32 0.00048828125, %v1608_v14  ;;  %v1622_v37 = vstv %s2742_s22  ;;  %s2993_s22 = smov 98  }
 0x82c   : > { %v1623_v32 = vmul.f32 0.00048828125, %v1622_v37 }
 0x82d   : > { %2870 = vrsqrt.f32 %v1525_v27  ;;  %v1624_v30 = vmul.f32 %v1609_v36, %v1609_v36 }
 0x82f   : > { %v1625_v31 = vsub.f32 %v1623_v32, %v1624_v30 }
 0x831   : > { %v1626_v45 = vadd.f32 1e-05, %v1625_v31 }
 0x833   : > { %2872 = vrsqrt.f32 %v1626_v45 }
 0x837   : > { %v2871_v50 = vpop.eup %2870 }
 0x838   : > { %v1527_v35 = vmul.f32 %v2871_v50, %v2690_v39 }
 0x83a   : > { %1532 = vperm.xlu0 %2816, %v1527_v35   ;;  %v1528_v52 = vmul.f32 %v1527_v35, %v1508_v17 }
 0x83c   : > { %v1529_v44 = vsub.f32 %v2692_v60, %v1528_v52 }
 0x83d   : > { %v2873_v53 = vpop.eup %2872 }
 0x83e   : > { %v1628_v0 = vmul.f32 %v2873_v53, %v2691_v43 }
 0x840   : > { %1633 = vperm.xlu1 %2817, %v1628_v0   ;;  %v1629_v13 = vmul.f32 %v1628_v0, %v1609_v36 }
 0x842   : > { %v1630_v2 = vsub.f32 %v2693_v62, %v1629_v13 }
 0x844   : > { %1539 = vperm.xlu1 %2817, %v1529_v44   ;;  %1640 = vperm.xlu0 %2816, %v1630_v2  }
 0x848   : > { %1745 = vrot.lane.b32.xlu1 %v3167_v25, %s4301_s26  ;;  %1747 = vrot.lane.b32.xlu0 %v3170_v26, %s4301_s26 }
 0x84c   : > { %1778 = vrot.lane.b32.xlu1 %v1773_v56, %s2993_s22  ;;  %1780 = vrot.lane.b32.xlu0 %v1777_v57, %s2993_s22  ;;  %s4285_s22 = smov 60  }
 0x850   : > { %1790 = vrot.lane.b32.xlu1 %v1729_v41, %s2988_s23  ;;  %1792 = vrot.lane.b32.xlu0 %v1733_v48, %s2988_s23 }
 0x854   : > { %1806 = vrot.lane.b32.xlu1 %v1773_v56, %s2994_s29  ;;  %1808 = vrot.lane.b32.xlu0 %v1777_v57, %s2994_s29 }
 0x858   : > { %1818 = vrot.lane.b32.xlu1 %v1729_v41, %s2995_s17  ;;  %1820 = vrot.lane.b32.xlu0 %v1733_v48, %s2995_s17 }
 0x85c   : > { %1830 = vrot.lane.b32.xlu1 %v3167_v25, %s2996_s27  ;;  %1832 = vrot.lane.b32.xlu0 %v3170_v26, %s2996_s27 }
 0x860   : > { %1842 = vrot.lane.b32.xlu1 %v1773_v56, %s4287_s24  ;;  %1844 = vrot.lane.b32.xlu0 %v1777_v57, %s4287_s24 }
 0x864   : > { %1734 = vrot.lane.b32.xlu1 %v1729_v41, %s4311_s14  ;;  %1736 = vrot.lane.b32.xlu0 %v1733_v48, %s4311_s14 }
 0x868   : > { %1857 = vrot.lane.b32.xlu1 %v2978_v12, %s2988_s23  ;;  %1868 = vrot.lane.b32.xlu0 %v2978_v12, %s2998_s28 }
 0x86c   : > { %1880 = vrot.lane.b32.xlu1 %v2978_v12, %s4301_s26  ;;  %1902 = vrot.lane.b32.xlu0 %v2978_v12, %s4293_s25 }
 0x870   : > { %1914 = vrot.lane.b32.xlu1 %v2978_v12, %s4291_s16  ;;  %1926 = vrot.lane.b32.xlu0 %v2978_v12, %s4289_s21 }
 0x8b9   : > { %v1533_v10 = vpop.permute.xlu0 %1532 }
 0x8ba   : > { %v1535_v49 = vmul.f32 %v1533_v10, %v3657_v28  ;;  %v1536_v16 = vmul.f32 %v1533_v10, %v3660_v46 }
 0x8bf   : > { %v1634_v22 = vpop.permute.xlu1 %1633 }
 0x8c0   : > { %v1636_v51 = vmul.f32 %v1634_v22, %v3663_v24  ;;  %v1637_v54 = vmul.f32 %v1634_v22, %v3668_v34 }
 0x8c3   : > { %v1540_v19 = vpop.permute.xlu1 %1539  ;;  %v1641_v58 = vpop.permute.xlu0 %1640 }
 0x8c4   : > { %v3730_v4 = vadd.f32 %v1540_v19, %v1535_v49  ;;  %v3732_v63 = vadd.f32 %v1540_v19, %v1536_v16  ;;  %v3734_v61 = vadd.f32 %v1641_v58, %v1636_v51  ;;  %v3736_v7 = vadd.f32 %v1641_v58, %v1637_v54 }
 0x8c6   : > { %v3739_v3 = vmul.f32 0.70710677, %v3730_v4  ;;  %v3742_v6 = vmul.f32 0.70710677, %v3732_v63  ;;  %v3745_v42 = vmul.f32 0.70710677, %v3734_v61 }
 0x8c7   : > { %v3748_v9 = vmul.f32 0.70710677, %v3736_v7 }
 0x8c8   : > { %v1548_v55 = vand.u32 2147483647, %v3739_v3  ;;  %v1549_v15 = vand.u32 2147483647, %v3742_v6  ;;  %v1649_v18 = vand.u32 2147483647, %v3745_v42 }
 0x8c9   : > { %v1650_v8 = vand.u32 2147483647, %v3748_v9  ;;  %vm1588_vm12 = vcmp.ge.f32.partialorder %v3739_v3, 0.0  ;;  %vm1589_vm15 = vcmp.ge.f32.partialorder %v3742_v6, 0.0  ;;  %vm1689_vm0 = vcmp.ge.f32.partialorder %v3745_v42, 0.0 }
 0x8ca   : > { %v1550_v59 = vmul.f32 0.3275911, %v1548_v55  ;;  %v1551_v40 = vmul.f32 0.3275911, %v1549_v15  ;;  %v1651_v17 = vmul.f32 0.3275911, %v1649_v18 }
 0x8cb   : > { %v1652_v29 = vmul.f32 0.3275911, %v1650_v8  ;;  %v1576_v27 = vsub.f32 0.0, %v1548_v55  ;;  %v1577_v36 = vsub.f32 0.0, %v1549_v15  ;;  %v1677_v32 = vsub.f32 0.0, %v1649_v18 }
 0x8cc   : > { %v1552_v20 = vadd.f32 1.0, %v1550_v59  ;;  %v1553_v21 = vadd.f32 1.0, %v1551_v40  ;;  %v1653_v23 = vadd.f32 1.0, %v1651_v17  ;;  %v1678_v50 = vsub.f32 0.0, %v1650_v8 }
 0x8cd   : > { %v1654_v14 = vadd.f32 1.0, %v1652_v29  ;;  %v1578_v30 = vmul.f32 %v1576_v27, %v1548_v55  ;;  %v1579_v39 = vmul.f32 %v1577_v36, %v1549_v15  ;;  %v1679_v0 = vmul.f32 %v1677_v32, %v1649_v18 }
 0x8ce   : > { %2874 = vrcp.f32 %v1552_v20  ;;  %v1680_v11 = vmul.f32 %v1678_v50, %v1650_v8  ;;  %v1645_v3 = vmul.f32 0.5, %v3734_v61  ;;  %vm1690_vm1 = vcmp.ge.f32.partialorder %v3748_v9, 0.0 }
 0x8cf   : > { %2876 = vrcp.f32 %v1553_v21  ;;  %v1580_v53 = vmul.f32 1.442695, %v1578_v30  ;;  %v1582_v62 = vmul.f32 1.442695, %v1579_v39  ;;  %v1681_v1 = vmul.f32 1.442695, %v1679_v0 }
 0x8d0   : > { %2878 = vrcp.f32 %v1653_v23  ;;  %v1683_v10 = vmul.f32 1.442695, %v1680_v11  ;;  %v1646_v42 = vmul.f32 0.5, %v3736_v7 }
 0x8d1   : > { %2880 = vrcp.f32 %v1654_v14 }
 0x8d2   : > { %2882 = vpow2.f32 %v1580_v53 }
 0x8d3   : > { %2884 = vpow2.f32 %v1582_v62  ;;  %v1746_v62 = vpop.permute.xlu1 %1745 }
 0x8d4   : > { %2886 = vpow2.f32 %v1681_v1  ;;  %v1545_v1 = vmul.f32 0.5, %v3732_v63 }
 0x8d5   : > { %2888 = vpow2.f32 %v1683_v10 }
 0x8d7   : > { %v1779_v6 = vpop.permute.xlu1 %1778 }
 0x8d8   : > { %v2875_v37 = vpop.eup %2874 }
 0x8d9   : > { %v2877_v31 = vpop.eup %2876  ;;  %v1558_v45 = vmul.f32 1.0614054, %v2875_v37 }
 0x8da   : > { %v1559_v35 = vmul.f32 1.0614054, %v2877_v31  ;;  %v2879_v38 = vpop.eup %2878 }
 0x8db   : > { %v1560_v43 = vadd.f32 -1.4531521, %v1558_v45  ;;  %v2881_v52 = vpop.eup %2880  ;;  %v1659_v5 = vmul.f32 1.0614054, %v2879_v38 }
 0x8dc   : > { %v1561_v33 = vadd.f32 -1.4531521, %v1559_v35  ;;  %v1660_v44 = vmul.f32 1.0614054, %v2881_v52  ;;  %v2883_v21 = vpop.eup %2882 }
 0x8dd   : > { %v1562_v60 = vmul.f32 %v2875_v37, %v1560_v43  ;;  %v1661_v47 = vadd.f32 -1.4531521, %v1659_v5  ;;  %v2885_v27 = vpop.eup %2884  ;;  %v3754_v5 = vpop.permute.xlu0 %1747 }
 0x8de   : > { %v1563_v13 = vmul.f32 %v2877_v31, %v1561_v33  ;;  %v1662_v57 = vadd.f32 -1.4531521, %v1660_v44  ;;  %v2887_v35 = vpop.eup %2886  ;;  %vm1752_vm7 = vcmp.ne.s16.totalorder %v3754_v5, 0 }
 0x8df   : > { %v1564_v2 = vadd.f32 1.4214138, %v1562_v60  ;;  %v1663_v48 = vmul.f32 %v2879_v38, %v1661_v47  ;;  %v2889_v53 = vpop.eup %2888 }
 0x8e0   : > { %v1565_v56 = vadd.f32 1.4214138, %v1563_v13  ;;  %v1664_v49 = vmul.f32 %v2881_v52, %v1662_v57 }
 0x8e1   : > { %v1566_v41 = vmul.f32 %v2875_v37, %v1564_v2  ;;  %v1665_v51 = vadd.f32 1.4214138, %v1663_v48  ;;  %v3763_v48 = vpop.permute.xlu0 %1780 }
 0x8e2   : > { %v1567_v22 = vmul.f32 %v2877_v31, %v1565_v56  ;;  %v1666_v19 = vadd.f32 1.4214138, %v1664_v49  ;;  %vm1786_vm14 = vcmp.ne.s16.totalorder %v3763_v48, 0 }
 0x8e3   : > { %v1568_v16 = vadd.f32 -0.28449672, %v1566_v41  ;;  %v1667_v55 = vmul.f32 %v2879_v38, %v1665_v51 }
 0x8e4   : > { %v1569_v54 = vadd.f32 -0.28449672, %v1567_v22  ;;  %v1668_v18 = vmul.f32 %v2881_v52, %v1666_v19  ;;  %v1791_v19 = vpop.permute.xlu1 %1790 }
 0x8e5   : > { %v1570_v58 = vmul.f32 %v2875_v37, %v1568_v16  ;;  %v1669_v59 = vadd.f32 -0.28449672, %v1667_v55  ;;  %v3767_v16 = vsel %vm4323_vm2, %v1746_v62, %v3754_v5  ;;  %v3779_v55 = vsel %vm1782_vm4, %v1779_v6, %v3763_v48 }
 0x8e6   : > { %v1571_v15 = vmul.f32 %v2877_v31, %v1569_v54  ;;  %v1670_v17 = vadd.f32 -0.28449672, %v1668_v18  ;;  %vm1751_vm3 = vcmp.ne.s16.totalorder %v3767_v16, 0  ;;  %vm1785_vm9 = vcmp.ne.s16.totalorder %v3779_v55, 0 }
 0x8e7   : > { %v1572_v8 = vadd.f32 0.2548296, %v1570_v58  ;;  %v1671_v20 = vmul.f32 %v2879_v38, %v1669_v59  ;;  %v3776_v58 = vpop.permute.xlu0 %1792 }
 0x8e8   : > { %v1573_v40 = vadd.f32 0.2548296, %v1571_v15  ;;  %v1672_v14 = vmul.f32 %v2881_v52, %v1670_v17  ;;  %v3788_v15 = vsel %vm4328_vm8, %v1791_v19, %v3776_v58  ;;  %v3799_v59 = vpop.permute.xlu1 %1806  ;;  %vm1797_vm11 = vcmp.ne.s16.totalorder %v3776_v58, 0 }
 0x8e9   : > { %v1574_v29 = vmul.f32 %v2875_v37, %v1572_v8  ;;  %v1673_v30 = vadd.f32 0.2548296, %v1671_v20  ;;  %vm1796_vm10 = vcmp.ne.s16.totalorder %v3788_v15, 0 }
 0x8ea   : > { %v1575_v23 = vmul.f32 %v2877_v31, %v1573_v40  ;;  %v1674_v45 = vadd.f32 0.2548296, %v1672_v14 }
 0x8eb   : > { %v1584_v36 = vmul.f32 %v2883_v21, %v1574_v29  ;;  %v1675_v50 = vmul.f32 %v2879_v38, %v1673_v30  ;;  %v1809_v40 = vpop.permute.xlu0 %1808 }
 0x8ec   : > { %v1585_v32 = vmul.f32 %v2885_v27, %v1575_v23  ;;  %v1676_v33 = vmul.f32 %v2881_v52, %v1674_v45  ;;  %v1544_v52 = vmul.f32 0.5, %v3730_v4  ;;  %v3812_v20 = vsel %vm1810_vm13, %v3799_v59, %v1809_v40  ;;  %v3817_v23 = vpop.permute.xlu1 %1818 }
 0x8ed   : > { %v1586_v39 = vsub.f32 1.0, %v1584_v36  ;;  %v1685_v60 = vmul.f32 %v2887_v35, %v1675_v50  ;;  %vm1813_vm5 = vcmp.ne.s16.totalorder %v3812_v20, 0  ;;  %vm1824_vm2 = vcmp.ne.s16.totalorder %v3817_v23, 0 }
 0x8ee   : > { %v1587_v43 = vsub.f32 1.0, %v1585_v32  ;;  %v1686_v31 = vmul.f32 %v2889_v53, %v1676_v33  ;;  %vm1846_vm13 = vcmask 277504  }
 0x8ef   : > { %v1590_v0 = vsub.f32 0.0, %v1586_v39  ;;  %v1687_v13 = vsub.f32 1.0, %v1685_v60  ;;  %v1821_v14 = vpop.permute.xlu0 %1820 }
 0x8f0   : > { %v1591_v37 = vsub.f32 0.0, %v1587_v43  ;;  %v1688_v38 = vsub.f32 1.0, %v1686_v31  ;;  %v3837_v45 = vpop.permute.xlu1 %1830 }
 0x8f1   : > { %v1592_v11 = vsel %vm1588_vm12, %v1586_v39, %v1590_v0  ;;  %v1691_v56 = vsub.f32 0.0, %v1687_v13  ;;  %vm1822_vm12 = vcmask 244736  }
 0x8f2   : > { %v1593_v44 = vsel %vm1589_vm15, %v1587_v43, %v1591_v37  ;;  %v1594_v2 = vadd.f32 1.0, %v1592_v11  ;;  %v1692_v57 = vsub.f32 0.0, %v1688_v38  ;;  %vm4329_vm15 = vcmp.ne.s16.totalorder %v3167_v25, 0 }
 0x8f3   : > { %v1595_v47 = vadd.f32 1.0, %v1593_v44  ;;  %v1693_v41 = vsel %vm1689_vm0, %v1687_v13, %v1691_v56  ;;  %vm1812_vm0 = vcmp.ne.s16.totalorder %v3799_v59, 0  ;;  %v3834_v32 = vsel %vm1822_vm12, %v3817_v23, %v1821_v14  ;;  %v1833_v39 = vpop.permute.xlu0 %1832 }
 0x8f4   : > { %v1596_v10 = vmul.f32 %v1594_v2, %v1544_v52  ;;  %v1694_v22 = vsel %vm1690_vm1, %v1688_v38, %v1692_v57  ;;  %v1695_v49 = vadd.f32 1.0, %v1693_v41  ;;  %vm1834_vm1 = vcmask 261120   ;;  %v3857_v53 = vpop.permute.xlu1 %1842 }
 0x8f5   : > { %v1597_v4 = vmul.f32 %v1595_v47, %v1545_v1  ;;  %v1696_v51 = vadd.f32 1.0, %v1694_v22  ;;  %v3841_v50 = vsel %vm1834_vm1, %v3837_v45, %v1833_v39  ;;  %vm4283_vm4 = vcmp.ne.s16.totalorder %v3834_v32, 0 }
 0x8f6   : > { %v1697_v63 = vmul.f32 %v1695_v49, %v1645_v3  ;;  %vm4278_vm8 = vcmp.ne.s16.totalorder %v3841_v50, 0  ;;  %vm4277_vm12 = vcmp.ne.s16.totalorder %v3837_v45, 0 }
 0x8f7   : > { %v1698_v54 = vmul.f32 %v1696_v51, %v1646_v42  ;;  %v1845_v0 = vpop.permute.xlu0 %1844 }
 0x8f8   : > { %v3771_v61 = vpack.c.bf16 %v1697_v63, %v1596_v10  ;;  %v3865_v62 = vsel %vm1846_vm13, %v3857_v53, %v1845_v0  ;;  %v1735_v11 = vpop.permute.xlu1 %1734 }
 0x8f9   : > { %v3773_v9 = vpack.c.bf16 %v1698_v54, %v1597_v4  ;;  %vm4282_vm1 = vcmp.ne.s16.totalorder %v3865_v62, 0 }
 0x8fa   : > { %v1754_v7 = vsel %vm1751_vm3, %v3771_v61, 0  ;;  %v1788_v17 = vsel %vm1785_vm9, %v3771_v61, 0  ;;  %v1799_v29 = vsel %vm1796_vm10, %v3771_v61, 0  ;;  %v1801_v36 = vsel %vm4329_vm15, %v3771_v61, 0 }
 0x8fb   : > { %1859 = vrot.lane.b32.xlu1 %v1754_v7, %s2988_s23  ;;  %v1755_v18 = vsel %vm1752_vm7, %v3773_v9, 0  ;;  %v1789_v8 = vsel %vm1786_vm14, %v3773_v9, 0  ;;  %v1800_v21 = vsel %vm1797_vm11, %v3773_v9, 0  ;;  %v1802_v27 = vsel %vm697_vm6, %v3773_v9, 0  ;;  %v3877_v13 = vpop.permute.xlu0 %1736 }
 0x8fc   : > { %1861 = vrot.lane.b32.xlu0 %v1755_v18, %s2988_s23  ;;  %v1816_v30 = vsel %vm1813_vm5, %v3773_v9, 0  ;;  %v1815_v35 = vsel %vm1812_vm0, %v3771_v61, 0  ;;  %v1827_v43 = vsel %vm1824_vm2, %v3771_v61, 0  ;;  %v1828_v33 = vsel %vm4283_vm4, %v3773_v9, 0  ;;  %v1858_v56 = vpop.permute.xlu1 %1857 }
 0x8fd   : > { %v1840_v60 = vsel %vm4278_vm8, %v3773_v9, 0  ;;  %vm4279_vm15 = vcmp.ne.s16.totalorder %v3857_v53, 0  ;;  %v1839_v37 = vsel %vm4277_vm12, %v3771_v61, 0  ;;  %v1852_v44 = vsel %vm4282_vm1, %v3773_v9, 0 }
 0x8fe   : > { %v1851_v31 = vsel %vm4279_vm15, %v3771_v61, 0  ;;  %vm4330_vm12 = vcmask 769024   ;;  %vm4281_vm8 = vcmp.ne.s16.totalorder %v3877_v13, 0  ;;  %vm4333_vm1 = vcmask 785408  }
 0x8ff   : > { %1872 = vrot.lane.b32.xlu1 %v1789_v8, %s2998_s28  ;;  %v3886_v2 = vsel %vm4330_vm12, %v1735_v11, %v3877_v13  ;;  %v1744_v38 = vsel %vm4281_vm8, %v3773_v9, 0  ;;  %v1869_v52 = vpop.permute.xlu0 %1868  ;;  %vm4284_vm12 = vcmask 1014784   ;;  %vm1904_vm4 = vcmask 752640  }
 0x900   : > { %1870 = vrot.lane.b32.xlu0 %v1788_v17, %s2998_s28  ;;  %vm4280_vm15 = vcmp.ne.s16.totalorder %v3886_v2, 0  ;;  %v1881_v57 = vpop.permute.xlu1 %1880 }
 0x901   : > { %v1743_v47 = vsel %vm4280_vm15, %v3771_v61, 0  ;;  %vm4331_vm15 = vcmask 1031168  }
 0x902   : > { %vm4332_vm8 = vmmov %vm4331_vm15 }
 0x903   : > { %1882 = vrot.lane.b32.xlu1 %v1799_v29, %s4301_s26  ;;  %v1903_v1 = vpop.permute.xlu0 %1902 }
 0x904   : > { %1884 = vrot.lane.b32.xlu0 %v1800_v21, %s4301_s26  ;;  %v3902_v3 = vpop.permute.xlu1 %1914 }
 0x907   : > { %1892 = vrot.lane.b32.xlu1 %v1802_v27, %s4311_s14  ;;  %v1927_v41 = vpop.permute.xlu0 %1926 }
 0x908   : > { %1890 = vrot.lane.b32.xlu0 %v1801_v36, %s4311_s14 }
 0x90b   : > { %1900 = vrot.lane.b32.xlu1 %v1816_v30, %s4293_s25 }
 0x90c   : > { %1898 = vrot.lane.b32.xlu0 %v1815_v35, %s4293_s25  ;;  %s4338_s25 = smov 64  }
 0x90f   : > { %1910 = vrot.lane.b32.xlu1 %v1827_v43, %s4291_s16 }
 0x910   : > { %1912 = vrot.lane.b32.xlu0 %v1828_v33, %s4291_s16  ;;  %s4339_s16 = smov 62  }
 0x913   : > { %1924 = vrot.lane.b32.xlu1 %v1840_v60, %s4289_s21 }
 0x914   : > { %1922 = vrot.lane.b32.xlu0 %v1839_v37, %s4289_s21 }
 0x917   : > { %1934 = vrot.lane.b32.xlu1 %v1851_v31, %s4285_s22 }
 0x918   : > { %1936 = vrot.lane.b32.xlu0 %v1852_v44, %s4285_s22 }
 0x91b   : > { %1938 = vrot.lane.b32.xlu1 %v2978_v12, %s4285_s22 }
 0x91c   : > { %1965 = vrot.lane.b32.xlu0 %v2978_v12, %s4287_s24 }
 0x91f   : > { %1969 = vrot.lane.b32.xlu1 %v1744_v38, %s4287_s24  ;;  %v2824_v38 = vld [vmem:[%s4241_s3 + $0x14] ss:$8 sps:$4 sm:$0xff]  }
 0x920   : > { %1967 = vrot.lane.b32.xlu0 %v1743_v47, %s4287_s24 }
 0x96d   : > { %v1860_v6 = vpop.permute.xlu1 %1859 }
 0x96e   : > { %v1862_v10 = vpop.permute.xlu0 %1861  ;;  %v1863_v17 = vsel %vm4332_vm8, %v1858_v56, %v1860_v6  ;;  %vm4335_vm8 = vmmov %vm4333_vm1 }
 0x96f   : > { %1975 = vrot.lane.b32.xlu0 %v1862_v10, %s4287_s24  ;;  %v1864_v7 = vsel %vm4331_vm15, %v1860_v6, %v1862_v10  ;;  %vm4334_vm15 = vcmask 769024  }
 0x971   : > { %v1873_v22 = vpop.permute.xlu1 %1872 }
 0x972   : > { %1981 = vrot.lane.b32.xlu1 %v1873_v22, %s4287_s24  ;;  %v1871_v49 = vpop.permute.xlu0 %1870 }
 0x973   : > { %v1876_v8 = vsel %vm4284_vm12, %v1871_v49, %v1873_v22  ;;  %v1875_v21 = vsel %vm4284_vm12, %v1869_v52, %v1871_v49  ;;  %vm4297_vm12 = vcmask 523264  }
 0x975   : > { %v1883_v4 = vpop.permute.xlu1 %1882 }
 0x976   : > { %v1885_v42 = vpop.permute.xlu0 %1884  ;;  %v1886_v35 = vsel %vm4335_vm8, %v1881_v57, %v1883_v4  ;;  %vm4336_vm8 = vcmask 130048  }
 0x977   : > { %1987 = vrot.lane.b32.xlu0 %v1885_v42, %s4287_s24  ;;  %v1887_v27 = vsel %vm4333_vm1, %v1883_v4, %v1885_v42  ;;  %vm4296_vm1 = vcmask 506880   ;;  %2700 = vmatprep.mubr.msk.bf16.mxu0 %vm4336_vm8, %v2824_v38 }
 0x979   : > { %v1893_v51 = vpop.permute.xlu1 %1892 }
 0x97a   : > { %1993 = vrot.lane.b32.xlu1 %v1893_v51, %s4287_s24  ;;  %v1891_v63 = vpop.permute.xlu0 %1890 }
 0x97b   : > { %1989 = vrot.lane.b32.xlu0 %v1891_v63, %s4287_s24  ;;  %v1894_v30 = vsel %vm4334_vm15, %v1891_v63, %v1893_v51  ;;  %vm4295_vm15 = vcmask 490496  }
 0x97d   : > { %v1901_v54 = vpop.permute.xlu1 %1900 }
 0x97e   : > { %v1899_v61 = vpop.permute.xlu0 %1898  ;;  %v1906_v43 = vsel %vm1904_vm4, %v1901_v54, %v1903_v1  ;;  %v2697_v1 = vld [vmem:[%s4242_s4 + $0x18] sm:$0xff] }
 0x97f   : > { %1995 = vrot.lane.b32.xlu1 %v1899_v61, %s4287_s24  ;;  %v1905_v11 = vsel %vm1904_vm4, %v1899_v61, %v1901_v54 }
 0x981   : > { %v1911_v9 = vpop.permute.xlu1 %1910 }
 0x982   : > { %2001 = vrot.lane.b32.xlu0 %v1911_v9, %s4287_s24  ;;  %v1913_v19 = vpop.permute.xlu0 %1912 }
 0x983   : > { %1973 = vrot.lane.b32.xlu1 %v1864_v7, %s4287_s24  ;;  %v1917_v31 = vsel %vm4297_vm12, %v1911_v9, %v1913_v19  ;;  %v1918_v47 = vsel %vm4297_vm12, %v1913_v19, %v3902_v3  ;;  %v2696_v3 = vld [vmem:[%s4242_s4 + $0x10] sm:$0xff] }
 0x985   : > { %v1925_v18 = vpop.permute.xlu1 %1924 }
 0x986   : > { %1979 = vrot.lane.b32.xlu0 %v1876_v8, %s4287_s24  ;;  %v1923_v40 = vpop.permute.xlu0 %1922  ;;  %v1930_v44 = vsel %vm4296_vm1, %v1925_v18, %v1927_v41 }
 0x987   : > { %1971 = vrot.lane.b32.xlu1 %v1863_v17, %s4287_s24  ;;  %v1929_v52 = vsel %vm4296_vm1, %v1923_v40, %v1925_v18 }
 0x989   : > { %v1935_v29 = vpop.permute.xlu1 %1934 }
 0x98a   : > { %1977 = vrot.lane.b32.xlu0 %v1875_v21, %s4287_s24  ;;  %v1937_v14 = vpop.permute.xlu0 %1936 }
 0x98b   : > { %1985 = vrot.lane.b32.xlu1 %v1887_v27, %s4287_s24  ;;  %v1941_v56 = vsel %vm4295_vm15, %v1935_v29, %v1937_v14 }
 0x98d   : > { %v1939_v36 = vpop.permute.xlu1 %1938 }
 0x98e   : > { %1991 = vrot.lane.b32.xlu0 %v1894_v30, %s4287_s24  ;;  %v1966_v39 = vpop.permute.xlu0 %1965  ;;  %v1942_v57 = vsel %vm4295_vm15, %v1937_v14, %v1939_v36 }
 0x98f   : > { %1983 = vrot.lane.b32.xlu1 %v1886_v35, %s4287_s24 }
 0x991   : > { %v1970_v33 = vpop.permute.xlu1 %1969 }
 0x992   : > { %1999 = vrot.lane.b32.xlu0 %v1906_v43, %s4287_s24  ;;  %v1968_v0 = vpop.permute.xlu0 %1967 }
 0x993   : > { %v2019_v60 = vsel %vm1846_vm13, %v1966_v39, %v1968_v0  ;;  %2007 = vrot.lane.b32.xlu1 %v1923_v40, %s4287_s24  ;;  %v2020_v37 = vsel %vm1846_vm13, %v1968_v0, %v1970_v33 }
 0x994   : > { %2058 = vmatprep.subr.bf16.mxu0 %v2020_v37 }
 0x995   : > { %2059 = vmatpush1.bf16.msra.mxu0 %v2019_v60 }
 0x996   : > { %2003 = vrot.lane.b32.xlu0 %v1917_v31, %s4287_s24 }
 0x997   : > { %1997 = vrot.lane.b32.xlu1 %v1905_v11, %s4287_s24 }
 0x99a   : > { %2011 = vrot.lane.b32.xlu0 %v1930_v44, %s4287_s24 }
 0x99b   : > { %2005 = vrot.lane.b32.xlu1 %v1918_v47, %s4287_s24 }
 0x99e   : > { %2015 = vrot.lane.b32.xlu0 %v1941_v56, %s4287_s24 }
 0x99f   : > { %2009 = vrot.lane.b32.xlu1 %v1929_v52, %s4287_s24 }
 0x9a2   : > { %2013 = vrot.lane.b32.xlu0 %v1935_v29, %s4287_s24 }
 0x9a3   : > { %2017 = vrot.lane.b32.xlu1 %v1942_v57, %s4287_s24  ;;  %s4337_s24 = smov 92  }
 0x9a6   : > { %1950 = vperm.xlu0 %2816, %v2697_v1  }
 0x9a7   : > { %1945 = vperm.xlu1 %2817, %v2696_v3   ;;  %v2826_v3 = vld [vmem:[%s4241_s3 + $0x10] ss:$8 sps:$4 sm:$0xff]  }
 0x9e1   : > { %v1976_v41 = vpop.permute.xlu0 %1975 }
 0x9e4   : > { %v1982_v6 = vpop.permute.xlu1 %1981 }
 0x9e9   : > { %v1988_v10 = vpop.permute.xlu0 %1987 }
 0x9ec   : > { %v1994_v22 = vpop.permute.xlu1 %1993 }
 0x9ed   : > { %v1990_v49 = vpop.permute.xlu0 %1989 }
 0x9f1   : > { %v1996_v4 = vpop.permute.xlu1 %1995 }
 0x9f4   : > { %v2002_v42 = vpop.permute.xlu0 %2001 }
 0x9f5   : > { %v1974_v51 = vpop.permute.xlu1 %1973 }
 0x9f6   : > { %v2022_v63 = vsel %vm1846_vm13, %v1974_v51, %v1976_v41 }
 0x9f7   : > { %2060 = vmatprep.subr.bf16.mxu0 %v2022_v63 }
 0x9f8   : > { %v1980_v54 = vpop.permute.xlu0 %1979 }
 0x9f9   : > { %v1972_v61 = vpop.permute.xlu1 %1971  ;;  %v2024_v9 = vsel %vm1846_vm13, %v1980_v54, %v1982_v6 }
 0x9fa   : > { %v2021_v19 = vsel %vm1846_vm13, %v1972_v61, %v1974_v51 }
 0x9fb   : > { %2061 = vmatpush1.bf16.msra.mxu0 %v2021_v19 }
 0x9fc   : > { %v1978_v7 = vpop.permute.xlu0 %1977  ;;  %2062 = vmatprep.subr.bf16.mxu0 %v2024_v9 }
 0x9fd   : > { %v2023_v18 = vsel %vm1846_vm13, %v1978_v7, %v1980_v54  ;;  %v1986_v8 = vpop.permute.xlu1 %1985 }
 0x9fe   : > { %v2026_v40 = vsel %vm1846_vm13, %v1986_v8, %v1988_v10 }
 0x9ff   : > { %2063 = vmatpush1.bf16.msra.mxu0 %v2023_v18 }
 0xa00   : > { %v1992_v17 = vpop.permute.xlu0 %1991  ;;  %2064 = vmatprep.subr.bf16.mxu0 %v2026_v40 }
 0xa01   : > { %v1984_v29 = vpop.permute.xlu1 %1983  ;;  %v2028_v21 = vsel %vm1846_vm13, %v1992_v17, %v1994_v22  ;;  %v2027_v30 = vsel %vm1846_vm13, %v1990_v49, %v1992_v17 }
 0xa02   : > { %v2025_v14 = vsel %vm1846_vm13, %v1984_v29, %v1986_v8 }
 0xa03   : > { %2065 = vmatpush1.bf16.msra.mxu0 %v2025_v14 }
 0xa04   : > { %v2000_v27 = vpop.permute.xlu0 %1999  ;;  %2066 = vmatprep.subr.bf16.mxu0 %v2028_v21 }
 0xa05   : > { %v2008_v36 = vpop.permute.xlu1 %2007 }
 0xa07   : > { %2067 = vmatpush1.bf16.msra.mxu0 %v2027_v30 }
 0xa08   : > { %v2004_v39 = vpop.permute.xlu0 %2003 }
 0xa09   : > { %v1998_v35 = vpop.permute.xlu1 %1997  ;;  %v2031_v31 = vsel %vm1846_vm13, %v2002_v42, %v2004_v39 }
 0xa0a   : > { %v2029_v43 = vsel %vm1846_vm13, %v1996_v4, %v1998_v35  ;;  %v2030_v33 = vsel %vm1846_vm13, %v1998_v35, %v2000_v27 }
 0xa0b   : > { %2068 = vmatprep.subr.bf16.mxu0 %v2030_v33 }
 0xa0c   : > { %v2012_v0 = vpop.permute.xlu0 %2011  ;;  %2069 = vmatpush1.bf16.msra.mxu0 %v2029_v43 }
 0xa0d   : > { %v2006_v60 = vpop.permute.xlu1 %2005 }
 0xa0e   : > { %v2032_v37 = vsel %vm1846_vm13, %v2004_v39, %v2006_v60 }
 0xa0f   : > { %2070 = vmatprep.subr.bf16.mxu0 %v2032_v37 }
 0xa10   : > { %v2016_v11 = vpop.permute.xlu0 %2015  ;;  %2071 = vmatpush1.bf16.msra.mxu0 %v2031_v31 }
 0xa11   : > { %v2010_v44 = vpop.permute.xlu1 %2009 }
 0xa12   : > { %v2033_v38 = vsel %vm1846_vm13, %v2008_v36, %v2010_v44  ;;  %v2034_v47 = vsel %vm1846_vm13, %v2010_v44, %v2012_v0 }
 0xa13   : > { %2072 = vmatprep.subr.bf16.mxu0 %v2034_v47 }
 0xa14   : > { %v2014_v56 = vpop.permute.xlu0 %2013  ;;  %2073 = vmatpush1.bf16.msra.mxu0 %v2033_v38 }
 0xa15   : > { %v2018_v52 = vpop.permute.xlu1 %2017  ;;  %v2035_v57 = vsel %vm1846_vm13, %v2014_v56, %v2016_v11 }
 0xa16   : > { %v2036_v1 = vsel %vm1846_vm13, %v2016_v11, %v2018_v52 }
 0xa17   : > { %2074 = vmatprep.subr.bf16.mxu0 %v2036_v1 }
 0xa18   : > { %2075 = vmatpush1.bf16.msra.mxu0 %v2035_v57 }
 0xa1b   : > { %2091 = vmatmul.mubr.bf16.vlgmr.msra.gmra.mrb[4].mxu0 %v2826_v3 }
 0xa25   : > { %v1951_v49 = vpop.permute.xlu0 %1950 }
 0xa26   : > { %v1946_v41 = vpop.permute.xlu1 %1945 }
 0xaee   : > { %v2092_v6 = vpop.f32.mrb[4].mxu0 }
 0xaef   : > { %v3975_v10 = vadd.f32 %v2092_v6, %v1946_v41  ;;  %v2094_v22 = vpop.f32.mrb[5].mxu0 }
 0xaf0   : > { %v3977_v4 = vadd.f32 %v2094_v22, %v1946_v41  ;;  %v2096_v42 = vpop.f32.mrb[6].mxu0 }
 0xaf1   : > { %v2119_v51 = vmul.f32 %v3975_v10, %v3975_v10  ;;  %v3981_v63 = vadd.f32 %v2096_v42, %v1951_v49  ;;  %v2098_v54 = vpop.f32.mrb[7].mxu0 }
 0xaf2   : > { %v2120_v61 = vmul.f32 %v3977_v4, %v3977_v4  ;;  %v3985_v9 = vadd.f32 %v2098_v54, %v1951_v49  ;;  %v2107_v19 = vadd.f32 %v3977_v4, %v3975_v10 }
 0xaf3   : > { %v2220_v7 = vmul.f32 %v3981_v63, %v3981_v63 }
 0xaf4   : > { %v2221_v18 = vmul.f32 %v3985_v9, %v3985_v9  ;;  %2108 = vadd.xlane.f32.xlu1 %v2107_v19  ;;  %v2121_v8 = vadd.f32 %v2120_v61, %v2119_v51  ;;  %v2208_v17 = vadd.f32 %v3985_v9, %v3981_v63 }
 0xaf6   : > { %2122 = vadd.xlane.f32.xlu0 %v2121_v8  ;;  %v2222_v40 = vadd.f32 %v2221_v18, %v2220_v7 }
 0xaf8   : > { %2223 = vadd.xlane.f32.xlu1 %v2222_v40 }
 0xafa   : > { %2209 = vadd.xlane.f32.xlu0 %v2208_v17 }
 0xb81   : > { %v2109_v29 = vpop.xlane.xlu1 %2108 }
 0xb82   : > { %v2110_v21 = vrot.slane %v2109_v29, 4 }
 0xb83   : > { %v2123_v14 = vpop.xlane.xlu0 %2122 }
 0xb84   : > { %v2111_v27 = vadd.f32 %v2110_v21, %v2109_v29  ;;  %v2124_v36 = vrot.slane %v2123_v14, 4 }
 0xb85   : > { %v2224_v30 = vpop.xlane.xlu1 %2223 }
 0xb86   : > { %v2112_v39 = vrot.slane %v2111_v27, 2  ;;  %v2125_v35 = vadd.f32 %v2124_v36, %v2123_v14  ;;  %v2225_v43 = vrot.slane %v2224_v30, 4 }
 0xb87   : > { %v2210_v33 = vpop.xlane.xlu0 %2209 }
 0xb88   : > { %v2126_v0 = vrot.slane %v2125_v35, 2  ;;  %v2226_v60 = vadd.f32 %v2225_v43, %v2224_v30  ;;  %v2211_v37 = vrot.slane %v2210_v33, 4  ;;  %v2113_v31 = vadd.f32 %v2112_v39, %v2111_v27  ;;  %v2701_v30 = vld [vmem:[%s4243_s5 + $0x10] sm:$0xff]  ;;  %v2702_v43 = vld [vmem:[%s4243_s5 + $0x18] sm:$0xff] }
 0xb8a   : > { %v2227_v11 = vrot.slane %v2226_v60, 2  ;;  %v2212_v44 = vadd.f32 %v2211_v37, %v2210_v33  ;;  %v2114_v38 = vrot.slane %v2113_v31, 1  ;;  %v2127_v47 = vadd.f32 %v2126_v0, %v2125_v35  ;;  %v2703_v37 = vld [vmem:[%s4244_s6 + $0x10] sm:$0xff] }
 0xb8c   : > { %v2213_v56 = vrot.slane %v2212_v44, 2  ;;  %v2115_v52 = vadd.f32 %v2114_v38, %v2113_v31  ;;  %v2128_v57 = vrot.slane %v2127_v47, 1  ;;  %v2228_v1 = vadd.f32 %v2227_v11, %v2226_v60  ;;  %v2704_v31 = vld [vmem:[%s4244_s6 + $0x18] sm:$0xff] }
 0xb8e   : > { %2743 = vpush %v2115_v52  ;;  %v2129_v3 = vadd.f32 %v2128_v57, %v2127_v47  ;;  %v2214_v41 = vadd.f32 %v2213_v56, %v2212_v44  ;;  %v2229_v6 = vrot.slane %v2228_v1, 1 }
 0xb90   : > { %2745 = vpush %v2129_v3  ;;  %v2215_v22 = vrot.slane %v2214_v41, 1  ;;  %v2230_v42 = vadd.f32 %v2229_v6, %v2228_v1 }
 0xb92   : > { %v2216_v49 = vadd.f32 %v2215_v22, %v2214_v41 }
 0xb94   : > { %2747 = vpush %v2216_v49 }
 0xb95   : > { %2749 = vpush %v2230_v42 }
 0xbbf   : > { %s2744_s29 = spop %2743 }
 0xbc0   : > { %v2117_v51 = vstv %s2744_s29 }
 0xbc1   : > { %v2118_v54 = vmul.f32 0.00048828125, %v2117_v51  ;;  %s2746_s17 = spop %2745 }
 0xbc2   : > { %v2131_v61 = vstv %s2746_s17 }
 0xbc3   : > { %v2133_v19 = vmul.f32 %v2118_v54, %v2118_v54  ;;  %v2132_v7 = vmul.f32 0.00048828125, %v2131_v61 }
 0xbc5   : > { %v2134_v18 = vsub.f32 %v2132_v7, %v2133_v19  ;;  %s2748_s22 = spop %2747 }
 0xbc6   : > { %v2218_v8 = vstv %s2748_s22  ;;  %s2750_s27 = spop %2749  ;;  %s3003_s22 = smov [#allocation3]  }
 0xbc7   : > { %v2135_v40 = vadd.f32 1e-05, %v2134_v18  ;;  %v2219_v17 = vmul.f32 0.00048828125, %v2218_v8  ;;  %v2232_v29 = vstv %s2750_s27  ;;  %s2918_s27 = sshll.u32 %s3003_s22, 4  ;;  %s2919_s27 = int_to_ptr.vmem [resolvable:$false] %s2918_s27 }
 0xbc8   : > { %v2233_v14 = vmul.f32 0.00048828125, %v2232_v29 }
 0xbc9   : > { %2890 = vrsqrt.f32 %v2135_v40  ;;  %v2234_v21 = vmul.f32 %v2219_v17, %v2219_v17 }
 0xbcb   : > { %v2235_v27 = vsub.f32 %v2233_v14, %v2234_v21 }
 0xbcd   : > { %v2236_v36 = vadd.f32 1e-05, %v2235_v27 }
 0xbcf   : > { %2892 = vrsqrt.f32 %v2236_v36 }
 0xbd3   : > { %v2891_v39 = vpop.eup %2890 }
 0xbd4   : > { %v2137_v35 = vmul.f32 %v2891_v39, %v2701_v30 }
 0xbd6   : > { %2142 = vperm.xlu0 %2816, %v2137_v35   ;;  %v2138_v60 = vmul.f32 %v2137_v35, %v2118_v54 }
 0xbd8   : > { %v2139_v44 = vsub.f32 %v2703_v37, %v2138_v60 }
 0xbd9   : > { %v2893_v33 = vpop.eup %2892 }
 0xbda   : > { %v2238_v0 = vmul.f32 %v2893_v33, %v2702_v43 }
 0xbdc   : > { %2243 = vperm.xlu1 %2817, %v2238_v0   ;;  %v2239_v11 = vmul.f32 %v2238_v0, %v2219_v17 }
 0xbde   : > { %v2240_v38 = vsub.f32 %v2704_v31, %v2239_v11 }
 0xbe0   : > { %2149 = vperm.xlu1 %2817, %v2139_v44   ;;  %2250 = vperm.xlu0 %2816, %v2240_v38  }
 0xbe4   : > { %2354 = vrot.lane.b32.xlu1 %v2978_v12, %s2988_s23  ;;  %2365 = vrot.lane.b32.xlu0 %v2978_v12, %s2998_s28 }
 0xbe8   : > { %2376 = vrot.lane.b32.xlu1 %v2978_v12, %s4301_s26  ;;  %2398 = vrot.lane.b32.xlu0 %v2978_v12, %s4337_s24 }
 0xbec   : > { %2409 = vrot.lane.b32.xlu1 %v2978_v12, %s4338_s25  ;;  %2420 = vrot.lane.b32.xlu0 %v2978_v12, %s4339_s16 }
 0xc55   : > { %v2143_v47 = vpop.permute.xlu0 %2142 }
 0xc56   : > { %v2145_v52 = vmul.f32 %v2143_v47, %v3975_v10  ;;  %v2146_v57 = vmul.f32 %v2143_v47, %v3977_v4 }
 0xc5b   : > { %v2244_v56 = vpop.permute.xlu1 %2243 }
 0xc5c   : > { %v2246_v1 = vmul.f32 %v2244_v56, %v3981_v63  ;;  %v2247_v3 = vmul.f32 %v2244_v56, %v3985_v9 }
 0xc5f   : > { %v2150_v41 = vpop.permute.xlu1 %2149  ;;  %v2251_v6 = vpop.permute.xlu0 %2250 }
 0xc60   : > { %v4023_v22 = vadd.f32 %v2150_v41, %v2145_v52  ;;  %v4025_v49 = vadd.f32 %v2150_v41, %v2146_v57  ;;  %v4027_v42 = vadd.f32 %v2251_v6, %v2246_v1  ;;  %v4029_v51 = vadd.f32 %v2251_v6, %v2247_v3 }
 0xc62   : > { %v4032_v54 = vmul.f32 0.70710677, %v4023_v22  ;;  %v4035_v10 = vmul.f32 0.70710677, %v4025_v49  ;;  %v4038_v4 = vmul.f32 0.70710677, %v4027_v42 }
 0xc63   : > { %v4041_v63 = vmul.f32 0.70710677, %v4029_v51 }
 0xc64   : > { %v2158_v9 = vand.u32 2147483647, %v4032_v54  ;;  %v2159_v61 = vand.u32 2147483647, %v4035_v10  ;;  %v2259_v19 = vand.u32 2147483647, %v4038_v4 }
 0xc65   : > { %v2260_v7 = vand.u32 2147483647, %v4041_v63  ;;  %vm2198_vm8 = vcmp.ge.f32.partialorder %v4032_v54, 0.0  ;;  %vm2199_vm15 = vcmp.ge.f32.partialorder %v4035_v10, 0.0  ;;  %vm2299_vm1 = vcmp.ge.f32.partialorder %v4038_v4, 0.0 }
 0xc66   : > { %v2160_v18 = vmul.f32 0.3275911, %v2158_v9  ;;  %v2161_v8 = vmul.f32 0.3275911, %v2159_v61  ;;  %v2261_v40 = vmul.f32 0.3275911, %v2259_v19 }
 0xc67   : > { %v2262_v17 = vmul.f32 0.3275911, %v2260_v7  ;;  %v2186_v36 = vsub.f32 0.0, %v2158_v9  ;;  %v2187_v30 = vsub.f32 0.0, %v2159_v61  ;;  %v2287_v43 = vsub.f32 0.0, %v2259_v19 }
 0xc68   : > { %v2162_v29 = vadd.f32 1.0, %v2160_v18  ;;  %v2163_v21 = vadd.f32 1.0, %v2161_v8  ;;  %v2263_v14 = vadd.f32 1.0, %v2261_v40  ;;  %v2288_v37 = vsub.f32 0.0, %v2260_v7 }
 0xc69   : > { %v2264_v27 = vadd.f32 1.0, %v2262_v17  ;;  %v2188_v35 = vmul.f32 %v2186_v36, %v2158_v9  ;;  %v2189_v60 = vmul.f32 %v2187_v30, %v2159_v61  ;;  %v2289_v56 = vmul.f32 %v2287_v43, %v2259_v19 }
 0xc6a   : > { %2894 = vrcp.f32 %v2162_v29  ;;  %v2290_v41 = vmul.f32 %v2288_v37, %v2260_v7  ;;  %vm2300_vm12 = vcmp.ge.f32.partialorder %v4041_v63, 0.0  ;;  %v2255_v10 = vmul.f32 0.5, %v4027_v42 }
 0xc6b   : > { %2896 = vrcp.f32 %v2163_v21  ;;  %v2190_v47 = vmul.f32 1.442695, %v2188_v35  ;;  %v2192_v1 = vmul.f32 1.442695, %v2189_v60  ;;  %v2291_v61 = vmul.f32 1.442695, %v2289_v56 }
 0xc6c   : > { %2898 = vrcp.f32 %v2263_v14  ;;  %v2293_v14 = vmul.f32 1.442695, %v2290_v41 }
 0xc6d   : > { %2900 = vrcp.f32 %v2264_v27 }
 0xc6e   : > { %2902 = vpow2.f32 %v2190_v47 }
 0xc6f   : > { %2904 = vpow2.f32 %v2192_v1 }
 0xc70   : > { %2906 = vpow2.f32 %v2291_v61 }
 0xc71   : > { %2908 = vpow2.f32 %v2293_v14 }
 0xc74   : > { %v2895_v39 = vpop.eup %2894 }
 0xc75   : > { %v2897_v33 = vpop.eup %2896  ;;  %v2168_v0 = vmul.f32 1.0614054, %v2895_v39 }
 0xc76   : > { %v2169_v31 = vmul.f32 1.0614054, %v2897_v33  ;;  %v2899_v44 = vpop.eup %2898 }
 0xc77   : > { %v2170_v11 = vadd.f32 -1.4531521, %v2168_v0  ;;  %v2901_v52 = vpop.eup %2900  ;;  %v2269_v3 = vmul.f32 1.0614054, %v2899_v44 }
 0xc78   : > { %v2171_v38 = vadd.f32 -1.4531521, %v2169_v31  ;;  %v2270_v18 = vmul.f32 1.0614054, %v2901_v52  ;;  %v2903_v1 = vpop.eup %2902 }
 0xc79   : > { %v2172_v57 = vmul.f32 %v2895_v39, %v2170_v11  ;;  %v2271_v9 = vadd.f32 -1.4531521, %v2269_v3 }
 0xc7a   : > { %v2173_v6 = vmul.f32 %v2897_v33, %v2171_v38  ;;  %v2272_v17 = vadd.f32 -1.4531521, %v2270_v18 }
 0xc7b   : > { %v2174_v8 = vadd.f32 1.4214138, %v2172_v57  ;;  %v2273_v21 = vmul.f32 %v2899_v44, %v2271_v9 }
 0xc7c   : > { %v2175_v40 = vadd.f32 1.4214138, %v2173_v6  ;;  %v2274_v36 = vmul.f32 %v2901_v52, %v2272_v17  ;;  %v2905_v6 = vpop.eup %2904 }
 0xc7d   : > { %v2176_v29 = vmul.f32 %v2895_v39, %v2174_v8  ;;  %v2275_v30 = vadd.f32 1.4214138, %v2273_v21 }
 0xc7e   : > { %v2177_v27 = vmul.f32 %v2897_v33, %v2175_v40  ;;  %v2276_v43 = vadd.f32 1.4214138, %v2274_v36 }
 0xc7f   : > { %v2178_v19 = vadd.f32 -0.28449672, %v2176_v29  ;;  %v2277_v0 = vmul.f32 %v2899_v44, %v2275_v30  ;;  %v2907_v29 = vpop.eup %2906 }
 0xc80   : > { %v2179_v35 = vadd.f32 -0.28449672, %v2177_v27  ;;  %v2278_v37 = vmul.f32 %v2901_v52, %v2276_v43  ;;  %v2909_v27 = vpop.eup %2908 }
 0xc81   : > { %v2180_v7 = vmul.f32 %v2895_v39, %v2178_v19  ;;  %v2279_v11 = vadd.f32 -0.28449672, %v2277_v0 }
 0xc82   : > { %v2181_v60 = vmul.f32 %v2897_v33, %v2179_v35  ;;  %v2280_v47 = vadd.f32 -0.28449672, %v2278_v37 }
 0xc83   : > { %v2182_v31 = vadd.f32 0.2548296, %v2180_v7  ;;  %v2281_v57 = vmul.f32 %v2899_v44, %v2279_v11 }
 0xc84   : > { %v2183_v38 = vadd.f32 0.2548296, %v2181_v60  ;;  %v2282_v41 = vmul.f32 %v2901_v52, %v2280_v47 }
 0xc85   : > { %v2184_v56 = vmul.f32 %v2895_v39, %v2182_v31  ;;  %v2283_v8 = vadd.f32 0.2548296, %v2281_v57  ;;  %v2155_v31 = vmul.f32 0.5, %v4025_v49  ;;  %v2256_v57 = vmul.f32 0.5, %v4029_v51 }
 0xc86   : > { %v2185_v3 = vmul.f32 %v2897_v33, %v2183_v38  ;;  %v2284_v40 = vadd.f32 0.2548296, %v2282_v41 }
 0xc87   : > { %v2194_v18 = vmul.f32 %v2903_v1, %v2184_v56  ;;  %v2285_v61 = vmul.f32 %v2899_v44, %v2283_v8  ;;  %v2154_v44 = vmul.f32 0.5, %v4023_v22 }
 0xc88   : > { %v2195_v9 = vmul.f32 %v2905_v6, %v2185_v3  ;;  %v2286_v14 = vmul.f32 %v2901_v52, %v2284_v40 }
 0xc89   : > { %v2196_v17 = vsub.f32 1.0, %v2194_v18  ;;  %v2295_v19 = vmul.f32 %v2907_v29, %v2285_v61 }
 0xc8a   : > { %v2197_v21 = vsub.f32 1.0, %v2195_v9  ;;  %v2296_v30 = vmul.f32 %v2909_v27, %v2286_v14 }
 0xc8b   : > { %v2200_v36 = vsub.f32 0.0, %v2196_v17  ;;  %v2297_v35 = vsub.f32 1.0, %v2295_v19 }
 0xc8c   : > { %v2201_v39 = vsub.f32 0.0, %v2197_v21  ;;  %v2298_v0 = vsub.f32 1.0, %v2296_v30 }
 0xc8d   : > { %v2202_v33 = vsel %vm2198_vm8, %v2196_v17, %v2200_v36  ;;  %v2301_v37 = vsub.f32 0.0, %v2297_v35  ;;  %vm4355_vm8 = vcmask 769024  }
 0xc8e   : > { %v2203_v43 = vsel %vm2199_vm15, %v2197_v21, %v2201_v39  ;;  %v2204_v7 = vadd.f32 1.0, %v2202_v33  ;;  %v2302_v52 = vsub.f32 0.0, %v2298_v0  ;;  %vm4354_vm15 = vcmask 785408  }
 0xc8f   : > { %v2205_v60 = vadd.f32 1.0, %v2203_v43  ;;  %v2303_v54 = vsel %vm2299_vm1, %v2297_v35, %v2301_v37 }
 0xc90   : > { %v2206_v11 = vmul.f32 %v2204_v7, %v2154_v44  ;;  %v2304_v38 = vsel %vm2300_vm12, %v2298_v0, %v2302_v52  ;;  %v2305_v47 = vadd.f32 1.0, %v2303_v54 }
 0xc91   : > { %v2207_v56 = vmul.f32 %v2205_v60, %v2155_v31  ;;  %v2306_v1 = vadd.f32 1.0, %v2304_v38 }
 0xc92   : > { %v2307_v3 = vmul.f32 %v2305_v47, %v2255_v10 }
 0xc93   : > { %v2308_v41 = vmul.f32 %v2306_v1, %v2256_v57 }
 0xc94   : > { %v2315_v22 = vpack.c.bf16 %v2307_v3, %v2206_v11  ;;  %v2827_v3 = vld [vmem:[%s4245_s7 + $0x14] ss:$8 sps:$4 sm:$0xff]  }
 0xc95   : > { %v2316_v6 = vpack.c.bf16 %v2308_v41, %v2207_v56 }
 0xc96   : > { %v2326_v4 = vsel %vm1751_vm3, %v2315_v22, 0  ;;  %v2329_v51 = vsel %vm1785_vm9, %v2315_v22, 0  ;;  %v2332_v16 = vsel %vm1796_vm10, %v2315_v22, 0  ;;  %vm4340_vm3 = vcmp.ne.s16.totalorder %v3167_v25, 0 }
 0xc97   : > { %v2327_v49 = vsel %vm1752_vm7, %v2316_v6, 0  ;;  %2356 = vrot.lane.b32.xlu1 %v2326_v4, %s2988_s23  ;;  %v2330_v42 = vsel %vm1786_vm14, %v2316_v6, 0  ;;  %v2333_v5 = vsel %vm1797_vm11, %v2316_v6, 0  ;;  %v2335_v48 = vsel %vm697_vm6, %v2316_v6, 0 }
 0xc98   : > { %2358 = vrot.lane.b32.xlu0 %v2327_v49, %s2988_s23  ;;  %v2334_v55 = vsel %vm4340_vm3, %v2315_v22, 0  ;;  %v2340_v15 = vsel %vm1813_vm5, %v2316_v6, 0  ;;  %v2339_v58 = vsel %vm1812_vm0, %v2315_v22, 0  ;;  %v2342_v26 = vsel %vm1824_vm2, %v2315_v22, 0  ;;  %s4346_s23 = smov 60   ;;  %vm4356_vm3 = vmmov %vm4354_vm15 }
 0xc99   : > { %vm4341_vm6 = vcmp.ne.s16.totalorder %v3834_v32, 0  ;;  %vm4342_vm7 = vcmp.ne.s16.totalorder %v3841_v50, 0  ;;  %vm4343_vm14 = vcmp.ne.s16.totalorder %v3837_v45, 0  ;;  %vm4344_vm9 = vcmp.ne.s16.totalorder %v3857_v53, 0  ;;  %v2355_v53 = vpop.permute.xlu1 %2354 }
 0xc9a   : > { %v2343_v25 = vsel %vm4341_vm6, %v2316_v6, 0  ;;  %v2346_v20 = vsel %vm4342_vm7, %v2316_v6, 0  ;;  %v2345_v59 = vsel %vm4343_vm14, %v2315_v22, 0  ;;  %v2348_v23 = vsel %vm4344_vm9, %v2315_v22, 0 }
 0xc9b   : > { %2369 = vrot.lane.b32.xlu1 %v2330_v42, %s2998_s28  ;;  %vm4345_vm10 = vcmp.ne.s16.totalorder %v3865_v62, 0  ;;  %vm4348_vm11 = vcmp.ne.s16.totalorder %v3877_v13, 0  ;;  %vm4349_vm5 = vcmp.ne.s16.totalorder %v3886_v2, 0  ;;  %v2366_v62 = vpop.permute.xlu0 %2365  ;;  %vm4350_vm0 = vcmask 1031168   ;;  %v2708_v42 = vld [vmem:[%s4246_s8 + $0x18] sm:$0xff] }
 0xc9c   : > { %2367 = vrot.lane.b32.xlu0 %v2329_v51, %s2998_s28  ;;  %v2349_v32 = vsel %vm4345_vm10, %v2316_v6, 0  ;;  %v2324_v45 = vsel %vm4348_vm11, %v2316_v6, 0  ;;  %v2323_v50 = vsel %vm4349_vm5, %v2315_v22, 0  ;;  %vm4351_vm2 = vcmask 1014784   ;;  %vm4352_vm12 = vmmov %vm4350_vm0  ;;  %v2707_v51 = vld [vmem:[%s4246_s8 + $0x10] sm:$0xff] }
 0xc9d   : > { %v2377_v63 = vpop.permute.xlu1 %2376  ;;  %vm4353_vm1 = vmmov %vm4351_vm2  ;;  %vm4357_vm6 = vcmask 523264   ;;  %vm4358_vm7 = vcmask 506880   ;;  %vm4360_vm9 = vcmask 130048   ;;  %vm4361_vm10 = vcmask 490496  }
 0xc9e   : > { %vm4359_vm14 = vmmov %vm4357_vm6  ;;  %2711 = vmatprep.mubr.msk.bf16.mxu1 %vm4360_vm9, %v2827_v3 }
 0xc9f   : > { %2378 = vrot.lane.b32.xlu1 %v2332_v16, %s4301_s26  ;;  %v2399_v18 = vpop.permute.xlu0 %2398  ;;  %vm4363_vm11 = vmmov %vm4361_vm10 }
 0xca0   : > { %2380 = vrot.lane.b32.xlu0 %v2333_v5, %s4301_s26  ;;  %s4347_s26 = smov 34  }
 0xca1   : > { %v2410_v8 = vpop.permute.xlu1 %2409 }
 0xca3   : > { %2388 = vrot.lane.b32.xlu1 %v2335_v48, %s4311_s14  ;;  %v2421_v9 = vpop.permute.xlu0 %2420 }
 0xca4   : > { %2386 = vrot.lane.b32.xlu0 %v2334_v55, %s4311_s14  ;;  %s2718_s14 = sshll.u32 %s3076_s13, 9 }
 0xca5   : > { %s4194_s29 = scalar_lea.hbm %s4247_s9, %s2718_s14 }
 0xca7   : > { %2396 = vrot.lane.b32.xlu1 %v2340_v15, %s4337_s24 }
 0xca8   : > { %2394 = vrot.lane.b32.xlu0 %v2339_v58, %s4337_s24  ;;  %s2920_s24 = scalar_lea.vmem %s2919_s27, 1024 }
 0xcab   : > { %2405 = vrot.lane.b32.xlu1 %v2342_v26, %s4338_s25 }
 0xcac   : > { %2407 = vrot.lane.b32.xlu0 %v2343_v25, %s4338_s25  ;;  %s323_s25 = sand.u32 1, %s2968_s10  }
 0xcad   : > { %s4196_s13 = scalar_lea.sflag [#allocation4], %s323_s25 }
 0xcaf   : > { %2418 = vrot.lane.b32.xlu1 %v2346_v20, %s4339_s16 }
 0xcb0   : > { %2416 = vrot.lane.b32.xlu0 %v2345_v59, %s4339_s16  ;;  %s2681_s16 = sshll.u32 %s323_s25, 5 }
 0xcb3   : > { %2427 = vrot.lane.b32.xlu1 %v2348_v23, %s4346_s23 }
 0xcb4   : > { %2429 = vrot.lane.b32.xlu0 %v2349_v32, %s4346_s23 }
 0xcb7   : > { %2431 = vrot.lane.b32.xlu1 %v2978_v12, %s4346_s23  ;;  %s325_s23 = scalar_lea.vmem [#allocation3], %s2681_s16 }
 0xcb8   : > { %2457 = vrot.lane.b32.xlu0 %v2978_v12, %s4347_s26 }
 0xcbb   : > { %2461 = vrot.lane.b32.xlu1 %v2324_v45, %s4347_s26 }
 0xcbc   : > { %2459 = vrot.lane.b32.xlu0 %v2323_v50, %s4347_s26 }
 0xd09   : > { %v2357_v40 = vpop.permute.xlu1 %2356 }
 0xd0a   : > { %v2359_v17 = vpop.permute.xlu0 %2358  ;;  %v2360_v35 = vsel %vm4352_vm12, %v2355_v53, %v2357_v40 }
 0xd0b   : > { %2467 = vrot.lane.b32.xlu0 %v2359_v17, %s4347_s26  ;;  %v2361_v19 = vsel %vm4350_vm0, %v2357_v40, %v2359_v17 }
 0xd0d   : > { %v2370_v12 = vpop.permute.xlu1 %2369 }
 0xd0e   : > { %v2368_v13 = vpop.permute.xlu0 %2367  ;;  %2473 = vrot.lane.b32.xlu1 %v2370_v12, %s4347_s26 }
 0xd0f   : > { %v2372_v30 = vsel %vm4351_vm2, %v2368_v13, %v2370_v12  ;;  %v2371_v7 = vsel %vm4353_vm1, %v2366_v62, %v2368_v13 }
 0xd11   : > { %v2379_v61 = vpop.permute.xlu1 %2378 }
 0xd12   : > { %v2381_v29 = vpop.permute.xlu0 %2380  ;;  %v2382_v31 = vsel %vm4356_vm3, %v2377_v63, %v2379_v61 }
 0xd13   : > { %2479 = vrot.lane.b32.xlu0 %v2381_v29, %s4347_s26  ;;  %v2383_v60 = vsel %vm4354_vm15, %v2379_v61, %v2381_v29 }
 0xd15   : > { %v2389_v2 = vpop.permute.xlu1 %2388 }
 0xd16   : > { %v2387_v21 = vpop.permute.xlu0 %2386  ;;  %2485 = vrot.lane.b32.xlu1 %v2389_v2, %s4347_s26 }
 0xd17   : > { %2481 = vrot.lane.b32.xlu0 %v2387_v21, %s4347_s26  ;;  %v2390_v44 = vsel %vm4355_vm8, %v2387_v21, %v2389_v2 }
 0xd19   : > { %v2397_v14 = vpop.permute.xlu1 %2396 }
 0xd1a   : > { %v2395_v27 = vpop.permute.xlu0 %2394  ;;  %v2401_v11 = vsel %vm1904_vm4, %v2397_v14, %v2399_v18 }
 0xd1b   : > { %2487 = vrot.lane.b32.xlu1 %v2395_v27, %s4347_s26  ;;  %v2400_v1 = vsel %vm1904_vm4, %v2395_v27, %v2397_v14  ;;  %vm4362_vm4 = vmmov %vm4358_vm7 }
 0xd1d   : > { %v2406_v36 = vpop.permute.xlu1 %2405 }
 0xd1e   : > { %v2408_v39 = vpop.permute.xlu0 %2407  ;;  %2493 = vrot.lane.b32.xlu0 %v2406_v36, %s4347_s26 }
 0xd1f   : > { %2465 = vrot.lane.b32.xlu1 %v2361_v19, %s4347_s26  ;;  %v2411_v57 = vsel %vm4357_vm6, %v2406_v36, %v2408_v39  ;;  %v2412_v22 = vsel %vm4359_vm14, %v2408_v39, %v2410_v8 }
 0xd21   : > { %v2419_v33 = vpop.permute.xlu1 %2418 }
 0xd22   : > { %v2417_v43 = vpop.permute.xlu0 %2416  ;;  %2471 = vrot.lane.b32.xlu0 %v2372_v30, %s4347_s26  ;;  %v2423_v41 = vsel %vm4358_vm7, %v2419_v33, %v2421_v9 }
 0xd23   : > { %2463 = vrot.lane.b32.xlu1 %v2360_v35, %s4347_s26  ;;  %v2422_v4 = vsel %vm4362_vm4, %v2417_v43, %v2419_v33 }
 0xd25   : > { %v2428_v0 = vpop.permute.xlu1 %2427 }
 0xd26   : > { %v2430_v37 = vpop.permute.xlu0 %2429  ;;  %2469 = vrot.lane.b32.xlu0 %v2371_v7, %s4347_s26 }
 0xd27   : > { %2477 = vrot.lane.b32.xlu1 %v2383_v60, %s4347_s26  ;;  %v2433_v6 = vsel %vm4361_vm10, %v2428_v0, %v2430_v37 }
 0xd29   : > { %v2432_v52 = vpop.permute.xlu1 %2431 }
 0xd2a   : > { %v2458_v54 = vpop.permute.xlu0 %2457  ;;  %2483 = vrot.lane.b32.xlu0 %v2390_v44, %s4347_s26  ;;  %v2434_v49 = vsel %vm4363_vm11, %v2430_v37, %v2432_v52  ;;  %v2829_v37 = vld [vmem:[%s4245_s7 + $0x10] ss:$8 sps:$4 sm:$0xff]  }
 0xd2b   : > { %2475 = vrot.lane.b32.xlu1 %v2382_v31, %s4347_s26 }
 0xd2d   : > { %v2462_v10 = vpop.permute.xlu1 %2461 }
 0xd2e   : > { %v2460_v38 = vpop.permute.xlu0 %2459  ;;  %2491 = vrot.lane.b32.xlu0 %v2401_v11, %s4347_s26 }
 0xd2f   : > { %v2511_v47 = vsel %vm1846_vm13, %v2458_v54, %v2460_v38  ;;  %2499 = vrot.lane.b32.xlu1 %v2417_v43, %s4347_s26  ;;  %v2512_v56 = vsel %vm1846_vm13, %v2460_v38, %v2462_v10 }
 0xd30   : > { %2550 = vmatprep.subr.bf16.mxu1 %v2512_v56 }
 0xd31   : > { %2551 = vmatpush1.bf16.msra.mxu1 %v2511_v47 }
 0xd32   : > { %2495 = vrot.lane.b32.xlu0 %v2411_v57, %s4347_s26 }
 0xd33   : > { %2489 = vrot.lane.b32.xlu1 %v2400_v1, %s4347_s26 }
 0xd36   : > { %2503 = vrot.lane.b32.xlu0 %v2423_v41, %s4347_s26 }
 0xd37   : > { %2497 = vrot.lane.b32.xlu1 %v2412_v22, %s4347_s26 }
 0xd3a   : > { %2507 = vrot.lane.b32.xlu0 %v2433_v6, %s4347_s26 }
 0xd3b   : > { %2501 = vrot.lane.b32.xlu1 %v2422_v4, %s4347_s26 }
 0xd3e   : > { %2505 = vrot.lane.b32.xlu0 %v2428_v0, %s4347_s26 }
 0xd3f   : > { %2509 = vrot.lane.b32.xlu1 %v2434_v49, %s4347_s26  ;;  %s2615_s26 = sshll.u32 %s325_s23, 4  ;;  %s4187_s26 = int_to_ptr.vmem [resolvable:$true] %s2615_s26 }
 0xd40   : > { %s2914_s17 = scalar_lea.vmem %s4187_s26, 512  ;;  %p2921_p0 = scmp.lt.s32.totalorder %s4187_s26, %s2919_s27 }
 0xd41   : > { %p2915_p11 = scmp.ne.s32.totalorder %s4187_s26, %s2914_s17  ;;  %p2922_p1 = scmp.lt.s32.totalorder %s2920_s24, %s2914_s17 }
 0xd42   : > { %2442 = vperm.xlu0 %2816, %v2708_v42  }
 0xd43   : > { %2437 = vperm.xlu1 %2817, %v2707_v51   ;;  %p2916_p12 = pnand %p2915_p11, %p3093_p5  ;;  %p2923_p2 = por %p2922_p1, %p2921_p0 }
 0xd45   : > { %p2917_p13 = pneg %p2916_p12 }
 0xd47   : > { %p2924_p3 = pnand %p2923_p2, %p2917_p13 }
 0xd7d   : > { %v2468_v16 = vpop.permute.xlu0 %2467 }
 0xd80   : > { %v2474_v5 = vpop.permute.xlu1 %2473 }
 0xd85   : > { %v2480_v48 = vpop.permute.xlu0 %2479 }
 0xd88   : > { %v2486_v55 = vpop.permute.xlu1 %2485 }
 0xd89   : > { %v2482_v15 = vpop.permute.xlu0 %2481 }
 0xd8d   : > { %v2488_v58 = vpop.permute.xlu1 %2487 }
 0xd90   : > { %v2494_v26 = vpop.permute.xlu0 %2493 }
 0xd91   : > { %v2466_v25 = vpop.permute.xlu1 %2465 }
 0xd92   : > { %v2514_v20 = vsel %vm1846_vm13, %v2466_v25, %v2468_v16 }
 0xd93   : > { %2552 = vmatprep.subr.bf16.mxu1 %v2514_v20 }
 0xd94   : > { %v2472_v59 = vpop.permute.xlu0 %2471 }
 0xd95   : > { %v2464_v23 = vpop.permute.xlu1 %2463  ;;  %v2516_v32 = vsel %vm1846_vm13, %v2472_v59, %v2474_v5 }
 0xd96   : > { %v2513_v45 = vsel %vm1846_vm13, %v2464_v23, %v2466_v25 }
 0xd97   : > { %2553 = vmatpush1.bf16.msra.mxu1 %v2513_v45 }
 0xd98   : > { %2554 = vmatprep.subr.bf16.mxu1 %v2516_v32  ;;  %v2470_v50 = vpop.permute.xlu0 %2469 }
 0xd99   : > { %v2478_v53 = vpop.permute.xlu1 %2477  ;;  %v2515_v62 = vsel %vm1846_vm13, %v2470_v50, %v2472_v59 }
 0xd9a   : > { %v2518_v63 = vsel %vm1846_vm13, %v2478_v53, %v2480_v48 }
 0xd9b   : > { %2555 = vmatpush1.bf16.msra.mxu1 %v2515_v62 }
 0xd9c   : > { %2556 = vmatprep.subr.bf16.mxu1 %v2518_v63  ;;  %v2484_v18 = vpop.permute.xlu0 %2483 }
 0xd9d   : > { %v2476_v8 = vpop.permute.xlu1 %2475  ;;  %v2520_v9 = vsel %vm1846_vm13, %v2484_v18, %v2486_v55  ;;  %v2519_v13 = vsel %vm1846_vm13, %v2482_v15, %v2484_v18 }
 0xd9e   : > { %v2517_v40 = vsel %vm1846_vm13, %v2476_v8, %v2478_v53 }
 0xd9f   : > { %2557 = vmatpush1.bf16.msra.mxu1 %v2517_v40 }
 0xda0   : > { %2558 = vmatprep.subr.bf16.mxu1 %v2520_v9  ;;  %v2492_v17 = vpop.permute.xlu0 %2491 }
 0xda1   : > { %v2500_v12 = vpop.permute.xlu1 %2499 }
 0xda3   : > { %2559 = vmatpush1.bf16.msra.mxu1 %v2519_v13 }
 0xda4   : > { %v2496_v61 = vpop.permute.xlu0 %2495 }
 0xda5   : > { %v2490_v29 = vpop.permute.xlu1 %2489  ;;  %v2523_v19 = vsel %vm1846_vm13, %v2494_v26, %v2496_v61 }
 0xda6   : > { %v2521_v2 = vsel %vm1846_vm13, %v2488_v58, %v2490_v29  ;;  %v2522_v21 = vsel %vm1846_vm13, %v2490_v29, %v2492_v17 }
 0xda7   : > { %2560 = vmatprep.subr.bf16.mxu1 %v2522_v21 }
 0xda8   : > { %2561 = vmatpush1.bf16.msra.mxu1 %v2521_v2  ;;  %v2504_v14 = vpop.permute.xlu0 %2503 }
 0xda9   : > { %v2498_v27 = vpop.permute.xlu1 %2497 }
 0xdaa   : > { %v2524_v36 = vsel %vm1846_vm13, %v2496_v61, %v2498_v27 }
 0xdab   : > { %2562 = vmatprep.subr.bf16.mxu1 %v2524_v36 }
 0xdac   : > { %2563 = vmatpush1.bf16.msra.mxu1 %v2523_v19  ;;  %v2508_v39 = vpop.permute.xlu0 %2507 }
 0xdad   : > { %v2502_v30 = vpop.permute.xlu1 %2501 }
 0xdae   : > { %v2525_v33 = vsel %vm1846_vm13, %v2500_v12, %v2502_v30  ;;  %v2526_v35 = vsel %vm1846_vm13, %v2502_v30, %v2504_v14 }
 0xdaf   : > { %2564 = vmatprep.subr.bf16.mxu1 %v2526_v35 }
 0xdb0   : > { %2565 = vmatpush1.bf16.msra.mxu1 %v2525_v33  ;;  %v2506_v43 = vpop.permute.xlu0 %2505 }
 0xdb1   : > { %v2510_v7 = vpop.permute.xlu1 %2509  ;;  %v2527_v0 = vsel %vm1846_vm13, %v2506_v43, %v2508_v39 }
 0xdb2   : > { %v2528_v60 = vsel %vm1846_vm13, %v2508_v39, %v2510_v7 }
 0xdb3   : > { %2566 = vmatprep.subr.bf16.mxu1 %v2528_v60 }
 0xdb4   : > { %2567 = vmatpush1.bf16.msra.mxu1 %v2527_v0 }
 0xdb7   : > { %2583 = vmatmul.mubr.bf16.vlgmr.msra.gmra.mrb[4].mxu1 %v2829_v37 }
 0xdc1   : > { %v2443_v11 = vpop.permute.xlu0 %2442 }
 0xdc2   : > { %v2438_v44 = vpop.permute.xlu1 %2437 }
 0xe8a   : > { %v2584_v52 = vpop.f32.mrb[4].mxu1 }
 0xe8b   : > { %v2585_v31 = vadd.f32 %v2584_v52, %v2438_v44  ;;  %v2586_v54 = vpop.f32.mrb[5].mxu1 }
 0xe8c   : > { %v2587_v10 = vadd.f32 %v2586_v54, %v2438_v44  ;;  %v2588_v38 = vpop.f32.mrb[6].mxu1 }
 0xe8d   : > { %v2593_v47 = vadd.f32 %v2585_v31, %v3657_v28  ;;  %v2589_v56 = vadd.f32 %v2588_v38, %v2443_v11  ;;  %v2590_v57 = vpop.f32.mrb[7].mxu1 }
 0xe8e   : > { %v2594_v1 = vadd.f32 %v2587_v10, %v3660_v46  ;;  %v2591_v3 = vadd.f32 %v2590_v57, %v2443_v11 }
 0xe8f   : > { %2597 = vst [vmem:[%s325_s23] sm:$0xff] %v2593_v47  ;;  %v2595_v41 = vadd.f32 %v2589_v56, %v3663_v24 }
 0xe90   : > { %2598 = vst [vmem:[%s325_s23 + $0x8] sm:$0xff] %v2594_v1  ;;  %v2596_v22 = vadd.f32 %v2591_v3, %v3668_v34 }
 0xe91   : > { %2599 = vst [vmem:[%s325_s23 + $0x10] sm:$0xff] %v2595_v41 }
 0xe92   : > { %2600 = vst [vmem:[%s325_s23 + $0x18] sm:$0xff] %v2596_v22 }
 0xe93   : > { %2927 = shalt.err (!%p2924_p3)
}
 0xe94   : > { %s2928_s25 = scalar_lea.hbm %s4194_s29, 512  ;;  %s2932_s14 = scalar_lea.hbm %s4247_s9, 1024 }
 0xe95   : > { %p2929_p4 = scmp.ne.s32.totalorder %s4194_s29, %s2928_s25  ;;  %p2933_p9 = scmp.lt.u32.totalorder %s4194_s29, %s4247_s9 }
 0xe96   : > { %p2934_p10 = scmp.lt.u32.totalorder %s2932_s14, %s2928_s25  ;;  %p2936_p12 = scmp.lt.u32.totalorder %s2928_s25, %s4194_s29 }
 0xe97   : > { %p2930_p7 = pnand %p2929_p4, %p3093_p5 }
 0xe98   : > { %p2935_p11 = por %p2934_p10, %p2933_p9 }
 0xe99   : > { %p2931_p8 = pneg %p2930_p7 }
 0xe9a   : > { %p2937_p13 = por %p2936_p12, %p2935_p11 }
 0xe9c   : > { %p2938_p0 = pnand %p2937_p13, %p2931_p8 }
 0xe9e   : > { %2941 = shalt.err (!%p2938_p0)
}
 0xe9f   : > { %s3004_s17 = smov 256   ;;  %s4364_s22 = smov 16  }
 0xea0   : > { %2751 = dma.vmem_to_hbm [thread:$0]  (%p3093_p5), %s4187_s26, 512, %s4194_s29, %s4196_s13, %s3004_s17, %s3004_s17, %s4364_s22  }
 0xea1 PF: > { %p2757_p1 = scmp.ge.s32.totalorder %s2976_s12, 2  ;;  %s2630_s27 = sand.u32 1, %s2964_s30  }
 0xea2   : > { %s2631_s24 = scalar_lea.sflag [#allocation4], %s2630_s27 }
 0xea3   : > { %p2754_p2 = pnand %p2757_p1, %p3097_p6 }
 0xea5   : > { %2959 = dma.done.wait (!%p2754_p2), %s2631_s24, 512  }
 0xea6   : > { %2961 = vsyncadd (!%p2754_p2), %s2631_s24, 4294966784  ;;  %p19_p3 = scmp.ge.s32.totalorder %s3080_s15, 4   ;;  %s4365_s30 = smov %s2968_s10 }
 0xea7   : > { %s4366_s10 = smov %s2972_s11  ;;  %s4367_s11 = smov %s3091_s18 }
 0xea8   : > { %s4368_s12 = smov %s3080_s15  ;;  %21 = sbr.rel (!%p19_p3) target bundleno = 3 (0x3), region = 99 }
 0xeaf   :  { %2636 = vsyncpa [#allocation4], 1 }
 0xeb0   :  { %2638 = vsyncpa [#allocation4 + $0x1], 1 }

</bundles_post_ra>
